<compile_context>
chip_gen: v5e
topology: v5e:2x2
jax: 0.10.0
libtpu: 0.0.40
codegen_flags: <defaults>
</compile_context>

<pallas_src>
import functools

import jax
import jax.numpy as jnp
from jax.experimental import pallas as pl
from jax.experimental.pallas import tpu as pltpu


def _rup(n, m=128):
    return ((n + m - 1) // m) * m


# ---------------------------------------------------------------------------
# Generation-aware configuration (VMEM budget / tile policy)
# ---------------------------------------------------------------------------
def _tpu_config():
    # conservative defaults (work on every gen)
    cfg = {"tile_cap": 512, "force_two": False, "vmem_limit": 32 * 1024 * 1024}
    try:
        info = pltpu.get_tpu_info()
        vmem = getattr(info, "vmem_capacity_bytes", None)
        if vmem is not None:
            if vmem <= 96 * 1024 * 1024:
                # v7x-like: 64 MiB VMEM per TC, 2 TensorCores -> keep tiles
                # modest and make sure the grid has >=2 steps for big M
                cfg = {"tile_cap": 512, "force_two": True,
                       "vmem_limit": 48 * 1024 * 1024}
            else:
                # v5e / v6e: 128 MiB VMEM, single TC -> biggest tile wins
                cfg = {"tile_cap": 1024, "force_two": False,
                       "vmem_limit": 64 * 1024 * 1024}
    except Exception:
        pass
    return cfg


_TCFG = _tpu_config()


def _cparams():
    return pltpu.CompilerParams(
        dimension_semantics=("parallel",),
        vmem_limit_bytes=_TCFG["vmem_limit"],
    )


def _tile_m(M):
    """Pick (tile_m, padded_M) for a row-tiled grid.

    Single-TC chips: single full block whenever it fits the cap.
    v7x: cap 512 and force >=2 grid steps when M is large enough to matter.
    Prefer padding M to a multiple of a big tile over a small exact divisor."""
    cap = _TCFG["tile_cap"]
    force2 = _TCFG["force_two"] and M >= 512
    if M <= cap and not force2:
        return M, M                                  # one full block, no pad
    upper = min(cap, M // 2 if force2 else M)
    best = 0
    for t in range(16, upper + 1, 16):               # multiples of 16: full
        if M % t == 0:                               # bf16 vreg sublane packs
            best = t
    if best >= 256:
        return best, M                               # big exact divisor
    if force2:
        tm = min(cap, _rup((M + 1) // 2, 16))
    else:
        tm = cap
    return tm, _rup(M, tm)


# ---------------------------------------------------------------------------
# Single-buffered specs for grid-invariant operands (weights / biases)
# ---------------------------------------------------------------------------
_BUFFERED1_OK = None


def _buffered1_ok():
    """Probe once whether pipeline_mode=pl.Buffered(1) compiles & is correct."""
    global _BUFFERED1_OK
    if _BUFFERED1_OK is None:
        try:
            def k(x_ref, w_ref, o_ref):
                o_ref[...] = jnp.dot(x_ref[...], w_ref[...],
                                     preferred_element_type=jnp.float32)

            x = jnp.ones((16, 128), jnp.bfloat16)
            w = jnp.ones((128, 128), jnp.bfloat16)
            out = pl.pallas_call(
                k,
                out_shape=jax.ShapeDtypeStruct((16, 128), jnp.float32),
                grid=(2,),
                in_specs=[
                    pl.BlockSpec((8, 128), lambda i: (i, 0)),
                    pl.BlockSpec((128, 128), lambda i: (0, 0),
                                 pipeline_mode=pl.Buffered(1)),
                ],
                out_specs=pl.BlockSpec((8, 128), lambda i: (i, 0)),
            )(x, w)
            jax.block_until_ready(out)
            _BUFFERED1_OK = bool(jnp.allclose(out, 128.0))
        except Exception:
            _BUFFERED1_OK = False
    return _BUFFERED1_OK


def _const_spec(shape):
    """BlockSpec for an operand whose block never changes across the grid."""
    imap = lambda i: tuple(0 for _ in shape)
    if _buffered1_ok():
        return pl.BlockSpec(shape, imap, pipeline_mode=pl.Buffered(1))
    return pl.BlockSpec(shape, imap)


# ---------------------------------------------------------------------------
# Pallas kernels
# ---------------------------------------------------------------------------
def _mm_bias_act_kernel(x_ref, w_ref, b_ref, o_ref, *, act):
    # one M-tile of:  Y = act(X @ W + b), bf16 operands, f32 accumulate
    y = jnp.dot(x_ref[...], w_ref[...], preferred_element_type=jnp.float32)
    y = y + b_ref[...]
    if act == "relu":
        y = jnp.maximum(y, 0.0)
    o_ref[...] = y.astype(o_ref.dtype)


def _dual_pe_kernel(xr_ref, xm_ref, wr_ref, wm_ref, br_ref, bm_ref,
                    fused_ref, fr_ref):
    # fused patch-embed pair + elementwise fusion (level 0 only: rgb branch
    # feature needed by the aux head):
    #   fr    = Xr @ Wr + br      (pre-relu / pre-fusion rgb feature)
    #   fm    = Xm @ Wm + bm
    #   fused = relu(fr + fm)
    fr = jnp.dot(xr_ref[...], wr_ref[...],
                 preferred_element_type=jnp.float32) + br_ref[...]
    fm = jnp.dot(xm_ref[...], wm_ref[...],
                 preferred_element_type=jnp.float32) + bm_ref[...]
    fused_ref[...] = jnp.maximum(fr + fm, 0.0).astype(fused_ref.dtype)
    fr_ref[...] = fr.astype(fr_ref.dtype)


def _dec_fuse_pred_kernel(f0, f1, f2, f3, w0, w1, w2, w3, bf, wp, bp, o_ref):
    # fused MLP-decoder tail (per-level linear already folded into Wi):
    #   seg = relu(sum_i fi @ Wi + bf) @ Wp + bp
    # sum-of-dots keeps the 4E concat out of HBM and maps to MXU accumulate.
    acc = jnp.dot(f0[...], w0[...], preferred_element_type=jnp.float32)
    acc = acc + jnp.dot(f1[...], w1[...], preferred_element_type=jnp.float32)
    acc = acc + jnp.dot(f2[...], w2[...], preferred_element_type=jnp.float32)
    acc = acc + jnp.dot(f3[...], w3[...], preferred_element_type=jnp.float32)
    fuse = jnp.maximum(acc + bf[...], 0.0)
    seg = jnp.dot(fuse.astype(jnp.bfloat16), wp[...],
                  preferred_element_type=jnp.float32) + bp[...]
    o_ref[...] = seg.astype(o_ref.dtype)


# ---------------------------------------------------------------------------
# Pallas wrappers
# ---------------------------------------------------------------------------
def matmul_bias_act(x, w, b, act=None, out_dtype=jnp.bfloat16):
    """x: (M, K); w: (K, Npad) bf16 (N padded to 128); b: (1, Npad) f32."""
    M, K = x.shape
    N = w.shape[1]
    x = x.astype(jnp.bfloat16)
    tm, m_pad = _tile_m(M)
    if m_pad != M:
        x = jnp.pad(x, ((0, m_pad - M), (0, 0)))
    row = lambda i: (i, 0)
    out = pl.pallas_call(
        functools.partial(_mm_bias_act_kernel, act=act),
        out_shape=jax.ShapeDtypeStruct((m_pad, N), out_dtype),
        grid=(m_pad // tm,),
        in_specs=[pl.BlockSpec((tm, K), row),
                  _const_spec((K, N)),
                  _const_spec((1, N))],
        out_specs=pl.BlockSpec((tm, N), row),
        compiler_params=_cparams(),
    )(x, w, b)
    return out[:M] if m_pad != M else out


def _space_to_depth(x_nhwc, s):
    """Non-overlapping stride-s patchify -> (B*h*w, s*s*C), dtype preserved."""
    B, H, W, C = x_nhwc.shape
    hh, ww = H // s, W // s
    x = x_nhwc.reshape(B, hh, s, ww, s, C)
    x = jnp.transpose(x, (0, 1, 3, 2, 4, 5))
    return x.reshape(B * hh * ww, s * s * C)


def dual_patch_embed(rgb_bf, mod_bf, wr, br, wm, bm, stride):
    """Level-0 fused patch-embed pair + relu fusion (rgb branch emitted too).
    Inputs are already bf16 NHWC.  Returns (fused NHWC bf16, rgb NHWC bf16)."""
    B, H, W, _ = rgb_bf.shape
    s = stride
    hh, ww = H // s, W // s
    xr = _space_to_depth(rgb_bf, s)
    xm = _space_to_depth(mod_bf, s)
    M, K = xr.shape
    N = wr.shape[1]
    tm, m_pad = _tile_m(M)
    if m_pad != M:
        xr = jnp.pad(xr, ((0, m_pad - M), (0, 0)))
        xm = jnp.pad(xm, ((0, m_pad - M), (0, 0)))
    row = lambda i: (i, 0)
    fused, fr = pl.pallas_call(
        _dual_pe_kernel,
        out_shape=(jax.ShapeDtypeStruct((m_pad, N), jnp.bfloat16),
                   jax.ShapeDtypeStruct((m_pad, N), jnp.bfloat16)),
        grid=(m_pad // tm,),
        in_specs=[pl.BlockSpec((tm, K), row)] * 2
                 + [_const_spec((K, N))] * 2
                 + [_const_spec((1, N))] * 2,
        out_specs=(pl.BlockSpec((tm, N), row), pl.BlockSpec((tm, N), row)),
        compiler_params=_cparams(),
    )(xr, xm, wr, wm, br, bm)

    def unflat(y):
        y = y[:M] if m_pad != M else y
        return y.reshape(B, hh, ww, N)

    return unflat(fused), unflat(fr)


def dec_fuse_pred(feats, comb_ws, comb_b, pred_w, pred_b,
                  out_dtype=jnp.bfloat16):
    """Fused decoder tail: seg = relu(sum_i feats[i] @ Wcomb_i + b) @ Wp + bp."""
    feats = [f.astype(jnp.bfloat16) for f in feats]
    M = feats[0].shape[0]
    N = pred_w.shape[1]
    tm, m_pad = _tile_m(M)
    if m_pad != M:
        feats = [jnp.pad(f, ((0, m_pad - M), (0, 0))) for f in feats]
    row = lambda i: (i, 0)
    in_specs = ([pl.BlockSpec((tm, f.shape[1]), row) for f in feats]
                + [_const_spec(w.shape) for w in comb_ws]
                + [_const_spec(comb_b.shape)]
                + [_const_spec(pred_w.shape), _const_spec(pred_b.shape)])
    out = pl.pallas_call(
        _dec_fuse_pred_kernel,
        out_shape=jax.ShapeDtypeStruct((m_pad, N), out_dtype),
        grid=(m_pad // tm,),
        in_specs=in_specs,
        out_specs=pl.BlockSpec((tm, N), row),
        compiler_params=_cparams(),
    )(*feats, *comb_ws, comb_b, pred_w, pred_b)
    return out[:M] if m_pad != M else out


def conv1x1(x_nhwc, w, b, act=None, out_dtype=jnp.bfloat16):
    B, H, W, C = x_nhwc.shape
    y = matmul_bias_act(x_nhwc.reshape(-1, C), w, b, act=act,
                        out_dtype=out_dtype)
    return y.reshape(B, H, W, w.shape[1])


def bilinear_resize_nhwc(x, h, w):
    B, hh, ww, C = x.shape
    if (hh, ww) == (h, w):
        return x
    # matches F.interpolate(mode='bilinear', align_corners=False)
    return jax.image.resize(x, (B, h, w, C), method="bilinear")


# ---------------------------------------------------------------------------
# Parameters (deterministic, synthetic; N dims pre-padded to 128 lanes)
# ---------------------------------------------------------------------------
def make_params(key, in_ch, channels, embed_dim, seg_classes, det_out_ch):
    params = {}
    strides = [4, 8, 16, 32]
    cpad = [_rup(c) for c in channels]
    epad = _rup(embed_dim)

    def nxt():
        nonlocal key
        key, sub = jax.random.split(key)
        return sub

    def dense_f32(k_in, k_out):
        # f32 weight (k_in, rup128(k_out)) with zero-padded extra columns;
        # f32 bias (1, rup128(k_out)).  Padded lanes stay exactly zero.
        n_pad = _rup(k_out)
        w = jax.random.normal(nxt(), (k_in, k_out), jnp.float32) * 0.05
        w = jnp.pad(w, ((0, 0), (0, n_pad - k_out)))
        b = jnp.zeros((1, n_pad), jnp.float32)
        return w, b

    def to_bf(wb):
        w, b = wb
        return w.astype(jnp.bfloat16), b

    # backbone patch embeds.  Level 0 keeps separate rgb/modal weights (the
    # rgb-branch feature is needed for the aux head); levels 1-3 fuse the two
    # matmuls into one by interleaving weight rows to match a channel-concat
    # of the two modalities before space-to-depth.
    for i, (s, c) in enumerate(zip(strides, channels)):
        wr, br = dense_f32(s * s * in_ch, c)
        wm, bm = dense_f32(s * s * in_ch, c)
        if i == 0:
            params["pe_rgb_0"] = (wr.astype(jnp.bfloat16), br)
            params["pe_mod_0"] = (wm.astype(jnp.bfloat16), bm)
        else:
            n = wr.shape[1]
            wc = jnp.concatenate(
                [wr.reshape(s * s, in_ch, n), wm.reshape(s * s, in_ch, n)],
                axis=1).reshape(s * s * 2 * in_ch, n)
            params[f"pe_comb_{i}"] = (wc.astype(jnp.bfloat16), br + bm)

    # MLP decoder: per-level linear + fuse composed at param time
    # (bilinear resize commutes with the channel matmul, so
    #  Wcomb_i = Wlin_i @ Wfuse_i and the linear biases fold into the fuse bias)
    comb_ws = []
    bias_acc = jnp.zeros((1, epad), jnp.float32)
    fuse_bias = None
    for i in range(4):
        wl, bl = dense_f32(cpad[i], embed_dim)       # (cpad_i, epad)
        wf, bf = dense_f32(epad, embed_dim)          # (epad, epad)
        comb_ws.append((wl @ wf).astype(jnp.bfloat16))
        bias_acc = bias_acc + bl @ wf
        fuse_bias = bf
    params["dec_comb_w"] = comb_ws
    params["dec_comb_b"] = bias_acc + fuse_bias
    params["dec_pred"] = to_bf(dense_f32(epad, seg_classes))

    # detect head (per-level 1x1 conv stand-in)
    for i in range(3):
        params[f"det_{i}"] = to_bf(dense_f32(cpad[i + 1], det_out_ch))
    # aux (fusion) head: project coarse vision feature back to image channels
    params["aux_proj"] = to_bf(dense_f32(cpad[0], in_ch))
    return params


# ---------------------------------------------------------------------------
# MRFS forward
# ---------------------------------------------------------------------------
def mrfs_forward(params, rgb, modal_x, *, channels, embed_dim,
                 seg_classes, det_out_ch):
    """rgb, modal_x: NCHW float32."""
    B, Cin, H, W = rgb.shape
    strides = [4, 8, 16, 32]

    # cast to bf16 once; channel-concat once (shared by 3 fused levels)
    rgb_nhwc = jnp.transpose(rgb, (0, 2, 3, 1)).astype(jnp.bfloat16)
    mod_nhwc = jnp.transpose(modal_x, (0, 2, 3, 1)).astype(jnp.bfloat16)
    both_nhwc = jnp.concatenate([rgb_nhwc, mod_nhwc], axis=-1)  # (B,H,W,2*Cin)

    # ---- backbone stand-in: fused patch-embed + relu fusion per level ----
    x_semantic = []
    x_vision0 = None
    for i, s in enumerate(strides):
        if i == 0:
            wr, br = params["pe_rgb_0"]
            wm, bm = params["pe_mod_0"]
            fused, fr = dual_patch_embed(rgb_nhwc, mod_nhwc, wr, br, wm, bm, s)
            x_vision0 = fr                  # rgb-branch feature for aux head
        else:
            wc, bc = params[f"pe_comb_{i}"]
            x = _space_to_depth(both_nhwc, s)
            y = matmul_bias_act(x, wc, bc, act="relu", out_dtype=jnp.bfloat16)
            fused = y.reshape(B, H // s, W // s, wc.shape[1])
        x_semantic.append(fused)            # NHWC bf16, channels padded to 128
    x_detection = x_semantic[1:]

    # ---- decode_head: SegFormer-style MLP decoder, dec_lin folded away ----
    th, tw = x_semantic[0].shape[1:3]
    dec_feats = []
    for f in x_semantic:
        r = bilinear_resize_nhwc(f, th, tw)          # bf16, raw (padded) chans
        dec_feats.append(r.reshape(-1, r.shape[-1]))
    seg = dec_fuse_pred(dec_feats, params["dec_comb_w"], params["dec_comb_b"],
                        *params["dec_pred"], out_dtype=jnp.bfloat16)
    seg = seg[:, :seg_classes].reshape(B, th, tw, seg_classes)
    seg = bilinear_resize_nhwc(seg, H, W)            # align_corners=False
    out_semantic = jnp.transpose(seg, (0, 3, 1, 2)).astype(jnp.float32)

    # ---- detect_head: per-level 1x1 conv stand-in for YoloHead ----
    out_detection = []
    for i, f in enumerate(x_detection):
        d = conv1x1(f, *params[f"det_{i}"], act=None, out_dtype=jnp.bfloat16)
        d = d[..., :det_out_ch]
        out_detection.append(
            jnp.transpose(d, (0, 3, 1, 2)).astype(jnp.float32))  # NCHW

    # ---- aux_head (CNNHead fusion image) stand-in ----
    # TODO(synk): x_vision0 is the pre-relu/pre-fusion rgb patch-embed feature;
    #             exact CNNHead feature definition lives in an external file.
    proj = conv1x1(x_vision0, *params["aux_proj"], act=None,
                   out_dtype=jnp.bfloat16)
    proj = proj[..., :Cin]
    proj = bilinear_resize_nhwc(proj, H, W)
    proj = jnp.transpose(proj, (0, 3, 1, 2)).astype(jnp.float32)
    fus_img = jax.nn.sigmoid(proj + 0.5 * (rgb + modal_x))       # (B, Cin, H, W)

    return [out_semantic, out_detection, fus_img]


# ---------------------------------------------------------------------------
if __name__ == "__main__":
    # small config consistent with MRFS (scaled down)
    B, Cin, H, W = 2, 3, 32, 32
    channels = [16, 32, 48, 64]        # stands in for [64, 128, 320, 512]
    embed_dim = 32                     # cfg.decoder_embed_dim
    seg_classes = 9                    # cfg.seg_num_classes
    detect_classes = 3                 # cfg.detect_num_classes
    reg_max = 16
    det_out_ch = 4 * reg_max + detect_classes

    key = jax.random.PRNGKey(0)
    k_rgb, k_mod, k_par = jax.random.split(key, 3)
    rgb = jax.random.uniform(k_rgb, (B, Cin, H, W), jnp.float32)
    modal_x = jax.random.uniform(k_mod, (B, Cin, H, W), jnp.float32)

    params = make_params(k_par, Cin, channels, embed_dim, seg_classes,
                         det_out_ch)

    _buffered1_ok()                    # run the Buffered(1) probe eagerly

    fwd = jax.jit(functools.partial(
        mrfs_forward, channels=channels, embed_dim=embed_dim,
        seg_classes=seg_classes, det_out_ch=det_out_ch))

    out_semantic, out_detection, fus_img = fwd(params, rgb, modal_x)
    jax.block_until_ready(out_semantic)
    jax.block_until_ready(out_detection)
    jax.block_until_ready(fus_img)

    assert out_semantic.shape == (B, seg_classes, H, W)
    assert len(out_detection) == 3
    assert out_detection[0].shape == (B, det_out_ch, H // 8, W // 8)
    assert out_detection[1].shape == (B, det_out_ch, H // 16, W // 16)
    assert out_detection[2].shape == (B, det_out_ch, H // 32, W // 32)
    assert fus_img.shape == (B, Cin, H, W)
    assert bool(jnp.all(jnp.isfinite(out_semantic)))
    assert bool(jnp.all(jnp.isfinite(fus_img)))

    print("KERNEL_OK")
</pallas_src>

<mosaic_0001>
module attributes {stable_mosaic.version = 11 : i64} {
  func.func @k(%arg0: i32, %arg1: memref<8x128xbf16, #tpu.memory_space<vmem>>, %arg2: memref<128x128xbf16, #tpu.memory_space<vmem>>, %arg3: memref<8x128xf32, #tpu.memory_space<vmem>>) attributes {dimension_semantics = [#tpu.dimension_semantics<arbitrary>], iteration_bounds = array<i64: 2>, scalar_prefetch = 0 : i64, scratch_operands = 0 : i64, tpu.core_type = #tpu.core_type<tc>, window_params = [{transform_indices = @transform_0, window_bounds = array<i64: 8, 128>}, {pipeline_mode = #tpu.pipeline_mode<synchronous>, transform_indices = @transform_1, window_bounds = array<i64: 128, 128>}, {transform_indices = @transform_2, window_bounds = array<i64: 8, 128>}]} {
    %c0 = arith.constant 0 : index
    %c0_0 = arith.constant 0 : index
    %0 = vector.load %arg1[%c0, %c0_0] : memref<8x128xbf16, #tpu.memory_space<vmem>>, vector<8x128xbf16>
    %c0_1 = arith.constant 0 : index
    %c0_2 = arith.constant 0 : index
    %1 = vector.load %arg2[%c0_1, %c0_2] : memref<128x128xbf16, #tpu.memory_space<vmem>>, vector<128x128xbf16>
    %cst = arith.constant dense<0.000000e+00> : vector<8x128xf32>
    %2 = tpu.matmul %0, %1, %cst {dimension_numbers = #tpu.dot_dimension_numbers<[1], [0], [0], [1], [0, 0, 1, 1], [], []>} : vector<8x128xbf16>, vector<128x128xbf16>, vector<8x128xf32> -> vector<8x128xf32>
    %c0_3 = arith.constant 0 : index
    %c0_4 = arith.constant 0 : index
    %3 = vector.load %arg3[%c0_3, %c0_4] : memref<8x128xf32, #tpu.memory_space<vmem>>, vector<8x128xf32>
    tpu.vector_store %arg3[%c0_3, %c0_4], %2 {strides = array<i32>} : memref<8x128xf32, #tpu.memory_space<vmem>>, vector<8x128xf32>,
    return
  }
  func.func @transform_0(%arg0: i32) -> (i32, i32) {
    %c0_i32 = arith.constant 0 : i32
    %c0_i32_0 = arith.constant 0 : i32
    return %arg0, %c0_i32 : i32, i32
  }
  func.func @transform_1(%arg0: i32) -> (i32, i32) {
    %c0_i32 = arith.constant 0 : i32
    %c0_i32_0 = arith.constant 0 : i32
    %c0_i32_1 = arith.constant 0 : i32
    return %c0_i32, %c0_i32_0 : i32, i32
  }
  func.func @transform_2(%arg0: i32) -> (i32, i32) {
    %c0_i32 = arith.constant 0 : i32
    %c0_i32_0 = arith.constant 0 : i32
    return %arg0, %c0_i32 : i32, i32
  }
}

module attributes {stable_mosaic.version = 11 : i64} {
  func.func @_dual_pe_kernel(%arg0: i32, %arg1: memref<128x48xbf16, #tpu.memory_space<vmem>>, %arg2: memref<128x48xbf16, #tpu.memory_space<vmem>>, %arg3: memref<48x128xbf16, #tpu.memory_space<vmem>>, %arg4: memref<48x128xbf16, #tpu.memory_space<vmem>>, %arg5: memref<1x128xf32, #tpu.memory_space<vmem>>, %arg6: memref<1x128xf32, #tpu.memory_space<vmem>>, %arg7: memref<128x128xbf16, #tpu.memory_space<vmem>>, %arg8: memref<128x128xbf16, #tpu.memory_space<vmem>>) attributes {dimension_semantics = [#tpu.dimension_semantics<parallel>], iteration_bounds = array<i64: 1>, scalar_prefetch = 0 : i64, scratch_operands = 0 : i64, tpu.core_type = #tpu.core_type<tc>, window_params = [{transform_indices = @transform_0, window_bounds = array<i64: 128, 48>}, {transform_indices = @transform_1, window_bounds = array<i64: 128, 48>}, {pipeline_mode = #tpu.pipeline_mode<synchronous>, transform_indices = @transform_2, window_bounds = array<i64: 48, 128>}, {pipeline_mode = #tpu.pipeline_mode<synchronous>, transform_indices = @transform_3, window_bounds = array<i64: 48, 128>}, {pipeline_mode = #tpu.pipeline_mode<synchronous>, transform_indices = @transform_4, window_bounds = array<i64: 1, 128>}, {pipeline_mode = #tpu.pipeline_mode<synchronous>, transform_indices = @transform_5, window_bounds = array<i64: 1, 128>}, {transform_indices = @transform_6, window_bounds = array<i64: 128, 128>}, {transform_indices = @transform_7, window_bounds = array<i64: 128, 128>}]} {
    %c0 = arith.constant 0 : index
    %c0_0 = arith.constant 0 : index
    %0 = vector.load %arg1[%c0, %c0_0] : memref<128x48xbf16, #tpu.memory_space<vmem>>, vector<128x48xbf16>
    %c0_1 = arith.constant 0 : index
    %c0_2 = arith.constant 0 : index
    %1 = vector.load %arg3[%c0_1, %c0_2] : memref<48x128xbf16, #tpu.memory_space<vmem>>, vector<48x128xbf16>
    %cst = arith.constant dense<0.000000e+00> : vector<128x128xf32>
    %2 = tpu.matmul %0, %1, %cst {dimension_numbers = #tpu.dot_dimension_numbers<[1], [0], [0], [1], [0, 0, 1, 1], [], []>} : vector<128x48xbf16>, vector<48x128xbf16>, vector<128x128xf32> -> vector<128x128xf32>
    %c0_3 = arith.constant 0 : index
    %c0_4 = arith.constant 0 : index
    %3 = vector.load %arg5[%c0_3, %c0_4] : memref<1x128xf32, #tpu.memory_space<vmem>>, vector<1x128xf32>
    %4 = vector.broadcast %3 : vector<1x128xf32> to vector<128x128xf32>
    %5 = arith.addf %2, %4 : vector<128x128xf32>
    %c0_5 = arith.constant 0 : index
    %c0_6 = arith.constant 0 : index
    %6 = vector.load %arg2[%c0_5, %c0_6] : memref<128x48xbf16, #tpu.memory_space<vmem>>, vector<128x48xbf16>
    %c0_7 = arith.constant 0 : index
    %c0_8 = arith.constant 0 : index
    %7 = vector.load %arg4[%c0_7, %c0_8] : memref<48x128xbf16, #tpu.memory_space<vmem>>, vector<48x128xbf16>
    %cst_9 = arith.constant dense<0.000000e+00> : vector<128x128xf32>
    %8 = tpu.matmul %6, %7, %cst_9 {dimension_numbers = #tpu.dot_dimension_numbers<[1], [0], [0], [1], [0, 0, 1, 1], [], []>} : vector<128x48xbf16>, vector<48x128xbf16>, vector<128x128xf32> -> vector<128x128xf32>
    %c0_10 = arith.constant 0 : index
    %c0_11 = arith.constant 0 : index
    %9 = vector.load %arg6[%c0_10, %c0_11] : memref<1x128xf32, #tpu.memory_space<vmem>>, vector<1x128xf32>
    %10 = vector.broadcast %9 : vector<1x128xf32> to vector<128x128xf32>
    %11 = arith.addf %8, %10 : vector<128x128xf32>
    %12 = arith.addf %5, %11 : vector<128x128xf32>
    %cst_12 = arith.constant 0.000000e+00 : f32
    %13 = vector.broadcast %cst_12 : f32 to vector<128x128xf32>
    %14 = arith.maximumf %12, %13 : vector<128x128xf32>
    %15 = arith.truncf %14 : vector<128x128xf32> to vector<128x128xbf16>
    %c0_13 = arith.constant 0 : index
    %c0_14 = arith.constant 0 : index
    %16 = vector.load %arg7[%c0_13, %c0_14] : memref<128x128xbf16, #tpu.memory_space<vmem>>, vector<128x128xbf16>
    tpu.vector_store %arg7[%c0_13, %c0_14], %15 {strides = array<i32>} : memref<128x128xbf16, #tpu.memory_space<vmem>>, vector<128x128xbf16>,
    %17 = arith.truncf %5 : vector<128x128xf32> to vector<128x128xbf16>
    %c0_15 = arith.constant 0 : index
    %c0_16 = arith.constant 0 : index
    %18 = vector.load %arg8[%c0_15, %c0_16] : memref<128x128xbf16, #tpu.memory_space<vmem>>, vector<128x128xbf16>
    tpu.vector_store %arg8[%c0_15, %c0_16], %17 {strides = array<i32>} : memref<128x128xbf16, #tpu.memory_space<vmem>>, vector<128x128xbf16>,
    return
  }
  func.func @transform_0(%arg0: i32) -> (i32, i32) {
    %c0_i32 = arith.constant 0 : i32
    %c0_i32_0 = arith.constant 0 : i32
    return %arg0, %c0_i32 : i32, i32
  }
  func.func @transform_1(%arg0: i32) -> (i32, i32) {
    %c0_i32 = arith.constant 0 : i32
    %c0_i32_0 = arith.constant 0 : i32
    return %arg0, %c0_i32 : i32, i32
  }
  func.func @transform_2(%arg0: i32) -> (i32, i32) {
    %c0_i32 = arith.constant 0 : i32
    %c0_i32_0 = arith.constant 0 : i32
    %c0_i32_1 = arith.constant 0 : i32
    return %c0_i32, %c0_i32_0 : i32, i32
  }
  func.func @transform_3(%arg0: i32) -> (i32, i32) {
    %c0_i32 = arith.constant 0 : i32
    %c0_i32_0 = arith.constant 0 : i32
    %c0_i32_1 = arith.constant 0 : i32
    return %c0_i32, %c0_i32_0 : i32, i32
  }
  func.func @transform_4(%arg0: i32) -> (i32, i32) {
    %c0_i32 = arith.constant 0 : i32
    %c0_i32_0 = arith.constant 0 : i32
    %c0_i32_1 = arith.constant 0 : i32
    return %c0_i32, %c0_i32_0 : i32, i32
  }
  func.func @transform_5(%arg0: i32) -> (i32, i32) {
    %c0_i32 = arith.constant 0 : i32
    %c0_i32_0 = arith.constant 0 : i32
    %c0_i32_1 = arith.constant 0 : i32
    return %c0_i32, %c0_i32_0 : i32, i32
  }
  func.func @transform_6(%arg0: i32) -> (i32, i32) {
    %c0_i32 = arith.constant 0 : i32
    %c0_i32_0 = arith.constant 0 : i32
    return %arg0, %c0_i32 : i32, i32
  }
  func.func @transform_7(%arg0: i32) -> (i32, i32) {
    %c0_i32 = arith.constant 0 : i32
    %c0_i32_0 = arith.constant 0 : i32
    return %arg0, %c0_i32 : i32, i32
  }
}

module attributes {stable_mosaic.version = 11 : i64} {
  func.func @_mm_bias_act_kernel(%arg0: i32, %arg1: memref<32x384xbf16, #tpu.memory_space<vmem>>, %arg2: memref<384x128xbf16, #tpu.memory_space<vmem>>, %arg3: memref<1x128xf32, #tpu.memory_space<vmem>>, %arg4: memref<32x128xbf16, #tpu.memory_space<vmem>>) attributes {dimension_semantics = [#tpu.dimension_semantics<parallel>], iteration_bounds = array<i64: 1>, scalar_prefetch = 0 : i64, scratch_operands = 0 : i64, tpu.core_type = #tpu.core_type<tc>, window_params = [{transform_indices = @transform_0, window_bounds = array<i64: 32, 384>}, {pipeline_mode = #tpu.pipeline_mode<synchronous>, transform_indices = @transform_1, window_bounds = array<i64: 384, 128>}, {pipeline_mode = #tpu.pipeline_mode<synchronous>, transform_indices = @transform_2, window_bounds = array<i64: 1, 128>}, {transform_indices = @transform_3, window_bounds = array<i64: 32, 128>}]} {
    %c0 = arith.constant 0 : index
    %c0_0 = arith.constant 0 : index
    %0 = vector.load %arg1[%c0, %c0_0] : memref<32x384xbf16, #tpu.memory_space<vmem>>, vector<32x384xbf16>
    %c0_1 = arith.constant 0 : index
    %c0_2 = arith.constant 0 : index
    %1 = vector.load %arg2[%c0_1, %c0_2] : memref<384x128xbf16, #tpu.memory_space<vmem>>, vector<384x128xbf16>
    %cst = arith.constant dense<0.000000e+00> : vector<32x128xf32>
    %2 = tpu.matmul %0, %1, %cst {dimension_numbers = #tpu.dot_dimension_numbers<[1], [0], [0], [1], [0, 0, 1, 1], [], []>} : vector<32x384xbf16>, vector<384x128xbf16>, vector<32x128xf32> -> vector<32x128xf32>
    %c0_3 = arith.constant 0 : index
    %c0_4 = arith.constant 0 : index
    %3 = vector.load %arg3[%c0_3, %c0_4] : memref<1x128xf32, #tpu.memory_space<vmem>>, vector<1x128xf32>
    %4 = vector.broadcast %3 : vector<1x128xf32> to vector<32x128xf32>
    %5 = arith.addf %2, %4 : vector<32x128xf32>
    %cst_5 = arith.constant 0.000000e+00 : f32
    %6 = vector.broadcast %cst_5 : f32 to vector<32x128xf32>
    %7 = arith.maximumf %5, %6 : vector<32x128xf32>
    %8 = arith.truncf %7 : vector<32x128xf32> to vector<32x128xbf16>
    %c0_6 = arith.constant 0 : index
    %c0_7 = arith.constant 0 : index
    %9 = vector.load %arg4[%c0_6, %c0_7] : memref<32x128xbf16, #tpu.memory_space<vmem>>, vector<32x128xbf16>
    tpu.vector_store %arg4[%c0_6, %c0_7], %8 {strides = array<i32>} : memref<32x128xbf16, #tpu.memory_space<vmem>>, vector<32x128xbf16>,
    return
  }
  func.func @transform_0(%arg0: i32) -> (i32, i32) {
    %c0_i32 = arith.constant 0 : i32
    %c0_i32_0 = arith.constant 0 : i32
    return %arg0, %c0_i32 : i32, i32
  }
  func.func @transform_1(%arg0: i32) -> (i32, i32) {
    %c0_i32 = arith.constant 0 : i32
    %c0_i32_0 = arith.constant 0 : i32
    %c0_i32_1 = arith.constant 0 : i32
    return %c0_i32, %c0_i32_0 : i32, i32
  }
  func.func @transform_2(%arg0: i32) -> (i32, i32) {
    %c0_i32 = arith.constant 0 : i32
    %c0_i32_0 = arith.constant 0 : i32
    %c0_i32_1 = arith.constant 0 : i32
    return %c0_i32, %c0_i32_0 : i32, i32
  }
  func.func @transform_3(%arg0: i32) -> (i32, i32) {
    %c0_i32 = arith.constant 0 : i32
    %c0_i32_0 = arith.constant 0 : i32
    return %arg0, %c0_i32 : i32, i32
  }
}

module attributes {stable_mosaic.version = 11 : i64} {
  func.func @_mm_bias_act_kernel(%arg0: i32, %arg1: memref<8x1536xbf16, #tpu.memory_space<vmem>>, %arg2: memref<1536x128xbf16, #tpu.memory_space<vmem>>, %arg3: memref<1x128xf32, #tpu.memory_space<vmem>>, %arg4: memref<8x128xbf16, #tpu.memory_space<vmem>>) attributes {dimension_semantics = [#tpu.dimension_semantics<parallel>], iteration_bounds = array<i64: 1>, scalar_prefetch = 0 : i64, scratch_operands = 0 : i64, tpu.core_type = #tpu.core_type<tc>, window_params = [{transform_indices = @transform_0, window_bounds = array<i64: 8, 1536>}, {pipeline_mode = #tpu.pipeline_mode<synchronous>, transform_indices = @transform_1, window_bounds = array<i64: 1536, 128>}, {pipeline_mode = #tpu.pipeline_mode<synchronous>, transform_indices = @transform_2, window_bounds = array<i64: 1, 128>}, {transform_indices = @transform_3, window_bounds = array<i64: 8, 128>}]} {
    %c0 = arith.constant 0 : index
    %c0_0 = arith.constant 0 : index
    %0 = vector.load %arg1[%c0, %c0_0] : memref<8x1536xbf16, #tpu.memory_space<vmem>>, vector<8x1536xbf16>
    %c0_1 = arith.constant 0 : index
    %c0_2 = arith.constant 0 : index
    %1 = vector.load %arg2[%c0_1, %c0_2] : memref<1536x128xbf16, #tpu.memory_space<vmem>>, vector<1536x128xbf16>
    %cst = arith.constant dense<0.000000e+00> : vector<8x128xf32>
    %2 = tpu.matmul %0, %1, %cst {dimension_numbers = #tpu.dot_dimension_numbers<[1], [0], [0], [1], [0, 0, 1, 1], [], []>} : vector<8x1536xbf16>, vector<1536x128xbf16>, vector<8x128xf32> -> vector<8x128xf32>
    %c0_3 = arith.constant 0 : index
    %c0_4 = arith.constant 0 : index
    %3 = vector.load %arg3[%c0_3, %c0_4] : memref<1x128xf32, #tpu.memory_space<vmem>>, vector<1x128xf32>
    %4 = vector.broadcast %3 : vector<1x128xf32> to vector<8x128xf32>
    %5 = arith.addf %2, %4 : vector<8x128xf32>
    %cst_5 = arith.constant 0.000000e+00 : f32
    %6 = vector.broadcast %cst_5 : f32 to vector<8x128xf32>
    %7 = arith.maximumf %5, %6 : vector<8x128xf32>
    %8 = arith.truncf %7 : vector<8x128xf32> to vector<8x128xbf16>
    %c0_6 = arith.constant 0 : index
    %c0_7 = arith.constant 0 : index
    %9 = vector.load %arg4[%c0_6, %c0_7] : memref<8x128xbf16, #tpu.memory_space<vmem>>, vector<8x128xbf16>
    tpu.vector_store %arg4[%c0_6, %c0_7], %8 {strides = array<i32>} : memref<8x128xbf16, #tpu.memory_space<vmem>>, vector<8x128xbf16>,
    return
  }
  func.func @transform_0(%arg0: i32) -> (i32, i32) {
    %c0_i32 = arith.constant 0 : i32
    %c0_i32_0 = arith.constant 0 : i32
    return %arg0, %c0_i32 : i32, i32
  }
  func.func @transform_1(%arg0: i32) -> (i32, i32) {
    %c0_i32 = arith.constant 0 : i32
    %c0_i32_0 = arith.constant 0 : i32
    %c0_i32_1 = arith.constant 0 : i32
    return %c0_i32, %c0_i32_0 : i32, i32
  }
  func.func @transform_2(%arg0: i32) -> (i32, i32) {
    %c0_i32 = arith.constant 0 : i32
    %c0_i32_0 = arith.constant 0 : i32
    %c0_i32_1 = arith.constant 0 : i32
    return %c0_i32, %c0_i32_0 : i32, i32
  }
  func.func @transform_3(%arg0: i32) -> (i32, i32) {
    %c0_i32 = arith.constant 0 : i32
    %c0_i32_0 = arith.constant 0 : i32
    return %arg0, %c0_i32 : i32, i32
  }
}

module attributes {stable_mosaic.version = 11 : i64} {
  func.func @_mm_bias_act_kernel(%arg0: i32, %arg1: memref<2x6144xbf16, #tpu.memory_space<vmem>>, %arg2: memref<6144x128xbf16, #tpu.memory_space<vmem>>, %arg3: memref<1x128xf32, #tpu.memory_space<vmem>>, %arg4: memref<2x128xbf16, #tpu.memory_space<vmem>>) attributes {dimension_semantics = [#tpu.dimension_semantics<parallel>], iteration_bounds = array<i64: 1>, scalar_prefetch = 0 : i64, scratch_operands = 0 : i64, tpu.core_type = #tpu.core_type<tc>, window_params = [{transform_indices = @transform_0, window_bounds = array<i64: 2, 6144>}, {pipeline_mode = #tpu.pipeline_mode<synchronous>, transform_indices = @transform_1, window_bounds = array<i64: 6144, 128>}, {pipeline_mode = #tpu.pipeline_mode<synchronous>, transform_indices = @transform_2, window_bounds = array<i64: 1, 128>}, {transform_indices = @transform_3, window_bounds = array<i64: 2, 128>}]} {
    %c0 = arith.constant 0 : index
    %c0_0 = arith.constant 0 : index
    %0 = vector.load %arg1[%c0, %c0_0] : memref<2x6144xbf16, #tpu.memory_space<vmem>>, vector<2x6144xbf16>
    %c0_1 = arith.constant 0 : index
    %c0_2 = arith.constant 0 : index
    %1 = vector.load %arg2[%c0_1, %c0_2] : memref<6144x128xbf16, #tpu.memory_space<vmem>>, vector<6144x128xbf16>
    %cst = arith.constant dense<0.000000e+00> : vector<2x128xf32>
    %2 = tpu.matmul %0, %1, %cst {dimension_numbers = #tpu.dot_dimension_numbers<[1], [0], [0], [1], [0, 0, 1, 1], [], []>} : vector<2x6144xbf16>, vector<6144x128xbf16>, vector<2x128xf32> -> vector<2x128xf32>
    %c0_3 = arith.constant 0 : index
    %c0_4 = arith.constant 0 : index
    %3 = vector.load %arg3[%c0_3, %c0_4] : memref<1x128xf32, #tpu.memory_space<vmem>>, vector<1x128xf32>
    %4 = vector.broadcast %3 : vector<1x128xf32> to vector<2x128xf32>
    %5 = arith.addf %2, %4 : vector<2x128xf32>
    %cst_5 = arith.constant 0.000000e+00 : f32
    %6 = vector.broadcast %cst_5 : f32 to vector<2x128xf32>
    %7 = arith.maximumf %5, %6 : vector<2x128xf32>
    %8 = arith.truncf %7 : vector<2x128xf32> to vector<2x128xbf16>
    %c0_6 = arith.constant 0 : index
    %c0_7 = arith.constant 0 : index
    %9 = vector.load %arg4[%c0_6, %c0_7] : memref<2x128xbf16, #tpu.memory_space<vmem>>, vector<2x128xbf16>
    tpu.vector_store %arg4[%c0_6, %c0_7], %8 {strides = array<i32>} : memref<2x128xbf16, #tpu.memory_space<vmem>>, vector<2x128xbf16>,
    return
  }
  func.func @transform_0(%arg0: i32) -> (i32, i32) {
    %c0_i32 = arith.constant 0 : i32
    %c0_i32_0 = arith.constant 0 : i32
    return %arg0, %c0_i32 : i32, i32
  }
  func.func @transform_1(%arg0: i32) -> (i32, i32) {
    %c0_i32 = arith.constant 0 : i32
    %c0_i32_0 = arith.constant 0 : i32
    %c0_i32_1 = arith.constant 0 : i32
    return %c0_i32, %c0_i32_0 : i32, i32
  }
  func.func @transform_2(%arg0: i32) -> (i32, i32) {
    %c0_i32 = arith.constant 0 : i32
    %c0_i32_0 = arith.constant 0 : i32
    %c0_i32_1 = arith.constant 0 : i32
    return %c0_i32, %c0_i32_0 : i32, i32
  }
  func.func @transform_3(%arg0: i32) -> (i32, i32) {
    %c0_i32 = arith.constant 0 : i32
    %c0_i32_0 = arith.constant 0 : i32
    return %arg0, %c0_i32 : i32, i32
  }
}

module attributes {stable_mosaic.version = 11 : i64} {
  func.func @_dec_fuse_pred_kernel(%arg0: i32, %arg1: memref<128x128xbf16, #tpu.memory_space<vmem>>, %arg2: memref<128x128xbf16, #tpu.memory_space<vmem>>, %arg3: memref<128x128xbf16, #tpu.memory_space<vmem>>, %arg4: memref<128x128xbf16, #tpu.memory_space<vmem>>, %arg5: memref<128x128xbf16, #tpu.memory_space<vmem>>, %arg6: memref<128x128xbf16, #tpu.memory_space<vmem>>, %arg7: memref<128x128xbf16, #tpu.memory_space<vmem>>, %arg8: memref<128x128xbf16, #tpu.memory_space<vmem>>, %arg9: memref<1x128xf32, #tpu.memory_space<vmem>>, %arg10: memref<128x128xbf16, #tpu.memory_space<vmem>>, %arg11: memref<1x128xf32, #tpu.memory_space<vmem>>, %arg12: memref<128x128xbf16, #tpu.memory_space<vmem>>) attributes {dimension_semantics = [#tpu.dimension_semantics<parallel>], iteration_bounds = array<i64: 1>, scalar_prefetch = 0 : i64, scratch_operands = 0 : i64, tpu.core_type = #tpu.core_type<tc>, window_params = [{transform_indices = @transform_0, window_bounds = array<i64: 128, 128>}, {transform_indices = @transform_1, window_bounds = array<i64: 128, 128>}, {transform_indices = @transform_2, window_bounds = array<i64: 128, 128>}, {transform_indices = @transform_3, window_bounds = array<i64: 128, 128>}, {pipeline_mode = #tpu.pipeline_mode<synchronous>, transform_indices = @transform_4, window_bounds = array<i64: 128, 128>}, {pipeline_mode = #tpu.pipeline_mode<synchronous>, transform_indices = @transform_5, window_bounds = array<i64: 128, 128>}, {pipeline_mode = #tpu.pipeline_mode<synchronous>, transform_indices = @transform_6, window_bounds = array<i64: 128, 128>}, {pipeline_mode = #tpu.pipeline_mode<synchronous>, transform_indices = @transform_7, window_bounds = array<i64: 128, 128>}, {pipeline_mode = #tpu.pipeline_mode<synchronous>, transform_indices = @transform_8, window_bounds = array<i64: 1, 128>}, {pipeline_mode = #tpu.pipeline_mode<synchronous>, transform_indices = @transform_9, window_bounds = array<i64: 128, 128>}, {pipeline_mode = #tpu.pipeline_mode<synchronous>, transform_indices = @transform_10, window_bounds = array<i64: 1, 128>}, {transform_indices = @transform_11, window_bounds = array<i64: 128, 128>}]} {
    %c0 = arith.constant 0 : index
    %c0_0 = arith.constant 0 : index
    %0 = vector.load %arg1[%c0, %c0_0] : memref<128x128xbf16, #tpu.memory_space<vmem>>, vector<128x128xbf16>
    %c0_1 = arith.constant 0 : index
    %c0_2 = arith.constant 0 : index
    %1 = vector.load %arg5[%c0_1, %c0_2] : memref<128x128xbf16, #tpu.memory_space<vmem>>, vector<128x128xbf16>
    %cst = arith.constant dense<0.000000e+00> : vector<128x128xf32>
    %2 = tpu.matmul %0, %1, %cst {dimension_numbers = #tpu.dot_dimension_numbers<[1], [0], [0], [1], [0, 0, 1, 1], [], []>} : vector<128x128xbf16>, vector<128x128xbf16>, vector<128x128xf32> -> vector<128x128xf32>
    %c0_3 = arith.constant 0 : index
    %c0_4 = arith.constant 0 : index
    %3 = vector.load %arg2[%c0_3, %c0_4] : memref<128x128xbf16, #tpu.memory_space<vmem>>, vector<128x128xbf16>
    %c0_5 = arith.constant 0 : index
    %c0_6 = arith.constant 0 : index
    %4 = vector.load %arg6[%c0_5, %c0_6] : memref<128x128xbf16, #tpu.memory_space<vmem>>, vector<128x128xbf16>
    %cst_7 = arith.constant dense<0.000000e+00> : vector<128x128xf32>
    %5 = tpu.matmul %3, %4, %cst_7 {dimension_numbers = #tpu.dot_dimension_numbers<[1], [0], [0], [1], [0, 0, 1, 1], [], []>} : vector<128x128xbf16>, vector<128x128xbf16>, vector<128x128xf32> -> vector<128x128xf32>
    %6 = arith.addf %2, %5 : vector<128x128xf32>
    %c0_8 = arith.constant 0 : index
    %c0_9 = arith.constant 0 : index
    %7 = vector.load %arg3[%c0_8, %c0_9] : memref<128x128xbf16, #tpu.memory_space<vmem>>, vector<128x128xbf16>
    %c0_10 = arith.constant 0 : index
    %c0_11 = arith.constant 0 : index
    %8 = vector.load %arg7[%c0_10, %c0_11] : memref<128x128xbf16, #tpu.memory_space<vmem>>, vector<128x128xbf16>
    %cst_12 = arith.constant dense<0.000000e+00> : vector<128x128xf32>
    %9 = tpu.matmul %7, %8, %cst_12 {dimension_numbers = #tpu.dot_dimension_numbers<[1], [0], [0], [1], [0, 0, 1, 1], [], []>} : vector<128x128xbf16>, vector<128x128xbf16>, vector<128x128xf32> -> vector<128x128xf32>
    %10 = arith.addf %6, %9 : vector<128x128xf32>
    %c0_13 = arith.constant 0 : index
    %c0_14 = arith.constant 0 : index
    %11 = vector.load %arg4[%c0_13, %c0_14] : memref<128x128xbf16, #tpu.memory_space<vmem>>, vector<128x128xbf16>
    %c0_15 = arith.constant 0 : index
    %c0_16 = arith.constant 0 : index
    %12 = vector.load %arg8[%c0_15, %c0_16] : memref<128x128xbf16, #tpu.memory_space<vmem>>, vector<128x128xbf16>
    %cst_17 = arith.constant dense<0.000000e+00> : vector<128x128xf32>
    %13 = tpu.matmul %11, %12, %cst_17 {dimension_numbers = #tpu.dot_dimension_numbers<[1], [0], [0], [1], [0, 0, 1, 1], [], []>} : vector<128x128xbf16>, vector<128x128xbf16>, vector<128x128xf32> -> vector<128x128xf32>
    %14 = arith.addf %10, %13 : vector<128x128xf32>
    %c0_18 = arith.constant 0 : index
    %c0_19 = arith.constant 0 : index
    %15 = vector.load %arg9[%c0_18, %c0_19] : memref<1x128xf32, #tpu.memory_space<vmem>>, vector<1x128xf32>
    %16 = vector.broadcast %15 : vector<1x128xf32> to vector<128x128xf32>
    %17 = arith.addf %14, %16 : vector<128x128xf32>
    %cst_20 = arith.constant 0.000000e+00 : f32
    %18 = vector.broadcast %cst_20 : f32 to vector<128x128xf32>
    %19 = arith.maximumf %17, %18 : vector<128x128xf32>
    %20 = arith.truncf %19 : vector<128x128xf32> to vector<128x128xbf16>
    %c0_21 = arith.constant 0 : index
    %c0_22 = arith.constant 0 : index
    %21 = vector.load %arg10[%c0_21, %c0_22] : memref<128x128xbf16, #tpu.memory_space<vmem>>, vector<128x128xbf16>
    %cst_23 = arith.constant dense<0.000000e+00> : vector<128x128xf32>
    %22 = tpu.matmul %20, %21, %cst_23 {dimension_numbers = #tpu.dot_dimension_numbers<[1], [0], [0], [1], [0, 0, 1, 1], [], []>} : vector<128x128xbf16>, vector<128x128xbf16>, vector<128x128xf32> -> vector<128x128xf32>
    %c0_24 = arith.constant 0 : index
    %c0_25 = arith.constant 0 : index
    %23 = vector.load %arg11[%c0_24, %c0_25] : memref<1x128xf32, #tpu.memory_space<vmem>>, vector<1x128xf32>
    %24 = vector.broadcast %23 : vector<1x128xf32> to vector<128x128xf32>
    %25 = arith.addf %22, %24 : vector<128x128xf32>
    %26 = arith.truncf %25 : vector<128x128xf32> to vector<128x128xbf16>
    %c0_26 = arith.constant 0 : index
    %c0_27 = arith.constant 0 : index
    %27 = vector.load %arg12[%c0_26, %c0_27] : memref<128x128xbf16, #tpu.memory_space<vmem>>, vector<128x128xbf16>
    tpu.vector_store %arg12[%c0_26, %c0_27], %26 {strides = array<i32>} : memref<128x128xbf16, #tpu.memory_space<vmem>>, vector<128x128xbf16>,
    return
  }
  func.func @transform_0(%arg0: i32) -> (i32, i32) {
    %c0_i32 = arith.constant 0 : i32
    %c0_i32_0 = arith.constant 0 : i32
    return %arg0, %c0_i32 : i32, i32
  }
  func.func @transform_1(%arg0: i32) -> (i32, i32) {
    %c0_i32 = arith.constant 0 : i32
    %c0_i32_0 = arith.constant 0 : i32
    return %arg0, %c0_i32 : i32, i32
  }
  func.func @transform_2(%arg0: i32) -> (i32, i32) {
    %c0_i32 = arith.constant 0 : i32
    %c0_i32_0 = arith.constant 0 : i32
    return %arg0, %c0_i32 : i32, i32
  }
  func.func @transform_3(%arg0: i32) -> (i32, i32) {
    %c0_i32 = arith.constant 0 : i32
    %c0_i32_0 = arith.constant 0 : i32
    return %arg0, %c0_i32 : i32, i32
  }
  func.func @transform_4(%arg0: i32) -> (i32, i32) {
    %c0_i32 = arith.constant 0 : i32
    %c0_i32_0 = arith.constant 0 : i32
    %c0_i32_1 = arith.constant 0 : i32
    return %c0_i32, %c0_i32_0 : i32, i32
  }
  func.func @transform_5(%arg0: i32) -> (i32, i32) {
    %c0_i32 = arith.constant 0 : i32
    %c0_i32_0 = arith.constant 0 : i32
    %c0_i32_1 = arith.constant 0 : i32
    return %c0_i32, %c0_i32_0 : i32, i32
  }
  func.func @transform_6(%arg0: i32) -> (i32, i32) {
    %c0_i32 = arith.constant 0 : i32
    %c0_i32_0 = arith.constant 0 : i32
    %c0_i32_1 = arith.constant 0 : i32
    return %c0_i32, %c0_i32_0 : i32, i32
  }
  func.func @transform_7(%arg0: i32) -> (i32, i32) {
    %c0_i32 = arith.constant 0 : i32
    %c0_i32_0 = arith.constant 0 : i32
    %c0_i32_1 = arith.constant 0 : i32
    return %c0_i32, %c0_i32_0 : i32, i32
  }
  func.func @transform_8(%arg0: i32) -> (i32, i32) {
    %c0_i32 = arith.constant 0 : i32
    %c0_i32_0 = arith.constant 0 : i32
    %c0_i32_1 = arith.constant 0 : i32
    return %c0_i32, %c0_i32_0 : i32, i32
  }
  func.func @transform_9(%arg0: i32) -> (i32, i32) {
    %c0_i32 = arith.constant 0 : i32
    %c0_i32_0 = arith.constant 0 : i32
    %c0_i32_1 = arith.constant 0 : i32
    return %c0_i32, %c0_i32_0 : i32, i32
  }
  func.func @transform_10(%arg0: i32) -> (i32, i32) {
    %c0_i32 = arith.constant 0 : i32
    %c0_i32_0 = arith.constant 0 : i32
    %c0_i32_1 = arith.constant 0 : i32
    return %c0_i32, %c0_i32_0 : i32, i32
  }
  func.func @transform_11(%arg0: i32) -> (i32, i32) {
    %c0_i32 = arith.constant 0 : i32
    %c0_i32_0 = arith.constant 0 : i32
    return %arg0, %c0_i32 : i32, i32
  }
}

module attributes {stable_mosaic.version = 11 : i64} {
  func.func @_mm_bias_act_kernel(%arg0: i32, %arg1: memref<32x128xbf16, #tpu.memory_space<vmem>>, %arg2: memref<128x128xbf16, #tpu.memory_space<vmem>>, %arg3: memref<1x128xf32, #tpu.memory_space<vmem>>, %arg4: memref<32x128xbf16, #tpu.memory_space<vmem>>) attributes {dimension_semantics = [#tpu.dimension_semantics<parallel>], iteration_bounds = array<i64: 1>, scalar_prefetch = 0 : i64, scratch_operands = 0 : i64, tpu.core_type = #tpu.core_type<tc>, window_params = [{transform_indices = @transform_0, window_bounds = array<i64: 32, 128>}, {pipeline_mode = #tpu.pipeline_mode<synchronous>, transform_indices = @transform_1, window_bounds = array<i64: 128, 128>}, {pipeline_mode = #tpu.pipeline_mode<synchronous>, transform_indices = @transform_2, window_bounds = array<i64: 1, 128>}, {transform_indices = @transform_3, window_bounds = array<i64: 32, 128>}]} {
    %c0 = arith.constant 0 : index
    %c0_0 = arith.constant 0 : index
    %0 = vector.load %arg1[%c0, %c0_0] : memref<32x128xbf16, #tpu.memory_space<vmem>>, vector<32x128xbf16>
    %c0_1 = arith.constant 0 : index
    %c0_2 = arith.constant 0 : index
    %1 = vector.load %arg2[%c0_1, %c0_2] : memref<128x128xbf16, #tpu.memory_space<vmem>>, vector<128x128xbf16>
    %cst = arith.constant dense<0.000000e+00> : vector<32x128xf32>
    %2 = tpu.matmul %0, %1, %cst {dimension_numbers = #tpu.dot_dimension_numbers<[1], [0], [0], [1], [0, 0, 1, 1], [], []>} : vector<32x128xbf16>, vector<128x128xbf16>, vector<32x128xf32> -> vector<32x128xf32>
    %c0_3 = arith.constant 0 : index
    %c0_4 = arith.constant 0 : index
    %3 = vector.load %arg3[%c0_3, %c0_4] : memref<1x128xf32, #tpu.memory_space<vmem>>, vector<1x128xf32>
    %4 = vector.broadcast %3 : vector<1x128xf32> to vector<32x128xf32>
    %5 = arith.addf %2, %4 : vector<32x128xf32>
    %6 = arith.truncf %5 : vector<32x128xf32> to vector<32x128xbf16>
    %c0_5 = arith.constant 0 : index
    %c0_6 = arith.constant 0 : index
    %7 = vector.load %arg4[%c0_5, %c0_6] : memref<32x128xbf16, #tpu.memory_space<vmem>>, vector<32x128xbf16>
    tpu.vector_store %arg4[%c0_5, %c0_6], %6 {strides = array<i32>} : memref<32x128xbf16, #tpu.memory_space<vmem>>, vector<32x128xbf16>,
    return
  }
  func.func @transform_0(%arg0: i32) -> (i32, i32) {
    %c0_i32 = arith.constant 0 : i32
    %c0_i32_0 = arith.constant 0 : i32
    return %arg0, %c0_i32 : i32, i32
  }
  func.func @transform_1(%arg0: i32) -> (i32, i32) {
    %c0_i32 = arith.constant 0 : i32
    %c0_i32_0 = arith.constant 0 : i32
    %c0_i32_1 = arith.constant 0 : i32
    return %c0_i32, %c0_i32_0 : i32, i32
  }
  func.func @transform_2(%arg0: i32) -> (i32, i32) {
    %c0_i32 = arith.constant 0 : i32
    %c0_i32_0 = arith.constant 0 : i32
    %c0_i32_1 = arith.constant 0 : i32
    return %c0_i32, %c0_i32_0 : i32, i32
  }
  func.func @transform_3(%arg0: i32) -> (i32, i32) {
    %c0_i32 = arith.constant 0 : i32
    %c0_i32_0 = arith.constant 0 : i32
    return %arg0, %c0_i32 : i32, i32
  }
}

module attributes {stable_mosaic.version = 11 : i64} {
  func.func @_mm_bias_act_kernel(%arg0: i32, %arg1: memref<8x128xbf16, #tpu.memory_space<vmem>>, %arg2: memref<128x128xbf16, #tpu.memory_space<vmem>>, %arg3: memref<1x128xf32, #tpu.memory_space<vmem>>, %arg4: memref<8x128xbf16, #tpu.memory_space<vmem>>) attributes {dimension_semantics = [#tpu.dimension_semantics<parallel>], iteration_bounds = array<i64: 1>, scalar_prefetch = 0 : i64, scratch_operands = 0 : i64, tpu.core_type = #tpu.core_type<tc>, window_params = [{transform_indices = @transform_0, window_bounds = array<i64: 8, 128>}, {pipeline_mode = #tpu.pipeline_mode<synchronous>, transform_indices = @transform_1, window_bounds = array<i64: 128, 128>}, {pipeline_mode = #tpu.pipeline_mode<synchronous>, transform_indices = @transform_2, window_bounds = array<i64: 1, 128>}, {transform_indices = @transform_3, window_bounds = array<i64: 8, 128>}]} {
    %c0 = arith.constant 0 : index
    %c0_0 = arith.constant 0 : index
    %0 = vector.load %arg1[%c0, %c0_0] : memref<8x128xbf16, #tpu.memory_space<vmem>>, vector<8x128xbf16>
    %c0_1 = arith.constant 0 : index
    %c0_2 = arith.constant 0 : index
    %1 = vector.load %arg2[%c0_1, %c0_2] : memref<128x128xbf16, #tpu.memory_space<vmem>>, vector<128x128xbf16>
    %cst = arith.constant dense<0.000000e+00> : vector<8x128xf32>
    %2 = tpu.matmul %0, %1, %cst {dimension_numbers = #tpu.dot_dimension_numbers<[1], [0], [0], [1], [0, 0, 1, 1], [], []>} : vector<8x128xbf16>, vector<128x128xbf16>, vector<8x128xf32> -> vector<8x128xf32>
    %c0_3 = arith.constant 0 : index
    %c0_4 = arith.constant 0 : index
    %3 = vector.load %arg3[%c0_3, %c0_4] : memref<1x128xf32, #tpu.memory_space<vmem>>, vector<1x128xf32>
    %4 = vector.broadcast %3 : vector<1x128xf32> to vector<8x128xf32>
    %5 = arith.addf %2, %4 : vector<8x128xf32>
    %6 = arith.truncf %5 : vector<8x128xf32> to vector<8x128xbf16>
    %c0_5 = arith.constant 0 : index
    %c0_6 = arith.constant 0 : index
    %7 = vector.load %arg4[%c0_5, %c0_6] : memref<8x128xbf16, #tpu.memory_space<vmem>>, vector<8x128xbf16>
    tpu.vector_store %arg4[%c0_5, %c0_6], %6 {strides = array<i32>} : memref<8x128xbf16, #tpu.memory_space<vmem>>, vector<8x128xbf16>,
    return
  }
  func.func @transform_0(%arg0: i32) -> (i32, i32) {
    %c0_i32 = arith.constant 0 : i32
    %c0_i32_0 = arith.constant 0 : i32
    return %arg0, %c0_i32 : i32, i32
  }
  func.func @transform_1(%arg0: i32) -> (i32, i32) {
    %c0_i32 = arith.constant 0 : i32
    %c0_i32_0 = arith.constant 0 : i32
    %c0_i32_1 = arith.constant 0 : i32
    return %c0_i32, %c0_i32_0 : i32, i32
  }
  func.func @transform_2(%arg0: i32) -> (i32, i32) {
    %c0_i32 = arith.constant 0 : i32
    %c0_i32_0 = arith.constant 0 : i32
    %c0_i32_1 = arith.constant 0 : i32
    return %c0_i32, %c0_i32_0 : i32, i32
  }
  func.func @transform_3(%arg0: i32) -> (i32, i32) {
    %c0_i32 = arith.constant 0 : i32
    %c0_i32_0 = arith.constant 0 : i32
    return %arg0, %c0_i32 : i32, i32
  }
}

module attributes {stable_mosaic.version = 11 : i64} {
  func.func @_mm_bias_act_kernel(%arg0: i32, %arg1: memref<2x128xbf16, #tpu.memory_space<vmem>>, %arg2: memref<128x128xbf16, #tpu.memory_space<vmem>>, %arg3: memref<1x128xf32, #tpu.memory_space<vmem>>, %arg4: memref<2x128xbf16, #tpu.memory_space<vmem>>) attributes {dimension_semantics = [#tpu.dimension_semantics<parallel>], iteration_bounds = array<i64: 1>, scalar_prefetch = 0 : i64, scratch_operands = 0 : i64, tpu.core_type = #tpu.core_type<tc>, window_params = [{transform_indices = @transform_0, window_bounds = array<i64: 2, 128>}, {pipeline_mode = #tpu.pipeline_mode<synchronous>, transform_indices = @transform_1, window_bounds = array<i64: 128, 128>}, {pipeline_mode = #tpu.pipeline_mode<synchronous>, transform_indices = @transform_2, window_bounds = array<i64: 1, 128>}, {transform_indices = @transform_3, window_bounds = array<i64: 2, 128>}]} {
    %c0 = arith.constant 0 : index
    %c0_0 = arith.constant 0 : index
    %0 = vector.load %arg1[%c0, %c0_0] : memref<2x128xbf16, #tpu.memory_space<vmem>>, vector<2x128xbf16>
    %c0_1 = arith.constant 0 : index
    %c0_2 = arith.constant 0 : index
    %1 = vector.load %arg2[%c0_1, %c0_2] : memref<128x128xbf16, #tpu.memory_space<vmem>>, vector<128x128xbf16>
    %cst = arith.constant dense<0.000000e+00> : vector<2x128xf32>
    %2 = tpu.matmul %0, %1, %cst {dimension_numbers = #tpu.dot_dimension_numbers<[1], [0], [0], [1], [0, 0, 1, 1], [], []>} : vector<2x128xbf16>, vector<128x128xbf16>, vector<2x128xf32> -> vector<2x128xf32>
    %c0_3 = arith.constant 0 : index
    %c0_4 = arith.constant 0 : index
    %3 = vector.load %arg3[%c0_3, %c0_4] : memref<1x128xf32, #tpu.memory_space<vmem>>, vector<1x128xf32>
    %4 = vector.broadcast %3 : vector<1x128xf32> to vector<2x128xf32>
    %5 = arith.addf %2, %4 : vector<2x128xf32>
    %6 = arith.truncf %5 : vector<2x128xf32> to vector<2x128xbf16>
    %c0_5 = arith.constant 0 : index
    %c0_6 = arith.constant 0 : index
    %7 = vector.load %arg4[%c0_5, %c0_6] : memref<2x128xbf16, #tpu.memory_space<vmem>>, vector<2x128xbf16>
    tpu.vector_store %arg4[%c0_5, %c0_6], %6 {strides = array<i32>} : memref<2x128xbf16, #tpu.memory_space<vmem>>, vector<2x128xbf16>,
    return
  }
  func.func @transform_0(%arg0: i32) -> (i32, i32) {
    %c0_i32 = arith.constant 0 : i32
    %c0_i32_0 = arith.constant 0 : i32
    return %arg0, %c0_i32 : i32, i32
  }
  func.func @transform_1(%arg0: i32) -> (i32, i32) {
    %c0_i32 = arith.constant 0 : i32
    %c0_i32_0 = arith.constant 0 : i32
    %c0_i32_1 = arith.constant 0 : i32
    return %c0_i32, %c0_i32_0 : i32, i32
  }
  func.func @transform_2(%arg0: i32) -> (i32, i32) {
    %c0_i32 = arith.constant 0 : i32
    %c0_i32_0 = arith.constant 0 : i32
    %c0_i32_1 = arith.constant 0 : i32
    return %c0_i32, %c0_i32_0 : i32, i32
  }
  func.func @transform_3(%arg0: i32) -> (i32, i32) {
    %c0_i32 = arith.constant 0 : i32
    %c0_i32_0 = arith.constant 0 : i32
    return %arg0, %c0_i32 : i32, i32
  }
}

module attributes {stable_mosaic.version = 11 : i64} {
  func.func @_mm_bias_act_kernel(%arg0: i32, %arg1: memref<128x128xbf16, #tpu.memory_space<vmem>>, %arg2: memref<128x128xbf16, #tpu.memory_space<vmem>>, %arg3: memref<1x128xf32, #tpu.memory_space<vmem>>, %arg4: memref<128x128xbf16, #tpu.memory_space<vmem>>) attributes {dimension_semantics = [#tpu.dimension_semantics<parallel>], iteration_bounds = array<i64: 1>, scalar_prefetch = 0 : i64, scratch_operands = 0 : i64, tpu.core_type = #tpu.core_type<tc>, window_params = [{transform_indices = @transform_0, window_bounds = array<i64: 128, 128>}, {pipeline_mode = #tpu.pipeline_mode<synchronous>, transform_indices = @transform_1, window_bounds = array<i64: 128, 128>}, {pipeline_mode = #tpu.pipeline_mode<synchronous>, transform_indices = @transform_2, window_bounds = array<i64: 1, 128>}, {transform_indices = @transform_3, window_bounds = array<i64: 128, 128>}]} {
    %c0 = arith.constant 0 : index
    %c0_0 = arith.constant 0 : index
    %0 = vector.load %arg1[%c0, %c0_0] : memref<128x128xbf16, #tpu.memory_space<vmem>>, vector<128x128xbf16>
    %c0_1 = arith.constant 0 : index
    %c0_2 = arith.constant 0 : index
    %1 = vector.load %arg2[%c0_1, %c0_2] : memref<128x128xbf16, #tpu.memory_space<vmem>>, vector<128x128xbf16>
    %cst = arith.constant dense<0.000000e+00> : vector<128x128xf32>
    %2 = tpu.matmul %0, %1, %cst {dimension_numbers = #tpu.dot_dimension_numbers<[1], [0], [0], [1], [0, 0, 1, 1], [], []>} : vector<128x128xbf16>, vector<128x128xbf16>, vector<128x128xf32> -> vector<128x128xf32>
    %c0_3 = arith.constant 0 : index
    %c0_4 = arith.constant 0 : index
    %3 = vector.load %arg3[%c0_3, %c0_4] : memref<1x128xf32, #tpu.memory_space<vmem>>, vector<1x128xf32>
    %4 = vector.broadcast %3 : vector<1x128xf32> to vector<128x128xf32>
    %5 = arith.addf %2, %4 : vector<128x128xf32>
    %6 = arith.truncf %5 : vector<128x128xf32> to vector<128x128xbf16>
    %c0_5 = arith.constant 0 : index
    %c0_6 = arith.constant 0 : index
    %7 = vector.load %arg4[%c0_5, %c0_6] : memref<128x128xbf16, #tpu.memory_space<vmem>>, vector<128x128xbf16>
    tpu.vector_store %arg4[%c0_5, %c0_6], %6 {strides = array<i32>} : memref<128x128xbf16, #tpu.memory_space<vmem>>, vector<128x128xbf16>,
    return
  }
  func.func @transform_0(%arg0: i32) -> (i32, i32) {
    %c0_i32 = arith.constant 0 : i32
    %c0_i32_0 = arith.constant 0 : i32
    return %arg0, %c0_i32 : i32, i32
  }
  func.func @transform_1(%arg0: i32) -> (i32, i32) {
    %c0_i32 = arith.constant 0 : i32
    %c0_i32_0 = arith.constant 0 : i32
    %c0_i32_1 = arith.constant 0 : i32
    return %c0_i32, %c0_i32_0 : i32, i32
  }
  func.func @transform_2(%arg0: i32) -> (i32, i32) {
    %c0_i32 = arith.constant 0 : i32
    %c0_i32_0 = arith.constant 0 : i32
    %c0_i32_1 = arith.constant 0 : i32
    return %c0_i32, %c0_i32_0 : i32, i32
  }
  func.func @transform_3(%arg0: i32) -> (i32, i32) {
    %c0_i32 = arith.constant 0 : i32
    %c0_i32_0 = arith.constant 0 : i32
    return %arg0, %c0_i32 : i32, i32
  }
}

</mosaic_0001>

<bundles_post_ra>
// kernel: tpu_custom_call.1
= control target key start
LH: loop header
LB: loop body
LE: loop exit
PB: predicated region body
PF: predicated region fallthrough
CT: control target
= control target key end

     0   :  { %7 = vsyncpa [#allocation3], 0  ;;  %s753_s0 = inlined_call_operand.hbm [shape: bf16[16,128], index: 0, kind: input, shape index: {}]   ;;  %s754_s1 = inlined_call_operand.hbm [shape: bf16[128,128], index: 1, kind: input, shape index: {}]   ;;  %s755_s2 = inlined_call_operand.hbm [shape: f32[16,128], index: 2, kind: output, shape index: {}]  }
   0x1   :  { %9 = vsyncpa [#allocation3 + $0x1], 0 }
   0x2   :  { %10 = vsyncpa [#allocation6], 0 }
   0x3   :  { %11 = vsyncpa [#allocation4], 0 }
   0x4   :  { %13 = vsyncpa [#allocation4 + $0x1], 0  ;;  %s616_s9 = smov 0   ;;  %s618_s10 = smov 0  }
   0x5   :  { %s620_s11 = smov 0   ;;  %s622_s12 = smov 0  }
   0x6 LB: > { %s108_s15 = sshll.u32 %s754_s1, 4  ;;  %s640_s16 = sadd.s32 4294967295, %s596_s12   ;;  %s596_s12 = sphi %s622_s12, %s765_s12   ;;  %s592_s11 = sphi %s620_s11, %s764_s11   ;;  %s588_s10 = sphi %s618_s10, %s763_s10   ;;  %s584_s9 = sphi %s616_s9, %s762_s9   ;;  %s109_s15 = int_to_ptr.hbm [resolvable:$true] %s108_s15 }
   0x7   : > { %p354_p0 = scmp.ge.s32.totalorder %s596_s12, 1  ;;  %p40_p1 = scmp.eq.s32.totalorder %s640_s16, 0 }
   0x8   : > { %p97_p2 = scmp.lt.s32.totalorder %s596_s12, 3  ;;  %s598_s18 = smov [#allocation5]  }
   0x9   : > { %s110_s19 = sshll.u32 %s598_s18, 4  ;;  %s599_s20 = smov 64   ;;  %s111_s19 = int_to_ptr.vmem [resolvable:$true] %s110_s19 }
   0xa   : > { %p645_p3 = pnand %p354_p0, %p97_p2  ;;  %s600_s21 = smov 4  }
   0xb   : > { %s353_s22 = sadd.s32 4294967294, %s596_s12   ;;  %s656_s23 = sadd.s32 1, %s596_s12  }
   0xc   : > { %p415_p4 = pneg %p645_p3  ;;  %s26_s24 = sadd.s32 1, %s592_s11 }
   0xd   : > { %s23_s25 = ssub.s32 %s596_s12, %s656_s23  ;;  %p33_p7 = scmp.ne.s32.totalorder %s592_s11, %s588_s10 }
   0xe   : > { %p416_p6 = pnand %p415_p4, %p40_p1  ;;  %p24_p8 = scmp.eq.s32.totalorder %s23_s25, 0 }
   0xf   : > { %p34_p9 = scmp.eq.s32.totalorder %s596_s12, 0  ;;  %p39_p10 = scmp.ne.s32.totalorder %s588_s10, %s584_s9 }
  0x10   : > { %418 = dma.hbm_to_vmem [thread:$0]  (!%p416_p6), %s109_s15, 1024, %s111_s19, [#allocation6], %s599_s20, %s599_s20, %s600_s21  }
  0x11   : > { %p84_p11 = scmp.eq.s32.totalorder %s640_s16, 1  ;;  %p672_p12 = por %p40_p1, %p39_p10 }
  0x12   : > { %s668_s26 = scalar_select %p24_p8, %s592_s11, %s26_s24  }
  0x13   : > { %p676_p13 = por %p84_p11, %p33_p7  ;;  %p90_p0 = scmp.eq.s32.totalorder %s353_s22, 1 }
  0x14   : > { %p35_p2 = por %p34_p9, %p33_p7  ;;  %s124_s29 = sand.u32 1, %s592_s11  }
  0x15   : > { %p681_p4 = por %p90_p0, %p39_p10  ;;  %p428_p6 = scmp.lt.s32.totalorder %s596_s12, 2 }
  0x16   : > { %s357_s3 = sshll.u32 %s124_s29, 2  ;;  %s358_s4 = sshll.u32 %s596_s12, 2 }
  0x17   : > { %s132_s7 = scalar_lea.hbm %s753_s0, %s358_s4  ;;  %s128_s13 = scalar_lea.vmem [#allocation2], %s357_s3 }
  0x18   : > { %s134_s8 = sshll.u32 %s132_s7, 4  ;;  %s136_s14 = sshll.u32 %s128_s13, 4  ;;  %s135_s8 = int_to_ptr.hbm [resolvable:$true] %s134_s8  ;;  %s137_s14 = int_to_ptr.vmem [resolvable:$true] %s136_s14 }
  0x19   : > { %p690_p8 = pnand %p428_p6, %p35_p2  ;;  %s125_s18 = scalar_lea.sflag [#allocation3], %s124_s29 }
  0x1a   : > { %s496_s19 = sshra.s32 %s135_s8, 4  ;;  %s503_s24 = scalar_lea.hbm %s753_s0, 8  ;;  %s497_s19 = int_to_ptr.hbm [resolvable:$true] %s496_s19 }
  0x1b   : > { %s498_s20 = scalar_lea.hbm %s497_s19, 4  ;;  %p500_p9 = pneg %p690_p8 }
  0x1c   : > { %p499_p7 = scmp.ne.s32.totalorder %s497_s19, %s498_s20  ;;  %p504_p0 = scmp.lt.s32.totalorder %s497_s19, %s753_s0 }
  0x1d   : > { %p505_p2 = scmp.lt.s32.totalorder %s503_s24, %s498_s20 }
  0x1e   : > { %p501_p10 = pnand %p500_p9, %p499_p7 }
  0x1f   : > { %p506_p6 = por %p505_p2, %p504_p0 }
  0x20   : > { %p502_p11 = pneg %p501_p10 }
  0x22   : > { %p507_p5 = pnand %p506_p6, %p502_p11 }
  0x24   : > { %510 = shalt.err (!%p507_p5)
}
  0x25   : > { %422 = dma.hbm_to_vmem [thread:$0]  (!%p690_p8), %s135_s8, 64, %s137_s14, %s125_s18  }
  0x26   : > { %145 = sbr.rel (%p645_p3) target bundleno = 212 (0xd4), region = 28  ;;  %s707_s29 = sand.u32 (!%p645_p3), 1, %s588_s10  }
  0x27   : > { %s360_s4 = sshll.u32 (!%p645_p3), %s707_s29, 2  ;;  %s148_s5 = scalar_lea.sflag (!%p645_p3), [#allocation3], %s707_s29 }
  0x28   : > { %s151_s6 = scalar_lea.vmem (!%p645_p3), [#allocation2], %s360_s4 }
  0x2b   : > { %571 = dma.done.wait (%p672_p12), %s148_s5, 64  }
  0x2c   : > { %573 = vsyncadd (%p672_p12), %s148_s5, 4294967232 }
  0x2d   : > { %575 = dma.done.wait (%p40_p1), [#allocation6], 1024  }
  0x2e   : > { %577 = vsyncadd (%p40_p1), [#allocation6], 4294966272  ;;  %v406_v0 = vld [vmem:[#allocation5 + $0x38] sm:$0xff]  ;;  %v405_v1 = vld [vmem:[#allocation5 + $0x30] sm:$0xff]  ;;  %s396_s17 = sshll.u32 %s640_s16, 3  ;;  %s362_s27 = sshll.u32 %s707_s29, 3 }
  0x2f   : > { %243 = vmatpush.bf16.msra.mxu0 %v406_v0  ;;  %v404_v2 = vld [vmem:[#allocation5 + $0x28] sm:$0xff]  ;;  %v403_v3 = vld [vmem:[#allocation5 + $0x20] sm:$0xff]  ;;  %v402_v4 = vld [vmem:[#allocation5 + $0x18] sm:$0xff]  ;;  %s268_s13 = scalar_lea.hbm %s755_s2, %s396_s17  ;;  %s177_s14 = scalar_lea.vmem [#allocation7], %s362_s27 }
  0x30   : > { %v401_v5 = vld [vmem:[#allocation5 + $0x10] sm:$0xff]  ;;  %v400_v6 = vld [vmem:[#allocation5 + $0x8] sm:$0xff]  ;;  %v399_v7 = vld [vmem:[#allocation5] sm:$0xff]  ;;  %s270_s15 = sshll.u32 %s177_s14, 4  ;;  %s272_s18 = sshll.u32 %s268_s13, 4  ;;  %s271_s15 = int_to_ptr.vmem [resolvable:$true] %s270_s15  ;;  %s273_s18 = int_to_ptr.hbm [resolvable:$true] %s272_s18 }
  0x31   : > { %v178_v8 = vld [vmem:[%s151_s6] sm:$0xf]  ;;  %s258_s19 = scalar_lea.sflag [#allocation4], %s707_s29  ;;  %s540_s20 = sshra.s32 %s273_s18, 4  ;;  %s541_s20 = int_to_ptr.hbm [resolvable:$true] %s540_s20 }
  0x32   : > { %s542_s21 = scalar_lea.hbm %s541_s20, 8  ;;  %s546_s24 = scalar_lea.hbm %s755_s2, 16 }
  0x33   : > { %244 = vmatpush.bf16.msra.mxu0 %v405_v1  ;;  %p543_p1 = scmp.ne.s32.totalorder %s541_s20, %s542_s21  ;;  %p547_p12 = scmp.lt.s32.totalorder %s541_s20, %s755_s2 }
  0x34   : > { %p548_p8 = scmp.lt.s32.totalorder %s546_s24, %s542_s21 }
  0x35   : > { %p544_p3 = pnand %p543_p1, %p676_p13 }
  0x36   : > { %p549_p7 = por %p548_p8, %p547_p12 }
  0x37   : > { %245 = vmatpush.bf16.msra.mxu0 %v404_v2  ;;  %p545_p5 = pneg %p544_p3 }
  0x39   : > { %p550_p9 = pnand %p549_p7, %p545_p5 }
  0x3b   : > { %246 = vmatpush.bf16.msra.mxu0 %v403_v3 }
  0x3f   : > { %247 = vmatpush.bf16.msra.mxu0 %v402_v4 }
  0x43   : > { %248 = vmatpush.bf16.msra.mxu0 %v401_v5 }
  0x47   : > { %249 = vmatpush.bf16.msra.mxu0 %v400_v6 }
  0x4b   : > { %250 = vmatpush.bf16.msra.mxu0 %v399_v7 }
  0x4e   : > { %251 = vmatmul.bf16.vlgmr.msra.gmra.mxu0 %v178_v8 }
  0xcb   : > { %v252_v9 = vpop.f32.mrf.mxu0 }
  0xcc   : > { %256 = vst [vmem:[%s177_s14] sm:$0xff] %v252_v9 }
  0xcd   : > { %553 = shalt.err (!%p550_p9)
}
  0xce   : > { %413 = dma.vmem_to_hbm [thread:$0]  (%p676_p13), %s271_s15, 128, %s273_s18, %s258_s19  }
  0xd3   : > { %v254_v10 = vpop.f32.mrf.mxu0 }
  0xd4 PF: > { %s284_s29 = sand.u32 1, %s584_s9   ;;  %p761_p10 = scmp.ge.s32.totalorder %s596_s12, 2 }
  0xd5   : > { %s285_s4 = scalar_lea.sflag [#allocation4], %s284_s29 }
  0xd6   : > { %p424_p11 = pnand %p761_p10, %p681_p4 }
  0xd8   : > { %p425_p0 = pneg %p424_p11 }
  0xda   : > { %579 = dma.done.wait (%p425_p0), %s285_s4, 128  }
  0xdb   : > { %581 = vsyncadd (%p425_p0), %s285_s4, 4294967168  ;;  %p16_p2 = scmp.ge.s32.totalorder %s656_s23, 4   ;;  %s762_s9 = smov %s588_s10 }
  0xdc   : > { %s763_s10 = smov %s592_s11  ;;  %s764_s11 = smov %s668_s26 }
  0xdd   : > { %s765_s12 = smov %s656_s23  ;;  %18 = sbr.rel (!%p16_p2) target bundleno = 6 (0x6), region = 77 }
  0xe2   :  { %291 = vsyncpa [#allocation3], 1 }
  0xe3   :  { %293 = vsyncpa [#allocation3 + $0x1], 1 }
  0xe4   :  { %294 = vsyncpa [#allocation6], 1 }
  0xe5   :  { %295 = vsyncpa [#allocation4], 1 }
  0xe6   :  { %297 = vsyncpa [#allocation4 + $0x1], 1 }

// kernel: mrfs_forward.9
= control target key start
LH: loop header
LB: loop body
LE: loop exit
PB: predicated region body
PF: predicated region fallthrough
CT: control target
= control target key end

     0   :  { %vm110_vm0 = vcmask 392192   ;;  %s885_s2 = inlined_call_operand.vmem [shape: bf16[48,128], index: 2, kind: input, shape index: {}]   ;;  %s886_s3 = inlined_call_operand.vmem [shape: bf16[48,128], index: 3, kind: input, shape index: {}]   ;;  %s887_s4 = inlined_call_operand.vmem [shape: f32[1,128], index: 4, kind: input, shape index: {}]   ;;  %s888_s0 = inlined_call_operand.vmem [shape: bf16[128,48], index: 0, kind: input, shape index: {}]   ;;  %s889_s1 = inlined_call_operand.vmem [shape: bf16[128,48], index: 1, kind: input, shape index: {}]   ;;  %s890_s5 = inlined_call_operand.vmem [shape: f32[1,128], index: 5, kind: input, shape index: {}]   ;;  %s891_s7 = inlined_call_operand.vmem [shape: bf16[128,128], index: 7, kind: output, shape index: {1}]   ;;  %s892_s6 = inlined_call_operand.vmem [shape: bf16[128,128], index: 6, kind: output, shape index: {0}]  }
   0x1   :  { %v559_v0 = vld [vmem:[%s885_s2 + $0x10] sm:$0xff]  ;;  %v558_v2 = vld [vmem:[%s885_s2 + $0x8] sm:$0xff]  ;;  %v557_v4 = vld [vmem:[%s885_s2] sm:$0xff] }
   0x2   :  { %v570_v1 = vld [vmem:[%s886_s3 + $0x10] sm:$0xff]  ;;  %140 = vmatpush.bf16.msra.mxu0 %v559_v0  ;;  %665 = vmatpush.bf16.msra.mxu2 %v559_v0  ;;  %v569_v3 = vld [vmem:[%s886_s3 + $0x8] sm:$0xff]  ;;  %v568_v5 = vld [vmem:[%s886_s3] sm:$0xff] }
   0x3   :  { %297 = vmatpush.bf16.msra.mxu1 %v570_v1  ;;  %668 = vmatpush.bf16.msra.mxu3 %v570_v1  ;;  %v549_v6 = vld [vmem:[%s888_s0] sm:$0xff]  ;;  %v550_v10 = vld [vmem:[%s888_s0 + $0x8] sm:$0xff]  ;;  %v551_v14 = vld [vmem:[%s888_s0 + $0x10] sm:$0xff] }
   0x4   :  { %v553_v7 = vld [vmem:[%s888_s0 + $0x20] sm:$0xff]  ;;  %v554_v11 = vld [vmem:[%s888_s0 + $0x28] sm:$0xff]  ;;  %v555_v15 = vld [vmem:[%s888_s0 + $0x30] sm:$0xff] }
   0x5   :  { %v560_v8 = vld [vmem:[%s889_s1] sm:$0xff]  ;;  %v561_v12 = vld [vmem:[%s889_s1 + $0x8] sm:$0xff]  ;;  %v562_v16 = vld [vmem:[%s889_s1 + $0x10] sm:$0xff] }
   0x6   :  { %141 = vmatpush.bf16.msra.mxu0 %v558_v2  ;;  %666 = vmatpush.bf16.msra.mxu2 %v558_v2  ;;  %v564_v9 = vld [vmem:[%s889_s1 + $0x20] sm:$0xff]  ;;  %v565_v13 = vld [vmem:[%s889_s1 + $0x28] sm:$0xff]  ;;  %v566_v17 = vld [vmem:[%s889_s1 + $0x30] sm:$0xff] }
   0x7   :  { %298 = vmatpush.bf16.msra.mxu1 %v569_v3  ;;  %669 = vmatpush.bf16.msra.mxu3 %v569_v3  ;;  %v552_v18 = vld [vmem:[%s888_s0 + $0x18] sm:$0xff]  ;;  %v798_v24 = vld [vmem:[%s887_s4] ss:$0 sm:$0xff] }
   0x8   :  { %v556_v19 = vld [vmem:[%s888_s0 + $0x38] sm:$0xff]  ;;  %v803_v25 = vld [vmem:[%s890_s5] ss:$0 sm:$0xff] }
   0x9   :  { %v563_v20 = vld [vmem:[%s889_s1 + $0x18] sm:$0xff] }
   0xa   :  { %142 = vmatpush.bf16.msra.mxu0 %v557_v4  ;;  %667 = vmatpush.bf16.msra.mxu2 %v557_v4  ;;  %v567_v21 = vld [vmem:[%s889_s1 + $0x38] sm:$0xff] }
   0xb   :  { %299 = vmatpush.bf16.msra.mxu1 %v568_v5  ;;  %670 = vmatpush.bf16.msra.mxu3 %v568_v5 }
   0xd   :  { %489 = vmatmul.msk.bf16.vlgmr.msra.gmra.mxu0 %vm110_vm0, %v549_v6  ;;  %493 = vmatmul.msk.bf16.vlgmr.msra.gmra.mxu2 %vm110_vm0, %v553_v7 }
   0xe   :  { %541 = vmatmul.msk.bf16.vlgmr.msra.gmra.mxu1 %vm110_vm0, %v560_v8  ;;  %545 = vmatmul.msk.bf16.vlgmr.msra.gmra.mxu3 %vm110_vm0, %v564_v9 }
  0x1d   :  { %490 = vmatmul.msk.bf16.gmra.mxu0 %vm110_vm0, %v550_v10  ;;  %494 = vmatmul.msk.bf16.gmra.mxu2 %vm110_vm0, %v554_v11 }
  0x1e   :  { %542 = vmatmul.msk.bf16.gmra.mxu1 %vm110_vm0, %v561_v12  ;;  %546 = vmatmul.msk.bf16.gmra.mxu3 %vm110_vm0, %v565_v13 }
  0x2d   :  { %491 = vmatmul.msk.bf16.gmra.mxu0 %vm110_vm0, %v551_v14  ;;  %495 = vmatmul.msk.bf16.gmra.mxu2 %vm110_vm0, %v555_v15 }
  0x2e   :  { %543 = vmatmul.msk.bf16.gmra.mxu1 %vm110_vm0, %v562_v16  ;;  %547 = vmatmul.msk.bf16.gmra.mxu3 %vm110_vm0, %v566_v17 }
  0x3d   :  { %492 = vmatmul.msk.bf16.gmra.mxu0 %vm110_vm0, %v552_v18  ;;  %496 = vmatmul.msk.bf16.gmra.mxu2 %vm110_vm0, %v556_v19 }
  0x3e   :  { %544 = vmatmul.msk.bf16.gmra.mxu1 %vm110_vm0, %v563_v20  ;;  %548 = vmatmul.msk.bf16.gmra.mxu3 %vm110_vm0, %v567_v21 }
  0x8a   :  { %v144_v22 = vpop.f32.mrf.mxu0 }
  0x8b   :  { %v301_v23 = vpop.f32.mrf.mxu1  ;;  %v145_v26 = vadd.f32 %v798_v24, %v144_v22 }
  0x8c   :  { %v302_v27 = vadd.f32 %v803_v25, %v301_v23 }
  0x8e   :  { %v341_v33 = vadd.f32 %v302_v27, %v145_v26 }
  0x90   :  { %v164_v28 = vpop.f32.mrf.mxu2  ;;  %v357_v39 = vmax.f32 %v341_v33, 0.0 }
  0x91   :  { %v321_v29 = vpop.f32.mrf.mxu3  ;;  %v165_v36 = vadd.f32 %v798_v24, %v164_v28 }
  0x92   :  { %v146_v30 = vpop.f32.mrf.mxu0  ;;  %v322_v37 = vadd.f32 %v803_v25, %v321_v29 }
  0x93   :  { %v147_v31 = vadd.f32 %v798_v24, %v146_v30  ;;  %v303_v32 = vpop.f32.mrf.mxu1 }
  0x94   :  { %v304_v34 = vadd.f32 %v803_v25, %v303_v32  ;;  %v349_v44 = vadd.f32 %v322_v37, %v165_v36 }
  0x95   :  { %v614_v35 = vpack.c.bf16 %v147_v31, %v145_v26 }
  0x96   :  { %v342_v38 = vadd.f32 %v304_v34, %v147_v31  ;;  %v365_v51 = vmax.f32 %v349_v44, 0.0 }
  0x97   :  { %615 = vst [vmem:[%s891_s7] sm:$0xff] %v614_v35  }
  0x98   :  { %v358_v40 = vmax.f32 %v342_v38, 0.0  ;;  %v166_v41 = vpop.f32.mrf.mxu2 }
  0x99   :  { %v167_v42 = vadd.f32 %v798_v24, %v166_v41  ;;  %v323_v43 = vpop.f32.mrf.mxu3 }
  0x9a   :  { %v574_v45 = vpack.c.bf16 %v358_v40, %v357_v39  ;;  %v324_v46 = vadd.f32 %v803_v25, %v323_v43  ;;  %v149_v47 = vpop.f32.mrf.mxu0 }
  0x9b   :  { %v634_v48 = vpack.c.bf16 %v167_v42, %v165_v36  ;;  %v306_v49 = vpop.f32.mrf.mxu1  ;;  %v150_v54 = vadd.f32 %v798_v24, %v149_v47 }
  0x9c   :  { %575 = vst [vmem:[%s892_s6] sm:$0xff] %v574_v45   ;;  %v350_v50 = vadd.f32 %v324_v46, %v167_v42  ;;  %v307_v55 = vadd.f32 %v803_v25, %v306_v49 }
  0x9d   :  { %661 = vst [vmem:[%s891_s7 + $0x20] sm:$0xff] %v634_v48  }
  0x9e   :  { %v366_v52 = vmax.f32 %v350_v50, 0.0  ;;  %v343_v61 = vadd.f32 %v307_v55, %v150_v54 }
  0xa0   :  { %v594_v53 = vpack.c.bf16 %v366_v52, %v365_v51  ;;  %v169_v56 = vpop.f32.mrf.mxu2  ;;  %v359_v3 = vmax.f32 %v343_v61, 0.0 }
  0xa1   :  { %v326_v57 = vpop.f32.mrf.mxu3  ;;  %v170_v0 = vadd.f32 %v798_v24, %v169_v56 }
  0xa2   :  { %654 = vst [vmem:[%s892_s6 + $0x20] sm:$0xff] %v594_v53   ;;  %v151_v58 = vpop.f32.mrf.mxu0  ;;  %v327_v1 = vadd.f32 %v803_v25, %v326_v57 }
  0xa3   :  { %v152_v59 = vadd.f32 %v798_v24, %v151_v58  ;;  %v308_v60 = vpop.f32.mrf.mxu1 }
  0xa4   :  { %v309_v62 = vadd.f32 %v803_v25, %v308_v60  ;;  %v351_v8 = vadd.f32 %v327_v1, %v170_v0 }
  0xa5   :  { %v619_v63 = vpack.c.bf16 %v152_v59, %v150_v54 }
  0xa6   :  { %v344_v2 = vadd.f32 %v309_v62, %v152_v59  ;;  %v367_v15 = vmax.f32 %v351_v8, 0.0 }
  0xa7   :  { %658 = vst [vmem:[%s891_s7 + $0x8] sm:$0xff] %v619_v63  }
  0xa8   :  { %v360_v4 = vmax.f32 %v344_v2, 0.0  ;;  %v171_v5 = vpop.f32.mrf.mxu2 }
  0xa9   :  { %v172_v6 = vadd.f32 %v798_v24, %v171_v5  ;;  %v328_v7 = vpop.f32.mrf.mxu3 }
  0xaa   :  { %v579_v9 = vpack.c.bf16 %v360_v4, %v359_v3  ;;  %v329_v10 = vadd.f32 %v803_v25, %v328_v7  ;;  %v154_v11 = vpop.f32.mrf.mxu0 }
  0xab   :  { %v639_v12 = vpack.c.bf16 %v172_v6, %v170_v0  ;;  %v311_v13 = vpop.f32.mrf.mxu1  ;;  %v155_v18 = vadd.f32 %v798_v24, %v154_v11 }
  0xac   :  { %651 = vst [vmem:[%s892_s6 + $0x8] sm:$0xff] %v579_v9   ;;  %v352_v14 = vadd.f32 %v329_v10, %v172_v6  ;;  %v312_v19 = vadd.f32 %v803_v25, %v311_v13 }
  0xad   :  { %662 = vst [vmem:[%s891_s7 + $0x28] sm:$0xff] %v639_v12  }
  0xae   :  { %v368_v16 = vmax.f32 %v352_v14, 0.0  ;;  %v345_v27 = vadd.f32 %v312_v19, %v155_v18 }
  0xb0   :  { %v599_v17 = vpack.c.bf16 %v368_v16, %v367_v15  ;;  %v174_v20 = vpop.f32.mrf.mxu2  ;;  %v361_v33 = vmax.f32 %v345_v27, 0.0 }
  0xb1   :  { %v331_v21 = vpop.f32.mrf.mxu3  ;;  %v175_v30 = vadd.f32 %v798_v24, %v174_v20 }
  0xb2   :  { %655 = vst [vmem:[%s892_s6 + $0x28] sm:$0xff] %v599_v17   ;;  %v156_v22 = vpop.f32.mrf.mxu0  ;;  %v332_v31 = vadd.f32 %v803_v25, %v331_v21 }
  0xb3   :  { %v157_v23 = vadd.f32 %v798_v24, %v156_v22  ;;  %v313_v26 = vpop.f32.mrf.mxu1 }
  0xb4   :  { %v314_v28 = vadd.f32 %v803_v25, %v313_v26  ;;  %v353_v38 = vadd.f32 %v332_v31, %v175_v30 }
  0xb5   :  { %v624_v29 = vpack.c.bf16 %v157_v23, %v155_v18 }
  0xb6   :  { %v346_v32 = vadd.f32 %v314_v28, %v157_v23  ;;  %v369_v45 = vmax.f32 %v353_v38, 0.0 }
  0xb7   :  { %659 = vst [vmem:[%s891_s7 + $0x10] sm:$0xff] %v624_v29  }
  0xb8   :  { %v362_v34 = vmax.f32 %v346_v32, 0.0  ;;  %v176_v35 = vpop.f32.mrf.mxu2 }
  0xb9   :  { %v177_v36 = vadd.f32 %v798_v24, %v176_v35  ;;  %v333_v37 = vpop.f32.mrf.mxu3 }
  0xba   :  { %v584_v39 = vpack.c.bf16 %v362_v34, %v361_v33  ;;  %v334_v40 = vadd.f32 %v803_v25, %v333_v37  ;;  %v159_v41 = vpop.f32.mrf.mxu0 }
  0xbb   :  { %v644_v42 = vpack.c.bf16 %v177_v36, %v175_v30  ;;  %v316_v43 = vpop.f32.mrf.mxu1  ;;  %v160_v48 = vadd.f32 %v798_v24, %v159_v41 }
  0xbc   :  { %652 = vst [vmem:[%s892_s6 + $0x10] sm:$0xff] %v584_v39   ;;  %v354_v44 = vadd.f32 %v334_v40, %v177_v36  ;;  %v317_v49 = vadd.f32 %v803_v25, %v316_v43 }
  0xbd   :  { %663 = vst [vmem:[%s891_s7 + $0x30] sm:$0xff] %v644_v42  }
  0xbe   :  { %v370_v46 = vmax.f32 %v354_v44, 0.0  ;;  %v347_v55 = vadd.f32 %v317_v49, %v160_v48 }
  0xc0   :  { %v604_v47 = vpack.c.bf16 %v370_v46, %v369_v45  ;;  %v179_v50 = vpop.f32.mrf.mxu2  ;;  %v363_v61 = vmax.f32 %v347_v55, 0.0 }
  0xc1   :  { %v336_v51 = vpop.f32.mrf.mxu3  ;;  %v180_v58 = vadd.f32 %v798_v24, %v179_v50 }
  0xc2   :  { %656 = vst [vmem:[%s892_s6 + $0x30] sm:$0xff] %v604_v47   ;;  %v161_v52 = vpop.f32.mrf.mxu0  ;;  %v337_v59 = vadd.f32 %v803_v25, %v336_v51 }
  0xc3   :  { %v162_v53 = vadd.f32 %v798_v24, %v161_v52  ;;  %v318_v54 = vpop.f32.mrf.mxu1 }
  0xc4   :  { %v319_v56 = vadd.f32 %v803_v25, %v318_v54  ;;  %v355_v2 = vadd.f32 %v337_v59, %v180_v58 }
  0xc5   :  { %v629_v57 = vpack.c.bf16 %v162_v53, %v160_v48 }
  0xc6   :  { %v348_v60 = vadd.f32 %v319_v56, %v162_v53  ;;  %v371_v7 = vmax.f32 %v355_v2, 0.0 }
  0xc7   :  { %660 = vst [vmem:[%s891_s7 + $0x18] sm:$0xff] %v629_v57  }
  0xc8   :  { %v364_v62 = vmax.f32 %v348_v60, 0.0  ;;  %v181_v63 = vpop.f32.mrf.mxu2 }
  0xc9   :  { %v182_v0 = vadd.f32 %v798_v24, %v181_v63  ;;  %v338_v1 = vpop.f32.mrf.mxu3 }
  0xca   :  { %v589_v3 = vpack.c.bf16 %v364_v62, %v363_v61  ;;  %v339_v4 = vadd.f32 %v803_v25, %v338_v1 }
  0xcb   :  { %v649_v5 = vpack.c.bf16 %v182_v0, %v180_v58 }
  0xcc   :  { %653 = vst [vmem:[%s892_s6 + $0x18] sm:$0xff] %v589_v3   ;;  %v356_v6 = vadd.f32 %v339_v4, %v182_v0 }
  0xcd   :  { %664 = vst [vmem:[%s891_s7 + $0x38] sm:$0xff] %v649_v5  }
  0xce   :  { %v372_v8 = vmax.f32 %v356_v6, 0.0 }
  0xd0   :  { %v609_v9 = vpack.c.bf16 %v372_v8, %v371_v7 }
  0xd2   :  { %657 = vst [vmem:[%s892_s6 + $0x38] sm:$0xff] %v609_v9  }

// kernel: mrfs_forward.10
= control target key start
LH: loop header
LB: loop body
LE: loop exit
PB: predicated region body
PF: predicated region fallthrough
CT: control target
= control target key end

     0   :  { %s630_s1 = inlined_call_operand.vmem [shape: bf16[384,128], index: 1, kind: input, shape index: {}]   ;;  %s631_s2 = inlined_call_operand.vmem [shape: f32[1,128], index: 2, kind: input, shape index: {}]   ;;  %s632_s0 = inlined_call_operand.vmem [shape: bf16[32,384], index: 0, kind: input, shape index: {}]   ;;  %s633_s3 = inlined_call_operand.vmem [shape: bf16[32,128], index: 3, kind: output, shape index: {}]  }
   0x1   :  { %v456_v0 = vld [vmem:[%s630_s1 + $0x38] sm:$0xff]  ;;  %v455_v3 = vld [vmem:[%s630_s1 + $0x30] sm:$0xff]  ;;  %v454_v6 = vld [vmem:[%s630_s1 + $0x28] sm:$0xff] }
   0x2   :  { %v464_v1 = vld [vmem:[%s630_s1 + $0x78] sm:$0xff]  ;;  %250 = vmatpush.bf16.msra.mxu0 %v456_v0  ;;  %v463_v4 = vld [vmem:[%s630_s1 + $0x70] sm:$0xff]  ;;  %484 = vmatpush.bf16.msra.mxu3 %v456_v0  ;;  %v462_v7 = vld [vmem:[%s630_s1 + $0x68] sm:$0xff] }
   0x3   :  { %v472_v2 = vld [vmem:[%s630_s1 + $0xb8] sm:$0xff]  ;;  %269 = vmatpush.bf16.msra.mxu1 %v464_v1  ;;  %v471_v5 = vld [vmem:[%s630_s1 + $0xb0] sm:$0xff]  ;;  %v470_v8 = vld [vmem:[%s630_s1 + $0xa8] sm:$0xff] }
   0x4   :  { %288 = vmatpush.bf16.msra.mxu2 %v472_v2  ;;  %v453_v9 = vld [vmem:[%s630_s1 + $0x20] sm:$0xff]  ;;  %v452_v12 = vld [vmem:[%s630_s1 + $0x18] sm:$0xff]  ;;  %v451_v15 = vld [vmem:[%s630_s1 + $0x10] sm:$0xff] }
   0x5   :  { %v461_v10 = vld [vmem:[%s630_s1 + $0x60] sm:$0xff]  ;;  %v460_v13 = vld [vmem:[%s630_s1 + $0x58] sm:$0xff]  ;;  %v459_v16 = vld [vmem:[%s630_s1 + $0x50] sm:$0xff] }
   0x6   :  { %251 = vmatpush.bf16.msra.mxu0 %v455_v3  ;;  %485 = vmatpush.bf16.msra.mxu3 %v455_v3  ;;  %v469_v11 = vld [vmem:[%s630_s1 + $0xa0] sm:$0xff]  ;;  %v468_v14 = vld [vmem:[%s630_s1 + $0x98] sm:$0xff]  ;;  %v467_v17 = vld [vmem:[%s630_s1 + $0x90] sm:$0xff] }
   0x7   :  { %270 = vmatpush.bf16.msra.mxu1 %v463_v4  ;;  %v450_v18 = vld [vmem:[%s630_s1 + $0x8] sm:$0xff]  ;;  %v449_v21 = vld [vmem:[%s630_s1] sm:$0xff]  ;;  %v327_v27 = vld [vmem:[%s632_s0 + $0xc] sm:$0xf0] }
   0x8   :  { %289 = vmatpush.bf16.msra.mxu2 %v471_v5  ;;  %v458_v19 = vld [vmem:[%s630_s1 + $0x48] sm:$0xff]  ;;  %v457_v22 = vld [vmem:[%s630_s1 + $0x40] sm:$0xff]  ;;  %v445_v29 = vld [vmem:[%s632_s0 + $0x10] sm:$0xf0] }
   0x9   :  { %v466_v20 = vld [vmem:[%s630_s1 + $0x88] sm:$0xff]  ;;  %v465_v23 = vld [vmem:[%s630_s1 + $0x80] sm:$0xff]  ;;  %v337_v30 = vld [vmem:[%s632_s0 + $0x18] sm:$0xf] }
   0xa   :  { %252 = vmatpush.bf16.msra.mxu0 %v454_v6  ;;  %486 = vmatpush.bf16.msra.mxu3 %v454_v6  ;;  %v325_v24 = vld [vmem:[%s632_s0] sm:$0xf]  ;;  %v444_v25 = vld [vmem:[%s632_s0 + $0x8] sm:$0xf0]  ;;  %v443_v26 = vld [vmem:[%s632_s0 + $0x4] sm:$0xf] }
   0xb   :  { %271 = vmatpush.bf16.msra.mxu1 %v462_v7  ;;  %v333_v28 = vld [vmem:[%s632_s0 + $0x8] sm:$0xf]  ;;  %v447_v31 = vld [vmem:[%s632_s0 + $0x20] sm:$0xf0]  ;;  %v326_v32 = vor.u32 %v444_v25, %v325_v24  ;;  %v330_v33 = vor.u32 %v443_v26, %v327_v27  ;;  %v446_v36 = vld [vmem:[%s632_s0 + $0x1c] sm:$0xf] }
   0xc   :  { %290 = vmatpush.bf16.msra.mxu2 %v470_v8  ;;  %v334_v34 = vor.u32 %v445_v29, %v333_v28  ;;  %v338_v35 = vor.u32 %v447_v31, %v337_v30  ;;  %v339_v37 = vld [vmem:[%s632_s0 + $0x24] sm:$0xf0]  ;;  %v345_v38 = vld [vmem:[%s632_s0 + $0x20] sm:$0xf]  ;;  %v448_v39 = vld [vmem:[%s632_s0 + $0x28] sm:$0xf0] }
   0xd   :  { %v342_v40 = vor.u32 %v446_v36, %v339_v37  ;;  %v346_v41 = vor.u32 %v448_v39, %v345_v38  ;;  %v492_v44 = vld [vmem:[%s631_s2] ss:$0 sm:$0xff] }
   0xe   :  { %253 = vmatpush.bf16.msra.mxu0 %v453_v9  ;;  %487 = vmatpush.bf16.msra.mxu3 %v453_v9 }
   0xf   :  { %272 = vmatpush.bf16.msra.mxu1 %v461_v10 }
  0x10   :  { %291 = vmatpush.bf16.msra.mxu2 %v469_v11 }
  0x12   :  { %254 = vmatpush.bf16.msra.mxu0 %v452_v12  ;;  %488 = vmatpush.bf16.msra.mxu3 %v452_v12 }
  0x13   :  { %273 = vmatpush.bf16.msra.mxu1 %v460_v13 }
  0x14   :  { %292 = vmatpush.bf16.msra.mxu2 %v468_v14 }
  0x16   :  { %255 = vmatpush.bf16.msra.mxu0 %v451_v15  ;;  %489 = vmatpush.bf16.msra.mxu3 %v451_v15 }
  0x17   :  { %274 = vmatpush.bf16.msra.mxu1 %v459_v16 }
  0x18   :  { %293 = vmatpush.bf16.msra.mxu2 %v467_v17 }
  0x1a   :  { %256 = vmatpush.bf16.msra.mxu0 %v450_v18  ;;  %490 = vmatpush.bf16.msra.mxu3 %v450_v18 }
  0x1b   :  { %275 = vmatpush.bf16.msra.mxu1 %v458_v19 }
  0x1c   :  { %294 = vmatpush.bf16.msra.mxu2 %v466_v20 }
  0x1e   :  { %257 = vmatpush.bf16.msra.mxu0 %v449_v21  ;;  %491 = vmatpush.bf16.msra.mxu3 %v449_v21 }
  0x1f   :  { %276 = vmatpush.bf16.msra.mxu1 %v457_v22 }
  0x20   :  { %295 = vmatpush.bf16.msra.mxu2 %v465_v23 }
  0x21   :  { %258 = vmatmul.bf16.vlgmr.msra.gmra.mxu0 %v326_v32  ;;  %263 = vmatmul.bf16.vlgmr.msra.gmra.mxu3 %v338_v35 }
  0x22   :  { %277 = vmatmul.bf16.vlgmr.msra.gmra.mxu1 %v330_v33 }
  0x23   :  { %296 = vmatmul.bf16.vlgmr.msra.gmra.mxu2 %v334_v34 }
  0x32   :  { %282 = vmatmul.bf16.gmra.mxu1 %v342_v40 }
  0x33   :  { %301 = vmatmul.bf16.gmra.mxu2 %v346_v41 }
  0x9e   :  { %v259_v42 = vpop.f32.mrf.mxu0 }
  0x9f   :  { %v278_v43 = vpop.f32.mrf.mxu1  ;;  %v260_v45 = vadd.f32 %v492_v44, %v259_v42 }
  0xa1   :  { %v279_v49 = vadd.f32 %v278_v43, %v260_v45 }
  0xa4   :  { %v264_v53 = vpop.f32.mrf.mxu3 }
  0xa5   :  { %v265_v60 = vadd.f32 %v492_v44, %v264_v53 }
  0xa6   :  { %v297_v46 = vpop.f32.mrf.mxu2  ;;  %v261_v47 = vpop.f32.mrf.mxu0 }
  0xa7   :  { %v280_v48 = vpop.f32.mrf.mxu1  ;;  %v262_v50 = vadd.f32 %v492_v44, %v261_v47  ;;  %v298_v51 = vadd.f32 %v297_v46, %v279_v49 }
  0xa9   :  { %v281_v52 = vadd.f32 %v280_v48, %v262_v50  ;;  %v307_v57 = vmax.f32 %v298_v51, 0.0 }
  0xac   :  { %v266_v62 = vpop.f32.mrf.mxu3 }
  0xad   :  { %v267_v1 = vadd.f32 %v492_v44, %v266_v62 }
  0xae   :  { %v299_v54 = vpop.f32.mrf.mxu2 }
  0xaf   :  { %v300_v55 = vadd.f32 %v299_v54, %v281_v52  ;;  %v283_v56 = vpop.f32.mrf.mxu1 }
  0xb0   :  { %v284_v63 = vadd.f32 %v283_v56, %v265_v60 }
  0xb1   :  { %v308_v58 = vmax.f32 %v300_v55, 0.0 }
  0xb3   :  { %v476_v59 = vpack.c.bf16 %v308_v58, %v307_v57 }
  0xb5   :  { %477 = vst [vmem:[%s633_s3] sm:$0xff] %v476_v59  }
  0xb6   :  { %v302_v61 = vpop.f32.mrf.mxu2 }
  0xb7   :  { %v285_v0 = vpop.f32.mrf.mxu1  ;;  %v303_v2 = vadd.f32 %v302_v61, %v284_v63 }
  0xb8   :  { %v286_v3 = vadd.f32 %v285_v0, %v267_v1 }
  0xb9   :  { %v309_v6 = vmax.f32 %v303_v2, 0.0 }
  0xbe   :  { %v304_v4 = vpop.f32.mrf.mxu2 }
  0xbf   :  { %v305_v5 = vadd.f32 %v304_v4, %v286_v3 }
  0xc1   :  { %v310_v7 = vmax.f32 %v305_v5, 0.0 }
  0xc3   :  { %v481_v8 = vpack.c.bf16 %v310_v7, %v309_v6 }
  0xc5   :  { %483 = vst [vmem:[%s633_s3 + $0x8] sm:$0xff] %v481_v8  }

// kernel: mrfs_forward.11
= control target key start
LH: loop header
LB: loop body
LE: loop exit
PB: predicated region body
PF: predicated region fallthrough
CT: control target
= control target key end

     0   :  { %s1810_s1 = inlined_call_operand.vmem [shape: bf16[1536,128], index: 1, kind: input, shape index: {}]   ;;  %s1811_s2 = inlined_call_operand.vmem [shape: f32[1,128], index: 2, kind: input, shape index: {}]   ;;  %s1812_s0 = inlined_call_operand.vmem [shape: bf16[8,1536], index: 0, kind: input, shape index: {}]   ;;  %s1813_s3 = inlined_call_operand.vmem [shape: bf16[8,128], index: 3, kind: output, shape index: {}]  }
   0x1   :  { %v1388_v0 = vld [vmem:[%s1810_s1 + $0x38] sm:$0xff]  ;;  %v1387_v4 = vld [vmem:[%s1810_s1 + $0x30] sm:$0xff]  ;;  %v1386_v8 = vld [vmem:[%s1810_s1 + $0x28] sm:$0xff] }
   0x2   :  { %v1396_v1 = vld [vmem:[%s1810_s1 + $0x78] sm:$0xff]  ;;  %834 = vmatpush.bf16.msra.mxu0 %v1388_v0  ;;  %v1395_v5 = vld [vmem:[%s1810_s1 + $0x70] sm:$0xff]  ;;  %v1394_v9 = vld [vmem:[%s1810_s1 + $0x68] sm:$0xff] }
   0x3   :  { %v1404_v2 = vld [vmem:[%s1810_s1 + $0xb8] sm:$0xff]  ;;  %847 = vmatpush.bf16.msra.mxu1 %v1396_v1  ;;  %v1403_v6 = vld [vmem:[%s1810_s1 + $0xb0] sm:$0xff]  ;;  %v1402_v10 = vld [vmem:[%s1810_s1 + $0xa8] sm:$0xff] }
   0x4   :  { %v1412_v3 = vld [vmem:[%s1810_s1 + $0xf8] sm:$0xff]  ;;  %860 = vmatpush.bf16.msra.mxu2 %v1404_v2  ;;  %v1411_v7 = vld [vmem:[%s1810_s1 + $0xf0] sm:$0xff]  ;;  %v1410_v11 = vld [vmem:[%s1810_s1 + $0xe8] sm:$0xff] }
   0x5   :  { %873 = vmatpush.bf16.msra.mxu3 %v1412_v3  ;;  %v1385_v12 = vld [vmem:[%s1810_s1 + $0x20] sm:$0xff]  ;;  %v1384_v16 = vld [vmem:[%s1810_s1 + $0x18] sm:$0xff]  ;;  %v1383_v20 = vld [vmem:[%s1810_s1 + $0x10] sm:$0xff] }
   0x6   :  { %835 = vmatpush.bf16.msra.mxu0 %v1387_v4  ;;  %v1393_v13 = vld [vmem:[%s1810_s1 + $0x60] sm:$0xff]  ;;  %v1392_v17 = vld [vmem:[%s1810_s1 + $0x58] sm:$0xff]  ;;  %v1391_v21 = vld [vmem:[%s1810_s1 + $0x50] sm:$0xff] }
   0x7   :  { %848 = vmatpush.bf16.msra.mxu1 %v1395_v5  ;;  %v1401_v14 = vld [vmem:[%s1810_s1 + $0xa0] sm:$0xff]  ;;  %v1400_v18 = vld [vmem:[%s1810_s1 + $0x98] sm:$0xff]  ;;  %v1399_v22 = vld [vmem:[%s1810_s1 + $0x90] sm:$0xff] }
   0x8   :  { %861 = vmatpush.bf16.msra.mxu2 %v1403_v6  ;;  %v1409_v15 = vld [vmem:[%s1810_s1 + $0xe0] sm:$0xff]  ;;  %v1408_v19 = vld [vmem:[%s1810_s1 + $0xd8] sm:$0xff]  ;;  %v1407_v23 = vld [vmem:[%s1810_s1 + $0xd0] sm:$0xff] }
   0x9   :  { %874 = vmatpush.bf16.msra.mxu3 %v1411_v7  ;;  %v1382_v24 = vld [vmem:[%s1810_s1 + $0x8] sm:$0xff]  ;;  %v14_v29 = vld [vmem:[%s1812_s0] sm:$0xff]  ;;  %v1420_v38 = vld [vmem:[%s1810_s1 + $0x138] sm:$0xff] }
   0xa   :  { %836 = vmatpush.bf16.msra.mxu0 %v1386_v8  ;;  %v1390_v25 = vld [vmem:[%s1810_s1 + $0x48] sm:$0xff]  ;;  %v1381_v30 = vld [vmem:[%s1810_s1] sm:$0xff]  ;;  %v222_v33 = vunpack.c.l.b16 %v14_v29  ;;  %v223_v37 = vunpack.c.h.b16 %v14_v29  ;;  %v1428_v39 = vld [vmem:[%s1810_s1 + $0x178] sm:$0xff] }
   0xb   :  { %849 = vmatpush.bf16.msra.mxu1 %v1394_v9  ;;  %v1398_v26 = vld [vmem:[%s1810_s1 + $0x88] sm:$0xff]  ;;  %v1389_v31 = vld [vmem:[%s1810_s1 + $0x40] sm:$0xff]  ;;  %v1436_v40 = vld [vmem:[%s1810_s1 + $0x1b8] sm:$0xff] }
   0xc   :  { %862 = vmatpush.bf16.msra.mxu2 %v1402_v10  ;;  %v1406_v27 = vld [vmem:[%s1810_s1 + $0xc8] sm:$0xff]  ;;  %v1397_v34 = vld [vmem:[%s1810_s1 + $0x80] sm:$0xff]  ;;  %v1444_v41 = vld [vmem:[%s1810_s1 + $0x1f8] sm:$0xff]  ;;  %v234_v43 = vpack.c.b16 %v222_v33, %v222_v33  ;;  %v235_v45 = vpack.c.b16 %v223_v37, %v223_v37 }
   0xd   :  { %875 = vmatpush.bf16.msra.mxu3 %v1410_v11  ;;  %v15_v28 = vld [vmem:[%s1812_s0 + $0x8] sm:$0xff]  ;;  %v1405_v35 = vld [vmem:[%s1810_s1 + $0xc0] sm:$0xff]  ;;  %v1419_v46 = vld [vmem:[%s1810_s1 + $0x130] sm:$0xff] }
   0xe   :  { %837 = vmatpush.bf16.msra.mxu0 %v1385_v12  ;;  %v224_v32 = vunpack.c.l.b16 %v15_v28  ;;  %v225_v36 = vunpack.c.h.b16 %v15_v28  ;;  %v1427_v47 = vld [vmem:[%s1810_s1 + $0x170] sm:$0xff]  ;;  %v1418_v50 = vld [vmem:[%s1810_s1 + $0x128] sm:$0xff]  ;;  %v1417_v54 = vld [vmem:[%s1810_s1 + $0x120] sm:$0xff] }
   0xf   :  { %850 = vmatpush.bf16.msra.mxu1 %v1393_v13  ;;  %v1435_v48 = vld [vmem:[%s1810_s1 + $0x1b0] sm:$0xff]  ;;  %v1426_v51 = vld [vmem:[%s1810_s1 + $0x168] sm:$0xff]  ;;  %v1425_v55 = vld [vmem:[%s1810_s1 + $0x160] sm:$0xff] }
  0x10   :  { %863 = vmatpush.bf16.msra.mxu2 %v1401_v14  ;;  %v236_v42 = vpack.c.b16 %v224_v32, %v224_v32  ;;  %v237_v44 = vpack.c.b16 %v225_v36, %v225_v36  ;;  %v1443_v49 = vld [vmem:[%s1810_s1 + $0x1f0] sm:$0xff]  ;;  %v1434_v52 = vld [vmem:[%s1810_s1 + $0x1a8] sm:$0xff]  ;;  %v1433_v56 = vld [vmem:[%s1810_s1 + $0x1a0] sm:$0xff] }
  0x11   :  { %876 = vmatpush.bf16.msra.mxu3 %v1409_v15  ;;  %v1442_v53 = vld [vmem:[%s1810_s1 + $0x1e8] sm:$0xff]  ;;  %v1441_v57 = vld [vmem:[%s1810_s1 + $0x1e0] sm:$0xff]  ;;  %v1416_v58 = vld [vmem:[%s1810_s1 + $0x118] sm:$0xff] }
  0x12   :  { %838 = vmatpush.bf16.msra.mxu0 %v1384_v16  ;;  %v1424_v59 = vld [vmem:[%s1810_s1 + $0x158] sm:$0xff]  ;;  %v1415_v62 = vld [vmem:[%s1810_s1 + $0x110] sm:$0xff]  ;;  %v1414_v2 = vld [vmem:[%s1810_s1 + $0x108] sm:$0xff] }
  0x13   :  { %851 = vmatpush.bf16.msra.mxu1 %v1392_v17  ;;  %v1432_v60 = vld [vmem:[%s1810_s1 + $0x198] sm:$0xff]  ;;  %v1423_v63 = vld [vmem:[%s1810_s1 + $0x150] sm:$0xff]  ;;  %v1422_v3 = vld [vmem:[%s1810_s1 + $0x148] sm:$0xff] }
  0x14   :  { %864 = vmatpush.bf16.msra.mxu2 %v1400_v18  ;;  %v1440_v61 = vld [vmem:[%s1810_s1 + $0x1d8] sm:$0xff]  ;;  %v1431_v0 = vld [vmem:[%s1810_s1 + $0x190] sm:$0xff]  ;;  %v1430_v4 = vld [vmem:[%s1810_s1 + $0x188] sm:$0xff] }
  0x15   :  { %877 = vmatpush.bf16.msra.mxu3 %v1408_v19  ;;  %v1439_v1 = vld [vmem:[%s1810_s1 + $0x1d0] sm:$0xff]  ;;  %v1438_v5 = vld [vmem:[%s1810_s1 + $0x1c8] sm:$0xff]  ;;  %v17_v6 = vld [vmem:[%s1812_s0 + $0x18] sm:$0xff] }
  0x16   :  { %839 = vmatpush.bf16.msra.mxu0 %v1383_v20  ;;  %v16_v7 = vld [vmem:[%s1812_s0 + $0x10] sm:$0xff]  ;;  %v1413_v8 = vld [vmem:[%s1810_s1 + $0x100] sm:$0xff]  ;;  %v228_v10 = vunpack.c.l.b16 %v17_v6  ;;  %v229_v14 = vunpack.c.h.b16 %v17_v6  ;;  %v1452_v16 = vld [vmem:[%s1810_s1 + $0x238] sm:$0xff] }
  0x17   :  { %852 = vmatpush.bf16.msra.mxu1 %v1391_v21  ;;  %v1421_v9 = vld [vmem:[%s1810_s1 + $0x140] sm:$0xff]  ;;  %v226_v11 = vunpack.c.l.b16 %v16_v7  ;;  %v227_v15 = vunpack.c.h.b16 %v16_v7  ;;  %v1460_v17 = vld [vmem:[%s1810_s1 + $0x278] sm:$0xff]  ;;  %v1450_v28 = vld [vmem:[%s1810_s1 + $0x228] sm:$0xff] }
  0x18   :  { %865 = vmatpush.bf16.msra.mxu2 %v1399_v22  ;;  %v1429_v12 = vld [vmem:[%s1810_s1 + $0x180] sm:$0xff]  ;;  %v1468_v18 = vld [vmem:[%s1810_s1 + $0x2b8] sm:$0xff]  ;;  %v240_v20 = vpack.c.b16 %v228_v10, %v228_v10  ;;  %v241_v22 = vpack.c.b16 %v229_v14, %v229_v14  ;;  %v1458_v29 = vld [vmem:[%s1810_s1 + $0x268] sm:$0xff] }
  0x19   :  { %878 = vmatpush.bf16.msra.mxu3 %v1407_v23  ;;  %v1437_v13 = vld [vmem:[%s1810_s1 + $0x1c0] sm:$0xff]  ;;  %v1476_v19 = vld [vmem:[%s1810_s1 + $0x2f8] sm:$0xff]  ;;  %v238_v21 = vpack.c.b16 %v226_v11, %v226_v11  ;;  %v239_v23 = vpack.c.b16 %v227_v15, %v227_v15 }
  0x1a   :  { %840 = vmatpush.bf16.msra.mxu0 %v1382_v24  ;;  %v1451_v24 = vld [vmem:[%s1810_s1 + $0x230] sm:$0xff]  ;;  %v1449_v32 = vld [vmem:[%s1810_s1 + $0x220] sm:$0xff]  ;;  %v1448_v36 = vld [vmem:[%s1810_s1 + $0x218] sm:$0xff] }
  0x1b   :  { %853 = vmatpush.bf16.msra.mxu1 %v1390_v25  ;;  %v1459_v25 = vld [vmem:[%s1810_s1 + $0x270] sm:$0xff]  ;;  %v1457_v33 = vld [vmem:[%s1810_s1 + $0x260] sm:$0xff]  ;;  %v1456_v37 = vld [vmem:[%s1810_s1 + $0x258] sm:$0xff] }
  0x1c   :  { %866 = vmatpush.bf16.msra.mxu2 %v1398_v26  ;;  %v1467_v26 = vld [vmem:[%s1810_s1 + $0x2b0] sm:$0xff]  ;;  %v1477_v6 = vld [vmem:[%s1811_s2] ss:$0 sm:$0xff] }
  0x1d   :  { %879 = vmatpush.bf16.msra.mxu3 %v1406_v27  ;;  %v1475_v27 = vld [vmem:[%s1810_s1 + $0x2f0] sm:$0xff] }
  0x1e   :  { %841 = vmatpush.bf16.msra.mxu0 %v1381_v30  ;;  %v1466_v30 = vld [vmem:[%s1810_s1 + $0x2a8] sm:$0xff] }
  0x1f   :  { %854 = vmatpush.bf16.msra.mxu1 %v1389_v31  ;;  %v1474_v31 = vld [vmem:[%s1810_s1 + $0x2e8] sm:$0xff] }
  0x20   :  { %867 = vmatpush.bf16.msra.mxu2 %v1397_v34  ;;  %v1465_v34 = vld [vmem:[%s1810_s1 + $0x2a0] sm:$0xff] }
  0x21   :  { %880 = vmatpush.bf16.msra.mxu3 %v1405_v35  ;;  %842 = vmatmul.bf16.vlgmr.msra.gmra.mxu0 %v234_v43  ;;  %v1473_v35 = vld [vmem:[%s1810_s1 + $0x2e0] sm:$0xff]  ;;  %v1471_v43 = vld [vmem:[%s1810_s1 + $0x2d0] sm:$0xff] }
  0x22   :  { %886 = vmatpush.bf16.msrb.mxu0 %v1420_v38  ;;  %855 = vmatmul.bf16.vlgmr.msra.gmra.mxu1 %v235_v45  ;;  %v1464_v38 = vld [vmem:[%s1810_s1 + $0x298] sm:$0xff]  ;;  %v1454_v45 = vld [vmem:[%s1810_s1 + $0x248] sm:$0xff] }
  0x23   :  { %899 = vmatpush.bf16.msrb.mxu1 %v1428_v39  ;;  %868 = vmatmul.bf16.vlgmr.msra.gmra.mxu2 %v236_v42  ;;  %v1472_v39 = vld [vmem:[%s1810_s1 + $0x2d8] sm:$0xff]  ;;  %v1463_v42 = vld [vmem:[%s1810_s1 + $0x290] sm:$0xff] }
  0x24   :  { %912 = vmatpush.bf16.msrb.mxu2 %v1436_v40  ;;  %881 = vmatmul.bf16.vlgmr.msra.gmra.mxu3 %v237_v44  ;;  %v1447_v40 = vld [vmem:[%s1810_s1 + $0x210] sm:$0xff]  ;;  %v1446_v44 = vld [vmem:[%s1810_s1 + $0x208] sm:$0xff] }
  0x25   :  { %925 = vmatpush.bf16.msrb.mxu3 %v1444_v41  ;;  %v1455_v41 = vld [vmem:[%s1810_s1 + $0x250] sm:$0xff] }
  0x26   :  { %887 = vmatpush.bf16.msrb.mxu0 %v1419_v46  ;;  %v18_v46 = vld [vmem:[%s1812_s0 + $0x20] sm:$0xff] }
  0x27   :  { %900 = vmatpush.bf16.msrb.mxu1 %v1427_v47  ;;  %v1462_v47 = vld [vmem:[%s1810_s1 + $0x288] sm:$0xff] }
  0x28   :  { %913 = vmatpush.bf16.msrb.mxu2 %v1435_v48  ;;  %v1470_v48 = vld [vmem:[%s1810_s1 + $0x2c8] sm:$0xff] }
  0x29   :  { %926 = vmatpush.bf16.msrb.mxu3 %v1443_v49  ;;  %v19_v49 = vld [vmem:[%s1812_s0 + $0x28] sm:$0xff] }
  0x2a   :  { %888 = vmatpush.bf16.msrb.mxu0 %v1418_v50  ;;  %v230_v50 = vunpack.c.l.b16 %v18_v46 }
  0x2b   :  { %901 = vmatpush.bf16.msrb.mxu1 %v1426_v51  ;;  %v231_v51 = vunpack.c.h.b16 %v18_v46 }
  0x2c   :  { %914 = vmatpush.bf16.msrb.mxu2 %v1434_v52  ;;  %v1445_v52 = vld [vmem:[%s1810_s1 + $0x200] sm:$0xff] }
  0x2d   :  { %927 = vmatpush.bf16.msrb.mxu3 %v1442_v53  ;;  %v1453_v53 = vld [vmem:[%s1810_s1 + $0x240] sm:$0xff] }
  0x2e   :  { %889 = vmatpush.bf16.msrb.mxu0 %v1417_v54  ;;  %v232_v54 = vunpack.c.l.b16 %v19_v49 }
  0x2f   :  { %902 = vmatpush.bf16.msrb.mxu1 %v1425_v55  ;;  %v233_v55 = vunpack.c.h.b16 %v19_v49 }
  0x30   :  { %915 = vmatpush.bf16.msrb.mxu2 %v1433_v56  ;;  %v1461_v56 = vld [vmem:[%s1810_s1 + $0x280] sm:$0xff] }
  0x31   :  { %928 = vmatpush.bf16.msrb.mxu3 %v1441_v57  ;;  %v1469_v57 = vld [vmem:[%s1810_s1 + $0x2c0] sm:$0xff] }
  0x32   :  { %890 = vmatpush.bf16.msrb.mxu0 %v1416_v58  ;;  %v242_v58 = vpack.c.b16 %v230_v50, %v230_v50 }
  0x33   :  { %903 = vmatpush.bf16.msrb.mxu1 %v1424_v59  ;;  %v243_v59 = vpack.c.b16 %v231_v51, %v231_v51 }
  0x34   :  { %916 = vmatpush.bf16.msrb.mxu2 %v1432_v60  ;;  %v244_v60 = vpack.c.b16 %v232_v54, %v232_v54 }
  0x35   :  { %929 = vmatpush.bf16.msrb.mxu3 %v1440_v61  ;;  %v245_v61 = vpack.c.b16 %v233_v55, %v233_v55 }
  0x36   :  { %891 = vmatpush.bf16.msrb.mxu0 %v1415_v62 }
  0x37   :  { %904 = vmatpush.bf16.msrb.mxu1 %v1423_v63 }
  0x38   :  { %917 = vmatpush.bf16.msrb.mxu2 %v1431_v0 }
  0x39   :  { %930 = vmatpush.bf16.msrb.mxu3 %v1439_v1 }
  0x3a   :  { %892 = vmatpush.bf16.msrb.mxu0 %v1414_v2 }
  0x3b   :  { %905 = vmatpush.bf16.msrb.mxu1 %v1422_v3 }
  0x3c   :  { %918 = vmatpush.bf16.msrb.mxu2 %v1430_v4 }
  0x3d   :  { %931 = vmatpush.bf16.msrb.mxu3 %v1438_v5 }
  0x3e   :  { %893 = vmatpush.bf16.msrb.mxu0 %v1413_v8 }
  0x3f   :  { %906 = vmatpush.bf16.msrb.mxu1 %v1421_v9 }
  0x40   :  { %919 = vmatpush.bf16.msrb.mxu2 %v1429_v12 }
  0x41   :  { %932 = vmatpush.bf16.msrb.mxu3 %v1437_v13  ;;  %894 = vmatmul.bf16.vlgmr.msrb.gmra.mxu0 %v238_v21 }
  0x42   :  { %938 = vmatpush.bf16.msra.mxu0 %v1452_v16  ;;  %907 = vmatmul.bf16.vlgmr.msrb.gmra.mxu1 %v239_v23 }
  0x43   :  { %951 = vmatpush.bf16.msra.mxu1 %v1460_v17  ;;  %920 = vmatmul.bf16.vlgmr.msrb.gmra.mxu2 %v240_v20 }
  0x44   :  { %964 = vmatpush.bf16.msra.mxu2 %v1468_v18  ;;  %933 = vmatmul.bf16.vlgmr.msrb.gmra.mxu3 %v241_v22 }
  0x45   :  { %977 = vmatpush.bf16.msra.mxu3 %v1476_v19 }
  0x46   :  { %939 = vmatpush.bf16.msra.mxu0 %v1451_v24 }
  0x47   :  { %952 = vmatpush.bf16.msra.mxu1 %v1459_v25 }
  0x48   :  { %965 = vmatpush.bf16.msra.mxu2 %v1467_v26 }
  0x49   :  { %978 = vmatpush.bf16.msra.mxu3 %v1475_v27 }
  0x4a   :  { %940 = vmatpush.bf16.msra.mxu0 %v1450_v28 }
  0x4b   :  { %953 = vmatpush.bf16.msra.mxu1 %v1458_v29 }
  0x4c   :  { %966 = vmatpush.bf16.msra.mxu2 %v1466_v30 }
  0x4d   :  { %979 = vmatpush.bf16.msra.mxu3 %v1474_v31 }
  0x4e   :  { %941 = vmatpush.bf16.msra.mxu0 %v1449_v32 }
  0x4f   :  { %954 = vmatpush.bf16.msra.mxu1 %v1457_v33 }
  0x50   :  { %967 = vmatpush.bf16.msra.mxu2 %v1465_v34 }
  0x51   :  { %980 = vmatpush.bf16.msra.mxu3 %v1473_v35 }
  0x52   :  { %942 = vmatpush.bf16.msra.mxu0 %v1448_v36 }
  0x53   :  { %955 = vmatpush.bf16.msra.mxu1 %v1456_v37 }
  0x54   :  { %968 = vmatpush.bf16.msra.mxu2 %v1464_v38 }
  0x55   :  { %981 = vmatpush.bf16.msra.mxu3 %v1472_v39 }
  0x56   :  { %943 = vmatpush.bf16.msra.mxu0 %v1447_v40 }
  0x57   :  { %956 = vmatpush.bf16.msra.mxu1 %v1455_v41 }
  0x58   :  { %969 = vmatpush.bf16.msra.mxu2 %v1463_v42 }
  0x59   :  { %982 = vmatpush.bf16.msra.mxu3 %v1471_v43 }
  0x5a   :  { %944 = vmatpush.bf16.msra.mxu0 %v1446_v44 }
  0x5b   :  { %957 = vmatpush.bf16.msra.mxu1 %v1454_v45 }
  0x5c   :  { %970 = vmatpush.bf16.msra.mxu2 %v1462_v47 }
  0x5d   :  { %983 = vmatpush.bf16.msra.mxu3 %v1470_v48 }
  0x5e   :  { %945 = vmatpush.bf16.msra.mxu0 %v1445_v52 }
  0x5f   :  { %958 = vmatpush.bf16.msra.mxu1 %v1453_v53 }
  0x60   :  { %971 = vmatpush.bf16.msra.mxu2 %v1461_v56 }
  0x61   :  { %984 = vmatpush.bf16.msra.mxu3 %v1469_v57  ;;  %946 = vmatmul.bf16.vlgmr.msra.gmra.mxu0 %v242_v58 }
  0x62   :  { %959 = vmatmul.bf16.vlgmr.msra.gmra.mxu1 %v243_v59 }
  0x63   :  { %972 = vmatmul.bf16.vlgmr.msra.gmra.mxu2 %v244_v60 }
  0x64   :  { %985 = vmatmul.bf16.vlgmr.msra.gmra.mxu3 %v245_v61 }
  0x9e   :  { %v843_v62 = vpop.f32.mrf.mxu0 }
  0x9f   :  { %v856_v63 = vpop.f32.mrf.mxu1  ;;  %v844_v8 = vadd.f32 %v1477_v6, %v843_v62 }
  0xa1   :  { %v857_v10 = vadd.f32 %v856_v63, %v844_v8 }
  0xa6   :  { %v869_v0 = vpop.f32.mrf.mxu2  ;;  %v845_v2 = vpop.f32.mrf.mxu0 }
  0xa7   :  { %v882_v1 = vpop.f32.mrf.mxu3  ;;  %v858_v3 = vpop.f32.mrf.mxu1  ;;  %v870_v14 = vadd.f32 %v869_v0, %v857_v10 }
  0xa9   :  { %v883_v16 = vadd.f32 %v882_v1, %v870_v14 }
  0xae   :  { %v871_v4 = vpop.f32.mrf.mxu2 }
  0xaf   :  { %v884_v5 = vpop.f32.mrf.mxu3 }
  0xbe   :  { %v895_v7 = vpop.f32.mrf.mxu0 }
  0xbf   :  { %v908_v9 = vpop.f32.mrf.mxu1  ;;  %v896_v19 = vadd.f32 %v895_v7, %v883_v16 }
  0xc1   :  { %v909_v20 = vadd.f32 %v908_v9, %v896_v19 }
  0xc6   :  { %v921_v11 = vpop.f32.mrf.mxu2  ;;  %v897_v13 = vpop.f32.mrf.mxu0 }
  0xc7   :  { %v934_v12 = vpop.f32.mrf.mxu3  ;;  %v910_v15 = vpop.f32.mrf.mxu1  ;;  %v922_v21 = vadd.f32 %v921_v11, %v909_v20 }
  0xc9   :  { %v935_v22 = vadd.f32 %v934_v12, %v922_v21 }
  0xce   :  { %v923_v17 = vpop.f32.mrf.mxu2 }
  0xcf   :  { %v936_v18 = vpop.f32.mrf.mxu3 }
  0xde   :  { %v947_v23 = vpop.f32.mrf.mxu0 }
  0xdf   :  { %v960_v24 = vpop.f32.mrf.mxu1  ;;  %v948_v25 = vadd.f32 %v947_v23, %v935_v22 }
  0xe1   :  { %v961_v26 = vadd.f32 %v960_v24, %v948_v25 }
  0xe6   :  { %v973_v27 = vpop.f32.mrf.mxu2  ;;  %v949_v30 = vpop.f32.mrf.mxu0 }
  0xe7   :  { %v986_v28 = vpop.f32.mrf.mxu3  ;;  %v974_v29 = vadd.f32 %v973_v27, %v961_v26  ;;  %v962_v31 = vpop.f32.mrf.mxu1 }
  0xe9   :  { %v987_v32 = vadd.f32 %v986_v28, %v974_v29 }
  0xeb   :  { %v990_v33 = vmax.f32 %v987_v32, 0.0 }
  0xed   :  { %v991_v34 = vpack.c.bf16 %v990_v33, %v990_v33 }
  0xee   :  { %v975_v35 = vpop.f32.mrf.mxu2 }
  0xef   :  { %v988_v36 = vpop.f32.mrf.mxu3  ;;  %992 = vst [vmem:[%s1813_s3] sm:$0xf] %v991_v34 }

// kernel: mrfs_forward.13
= control target key start
LH: loop header
LB: loop body
LE: loop exit
PB: predicated region body
PF: predicated region fallthrough
CT: control target
= control target key end

     0   :  { %s1768_s5 = inlined_call_operand.vmem [shape: bf16[128,128], index: 5, kind: input, shape index: {}]   ;;  %s1769_s6 = inlined_call_operand.vmem [shape: bf16[128,128], index: 6, kind: input, shape index: {}]   ;;  %s1770_s4 = inlined_call_operand.vmem [shape: bf16[128,128], index: 4, kind: input, shape index: {}]   ;;  %s1771_s7 = inlined_call_operand.vmem [shape: bf16[128,128], index: 7, kind: input, shape index: {}]   ;;  %s1772_s1 = inlined_call_operand.vmem [shape: bf16[128,128], index: 1, kind: input, shape index: {}]   ;;  %s1773_s0 = inlined_call_operand.vmem [shape: bf16[128,128], index: 0, kind: input, shape index: {}]   ;;  %s1774_s2 = inlined_call_operand.vmem [shape: bf16[128,128], index: 2, kind: input, shape index: {}]   ;;  %s1775_s3 = inlined_call_operand.vmem [shape: bf16[128,128], index: 3, kind: input, shape index: {}]   ;;  %s1776_s8 = inlined_call_operand.vmem [shape: f32[1,128], index: 8, kind: input, shape index: {}]   ;;  %s1777_s9 = inlined_call_operand.vmem [shape: bf16[128,128], index: 9, kind: input, shape index: {}]   ;;  %s1778_s10 = inlined_call_operand.vmem [shape: f32[1,128], index: 10, kind: input, shape index: {}]   ;;  %s1779_s11 = inlined_call_operand.vmem [shape: bf16[128,128], index: 11, kind: output, shape index: {}]  }
   0x1   :  { %v1294_v0 = vld [vmem:[%s1768_s5 + $0x38] sm:$0xff]  ;;  %v1293_v1 = vld [vmem:[%s1768_s5 + $0x30] sm:$0xff]  ;;  %v1292_v2 = vld [vmem:[%s1768_s5 + $0x28] sm:$0xff] }
   0x2   :  { %1382 = vmatpush.bf16.msra.mxu1 %v1294_v0  ;;  %1383 = vmatpush.bf16.msra.mxu2 %v1294_v0  ;;  %v1291_v3 = vld [vmem:[%s1768_s5 + $0x20] sm:$0xff]  ;;  %v1290_v4 = vld [vmem:[%s1768_s5 + $0x18] sm:$0xff]  ;;  %v1289_v5 = vld [vmem:[%s1768_s5 + $0x10] sm:$0xff] }
   0x3   :  { %1384 = vmatpush.bf16.msra.mxu3 %v1294_v0  ;;  %198 = vmatpush.bf16.msra.mxu0 %v1294_v0  ;;  %v1288_v6 = vld [vmem:[%s1768_s5 + $0x8] sm:$0xff]  ;;  %v1287_v7 = vld [vmem:[%s1768_s5] sm:$0xff]  ;;  %v1310_v8 = vld [vmem:[%s1769_s6 + $0x38] sm:$0xff] }
   0x4   :  { %v1278_v9 = vld [vmem:[%s1770_s4 + $0x38] sm:$0xff]  ;;  %v1281_v11 = vld [vmem:[%s1772_s1 + $0x10] sm:$0xff]  ;;  %v1283_v12 = vld [vmem:[%s1772_s1 + $0x20] sm:$0xff] }
   0x5   :  { %v1326_v10 = vld [vmem:[%s1771_s7 + $0x38] sm:$0xff]  ;;  %v1285_v13 = vld [vmem:[%s1772_s1 + $0x30] sm:$0xff]  ;;  %v1279_v17 = vld [vmem:[%s1772_s1] sm:$0xff] }
   0x6   :  { %1385 = vmatpush.bf16.msra.mxu1 %v1293_v1  ;;  %1386 = vmatpush.bf16.msra.mxu2 %v1293_v1  ;;  %v1309_v14 = vld [vmem:[%s1769_s6 + $0x30] sm:$0xff]  ;;  %v1308_v18 = vld [vmem:[%s1769_s6 + $0x28] sm:$0xff]  ;;  %v1307_v21 = vld [vmem:[%s1769_s6 + $0x20] sm:$0xff] }
   0x7   :  { %1387 = vmatpush.bf16.msra.mxu3 %v1293_v1  ;;  %199 = vmatpush.bf16.msra.mxu0 %v1293_v1  ;;  %v1277_v15 = vld [vmem:[%s1770_s4 + $0x30] sm:$0xff]  ;;  %v1276_v19 = vld [vmem:[%s1770_s4 + $0x28] sm:$0xff]  ;;  %v1275_v22 = vld [vmem:[%s1770_s4 + $0x20] sm:$0xff] }
   0x8   :  { %v1325_v16 = vld [vmem:[%s1771_s7 + $0x30] sm:$0xff]  ;;  %v1324_v20 = vld [vmem:[%s1771_s7 + $0x28] sm:$0xff]  ;;  %v1323_v23 = vld [vmem:[%s1771_s7 + $0x20] sm:$0xff] }
   0x9   :  { %v1306_v24 = vld [vmem:[%s1769_s6 + $0x18] sm:$0xff]  ;;  %v1284_v28 = vld [vmem:[%s1772_s1 + $0x28] sm:$0xff]  ;;  %v1305_v30 = vld [vmem:[%s1769_s6 + $0x10] sm:$0xff] }
   0xa   :  { %1388 = vmatpush.bf16.msra.mxu1 %v1292_v2  ;;  %1389 = vmatpush.bf16.msra.mxu2 %v1292_v2  ;;  %v1274_v25 = vld [vmem:[%s1770_s4 + $0x18] sm:$0xff]  ;;  %v1273_v31 = vld [vmem:[%s1770_s4 + $0x10] sm:$0xff]  ;;  %v1280_v33 = vld [vmem:[%s1772_s1 + $0x8] sm:$0xff] }
   0xb   :  { %1390 = vmatpush.bf16.msra.mxu3 %v1292_v2  ;;  %200 = vmatpush.bf16.msra.mxu0 %v1292_v2  ;;  %v1322_v26 = vld [vmem:[%s1771_s7 + $0x18] sm:$0xff]  ;;  %v1321_v32 = vld [vmem:[%s1771_s7 + $0x10] sm:$0xff]  ;;  %v1304_v34 = vld [vmem:[%s1769_s6 + $0x8] sm:$0xff] }
   0xc   :  { %v1282_v27 = vld [vmem:[%s1772_s1 + $0x18] sm:$0xff]  ;;  %v1272_v35 = vld [vmem:[%s1770_s4 + $0x8] sm:$0xff]  ;;  %v1303_v37 = vld [vmem:[%s1769_s6] sm:$0xff] }
   0xd   :  { %v1286_v29 = vld [vmem:[%s1772_s1 + $0x38] sm:$0xff]  ;;  %v1320_v36 = vld [vmem:[%s1771_s7 + $0x8] sm:$0xff]  ;;  %v1271_v38 = vld [vmem:[%s1770_s4] sm:$0xff] }
   0xe   :  { %1391 = vmatpush.bf16.msra.mxu1 %v1291_v3  ;;  %1392 = vmatpush.bf16.msra.mxu2 %v1291_v3  ;;  %v1319_v39 = vld [vmem:[%s1771_s7] sm:$0xff]  ;;  %v1264_v43 = vld [vmem:[%s1773_s0 + $0x8] sm:$0xff]  ;;  %v1265_v46 = vld [vmem:[%s1773_s0 + $0x10] sm:$0xff] }
   0xf   :  { %1393 = vmatpush.bf16.msra.mxu3 %v1291_v3  ;;  %201 = vmatpush.bf16.msra.mxu0 %v1291_v3  ;;  %v1263_v40 = vld [vmem:[%s1773_s0] sm:$0xff]  ;;  %v1296_v44 = vld [vmem:[%s1774_s2 + $0x8] sm:$0xff]  ;;  %v1297_v47 = vld [vmem:[%s1774_s2 + $0x10] sm:$0xff] }
  0x10   :  { %v1295_v41 = vld [vmem:[%s1774_s2] sm:$0xff]  ;;  %v1312_v45 = vld [vmem:[%s1775_s3 + $0x8] sm:$0xff]  ;;  %v1313_v48 = vld [vmem:[%s1775_s3 + $0x10] sm:$0xff] }
  0x11   :  { %v1311_v42 = vld [vmem:[%s1775_s3] sm:$0xff]  ;;  %v1266_v49 = vld [vmem:[%s1773_s0 + $0x18] sm:$0xff]  ;;  %v1268_v55 = vld [vmem:[%s1773_s0 + $0x28] sm:$0xff] }
  0x12   :  { %1394 = vmatpush.bf16.msra.mxu1 %v1290_v4  ;;  %1395 = vmatpush.bf16.msra.mxu2 %v1290_v4  ;;  %v1298_v50 = vld [vmem:[%s1774_s2 + $0x18] sm:$0xff]  ;;  %v1267_v52 = vld [vmem:[%s1773_s0 + $0x20] sm:$0xff]  ;;  %v1300_v56 = vld [vmem:[%s1774_s2 + $0x28] sm:$0xff] }
  0x13   :  { %1396 = vmatpush.bf16.msra.mxu3 %v1290_v4  ;;  %202 = vmatpush.bf16.msra.mxu0 %v1290_v4  ;;  %v1314_v51 = vld [vmem:[%s1775_s3 + $0x18] sm:$0xff]  ;;  %v1299_v53 = vld [vmem:[%s1774_s2 + $0x20] sm:$0xff]  ;;  %v1316_v57 = vld [vmem:[%s1775_s3 + $0x28] sm:$0xff] }
  0x14   :  { %v1315_v54 = vld [vmem:[%s1775_s3 + $0x20] sm:$0xff]  ;;  %v1334_v58 = vld [vmem:[%s1777_s9 + $0x38] sm:$0xff]  ;;  %v1333_v59 = vld [vmem:[%s1777_s9 + $0x30] sm:$0xff] }
  0x15   :  { %v1269_v60 = vld [vmem:[%s1773_s0 + $0x30] sm:$0xff]  ;;  %v1332_v0 = vld [vmem:[%s1777_s9 + $0x28] sm:$0xff]  ;;  %v1331_v1 = vld [vmem:[%s1777_s9 + $0x20] sm:$0xff] }
  0x16   :  { %1397 = vmatpush.bf16.msra.mxu1 %v1289_v5  ;;  %1398 = vmatpush.bf16.msra.mxu2 %v1289_v5  ;;  %v1301_v61 = vld [vmem:[%s1774_s2 + $0x30] sm:$0xff] }
  0x17   :  { %1399 = vmatpush.bf16.msra.mxu3 %v1289_v5  ;;  %203 = vmatpush.bf16.msra.mxu0 %v1289_v5  ;;  %v1317_v63 = vld [vmem:[%s1775_s3 + $0x30] sm:$0xff]  ;;  %v1330_v5 = vld [vmem:[%s1777_s9 + $0x18] sm:$0xff] }
  0x1a   :  { %1400 = vmatpush.bf16.msra.mxu1 %v1288_v6  ;;  %1401 = vmatpush.bf16.msra.mxu2 %v1288_v6 }
  0x1b   :  { %1402 = vmatpush.bf16.msra.mxu3 %v1288_v6  ;;  %204 = vmatpush.bf16.msra.mxu0 %v1288_v6  ;;  %v1329_v6 = vld [vmem:[%s1777_s9 + $0x10] sm:$0xff] }
  0x1e   :  { %1403 = vmatpush.bf16.msra.mxu1 %v1287_v7  ;;  %1404 = vmatpush.bf16.msra.mxu2 %v1287_v7 }
  0x1f   :  { %1405 = vmatpush.bf16.msra.mxu3 %v1287_v7  ;;  %205 = vmatpush.bf16.msra.mxu0 %v1287_v7 }
  0x21   :  { %216 = vmatmul.bf16.vlgmr.msra.gmra.mxu1 %v1281_v11  ;;  %226 = vmatmul.bf16.vlgmr.msra.gmra.mxu2 %v1283_v12  ;;  %v1318_v12 = vld [vmem:[%s1775_s3 + $0x38] sm:$0xff] }
  0x22   :  { %520 = vmatpush.bf16.msrb.mxu2 %v1310_v8  ;;  %343 = vmatpush.bf16.msrb.mxu1 %v1278_v9  ;;  %v1270_v9 = vld [vmem:[%s1773_s0 + $0x38] sm:$0xff] }
  0x23   :  { %713 = vmatpush.bf16.msrb.mxu3 %v1326_v10  ;;  %206 = vmatmul.bf16.vlgmr.msra.gmra.mxu0 %v1279_v17  ;;  %v1302_v10 = vld [vmem:[%s1774_s2 + $0x38] sm:$0xff] }
  0x24   :  { %236 = vmatmul.bf16.vlgmr.msra.gmra.mxu3 %v1285_v13  ;;  %890 = vmatpush.bf16.msrb.mxu0 %v1334_v58  ;;  %v1328_v13 = vld [vmem:[%s1777_s9 + $0x8] sm:$0xff] }
  0x26   :  { %521 = vmatpush.bf16.msrb.mxu2 %v1309_v14  ;;  %344 = vmatpush.bf16.msrb.mxu1 %v1277_v15  ;;  %v1327_v14 = vld [vmem:[%s1777_s9] sm:$0xff] }
  0x27   :  { %714 = vmatpush.bf16.msrb.mxu3 %v1325_v16 }
  0x28   :  { %891 = vmatpush.bf16.msrb.mxu0 %v1333_v59 }
  0x2a   :  { %522 = vmatpush.bf16.msrb.mxu2 %v1308_v18  ;;  %345 = vmatpush.bf16.msrb.mxu1 %v1276_v19 }
  0x2b   :  { %715 = vmatpush.bf16.msrb.mxu3 %v1324_v20 }
  0x2c   :  { %892 = vmatpush.bf16.msrb.mxu0 %v1332_v0 }
  0x2e   :  { %523 = vmatpush.bf16.msrb.mxu2 %v1307_v21  ;;  %346 = vmatpush.bf16.msrb.mxu1 %v1275_v22 }
  0x2f   :  { %716 = vmatpush.bf16.msrb.mxu3 %v1323_v23 }
  0x30   :  { %893 = vmatpush.bf16.msrb.mxu0 %v1331_v1 }
  0x31   :  { %221 = vmatmul.bf16.gmra.mxu1 %v1282_v27  ;;  %231 = vmatmul.bf16.gmra.mxu2 %v1284_v28 }
  0x32   :  { %524 = vmatpush.bf16.msrb.mxu2 %v1306_v24  ;;  %347 = vmatpush.bf16.msrb.mxu1 %v1274_v25 }
  0x33   :  { %717 = vmatpush.bf16.msrb.mxu3 %v1322_v26  ;;  %211 = vmatmul.bf16.gmra.mxu0 %v1280_v33 }
  0x34   :  { %241 = vmatmul.bf16.gmra.mxu3 %v1286_v29  ;;  %894 = vmatpush.bf16.msrb.mxu0 %v1330_v5  ;;  %v1711_v29 = vld [vmem:[%s1776_s8] ss:$0 sm:$0xff] }
  0x36   :  { %525 = vmatpush.bf16.msrb.mxu2 %v1305_v30  ;;  %348 = vmatpush.bf16.msrb.mxu1 %v1273_v31 }
  0x37   :  { %718 = vmatpush.bf16.msrb.mxu3 %v1321_v32 }
  0x38   :  { %895 = vmatpush.bf16.msrb.mxu0 %v1329_v6 }
  0x3a   :  { %526 = vmatpush.bf16.msrb.mxu2 %v1304_v34  ;;  %349 = vmatpush.bf16.msrb.mxu1 %v1272_v35 }
  0x3b   :  { %719 = vmatpush.bf16.msrb.mxu3 %v1320_v36 }
  0x3c   :  { %896 = vmatpush.bf16.msrb.mxu0 %v1328_v13 }
  0x3e   :  { %527 = vmatpush.bf16.msrb.mxu2 %v1303_v37  ;;  %350 = vmatpush.bf16.msrb.mxu1 %v1271_v38 }
  0x3f   :  { %720 = vmatpush.bf16.msrb.mxu3 %v1319_v39 }
  0x40   :  { %897 = vmatpush.bf16.msrb.mxu0 %v1327_v14 }
  0x41   :  { %351 = vmatmul.bf16.vlgmr.msrb.gmra.mxu1 %v1263_v40  ;;  %528 = vmatmul.bf16.vlgmr.msrb.gmra.mxu2 %v1295_v41 }
  0x44   :  { %721 = vmatmul.bf16.vlgmr.msrb.gmra.mxu3 %v1311_v42 }
  0x51   :  { %356 = vmatmul.bf16.gmra.mxu1 %v1264_v43  ;;  %533 = vmatmul.bf16.gmra.mxu2 %v1296_v44 }
  0x54   :  { %726 = vmatmul.bf16.gmra.mxu3 %v1312_v45 }
  0x61   :  { %361 = vmatmul.bf16.gmra.mxu1 %v1265_v46  ;;  %538 = vmatmul.bf16.gmra.mxu2 %v1297_v47 }
  0x64   :  { %731 = vmatmul.bf16.gmra.mxu3 %v1313_v48 }
  0x71   :  { %366 = vmatmul.bf16.gmra.mxu1 %v1266_v49  ;;  %543 = vmatmul.bf16.gmra.mxu2 %v1298_v50 }
  0x74   :  { %736 = vmatmul.bf16.gmra.mxu3 %v1314_v51 }
  0x81   :  { %371 = vmatmul.bf16.gmra.mxu1 %v1267_v52  ;;  %548 = vmatmul.bf16.gmra.mxu2 %v1299_v53 }
  0x84   :  { %741 = vmatmul.bf16.gmra.mxu3 %v1315_v54 }
  0x91   :  { %376 = vmatmul.bf16.gmra.mxu1 %v1268_v55  ;;  %553 = vmatmul.bf16.gmra.mxu2 %v1300_v56 }
  0x94   :  { %746 = vmatmul.bf16.gmra.mxu3 %v1316_v57 }
  0x9e   :  { %v1654_v62 = vpop.f32.mrf.mxu1 }
  0xa0   :  { %v207_v18 = vpop.f32.mrf.mxu0 }
  0xa1   :  { %381 = vmatmul.bf16.gmra.mxu1 %v1269_v60  ;;  %558 = vmatmul.bf16.gmra.mxu2 %v1301_v61 }
  0xa4   :  { %751 = vmatmul.bf16.gmra.mxu3 %v1317_v63  ;;  %v1665_v2 = vpop.f32.mrf.mxu2 }
  0xa6   :  { %v1669_v4 = vpop.f32.mrf.mxu1 }
  0xa7   :  { %v1667_v3 = vpop.f32.mrf.mxu3 }
  0xa8   :  { %v209_v25 = vpop.f32.mrf.mxu0 }
  0xac   :  { %v1677_v7 = vpop.f32.mrf.mxu2 }
  0xae   :  { %v1687_v11 = vpop.f32.mrf.mxu1 }
  0xaf   :  { %v1679_v8 = vpop.f32.mrf.mxu3 }
  0xb0   :  { %v212_v37 = vpop.f32.mrf.mxu0 }
  0xb1   :  { %386 = vmatmul.bf16.gmra.mxu1 %v1270_v9  ;;  %563 = vmatmul.bf16.gmra.mxu2 %v1302_v10 }
  0xb4   :  { %756 = vmatmul.bf16.gmra.mxu3 %v1318_v12  ;;  %v1698_v15 = vpop.f32.mrf.mxu2 }
  0xb6   :  { %v1702_v17 = vpop.f32.mrf.mxu1 }
  0xb7   :  { %v1700_v16 = vpop.f32.mrf.mxu3 }
  0xb8   :  { %v214_v47 = vpop.f32.mrf.mxu0 }
  0xbc   :  { %v1704_v19 = vpop.f32.mrf.mxu2 }
  0xbe   :  { %v352_v21 = vpop.f32.mrf.mxu1 }
  0xbf   :  { %v1706_v20 = vpop.f32.mrf.mxu3  ;;  %v353_v22 = vadd.f32 %v352_v21, %v207_v18 }
  0xc4   :  { %v529_v23 = vpop.f32.mrf.mxu2 }
  0xc5   :  { %v569_v27 = vadd.f32 %v529_v23, %v353_v22 }
  0xc6   :  { %v354_v26 = vpop.f32.mrf.mxu1 }
  0xc7   :  { %v722_v24 = vpop.f32.mrf.mxu3  ;;  %v355_v30 = vadd.f32 %v354_v26, %v209_v25 }
  0xc8   :  { %v762_v28 = vadd.f32 %v722_v24, %v569_v27 }
  0xca   :  { %v782_v35 = vadd.f32 %v1711_v29, %v762_v28 }
  0xcc   :  { %v531_v31 = vpop.f32.mrf.mxu2  ;;  %v798_v39 = vmax.f32 %v782_v35, 0.0 }
  0xcd   :  { %v570_v32 = vadd.f32 %v531_v31, %v355_v30 }
  0xce   :  { %v357_v34 = vpop.f32.mrf.mxu1 }
  0xcf   :  { %v724_v33 = vpop.f32.mrf.mxu3  ;;  %v358_v41 = vadd.f32 %v357_v34, %v212_v37 }
  0xd0   :  { %v763_v36 = vadd.f32 %v724_v33, %v570_v32 }
  0xd2   :  { %v783_v38 = vadd.f32 %v1711_v29, %v763_v36 }
  0xd4   :  { %v799_v40 = vmax.f32 %v783_v38, 0.0  ;;  %v534_v42 = vpop.f32.mrf.mxu2 }
  0xd5   :  { %v571_v46 = vadd.f32 %v534_v42, %v358_v41 }
  0xd6   :  { %v814_v44 = vpack.c.bf16 %v799_v40, %v798_v39  ;;  %v359_v45 = vpop.f32.mrf.mxu1 }
  0xd7   :  { %v727_v43 = vpop.f32.mrf.mxu3  ;;  %v360_v49 = vadd.f32 %v359_v45, %v214_v47 }
  0xd8   :  { %898 = vmatmul.bf16.vlgmr.msrb.gmra.mxu0 %v814_v44  ;;  %v764_v48 = vadd.f32 %v727_v43, %v571_v46 }
  0xda   :  { %v784_v54 = vadd.f32 %v1711_v29, %v764_v48 }
  0xdc   :  { %v536_v50 = vpop.f32.mrf.mxu2  ;;  %v800_v57 = vmax.f32 %v784_v54, 0.0 }
  0xdd   :  { %v572_v51 = vadd.f32 %v536_v50, %v360_v49 }
  0xde   :  { %v362_v53 = vpop.f32.mrf.mxu1 }
  0xdf   :  { %v729_v52 = vpop.f32.mrf.mxu3  ;;  %v363_v60 = vadd.f32 %v362_v53, %v1654_v62 }
  0xe0   :  { %v765_v55 = vadd.f32 %v729_v52, %v572_v51 }
  0xe2   :  { %v785_v56 = vadd.f32 %v1711_v29, %v765_v55 }
  0xe4   :  { %v801_v58 = vmax.f32 %v785_v56, 0.0  ;;  %v539_v59 = vpop.f32.mrf.mxu2 }
  0xe5   :  { %v573_v1 = vadd.f32 %v539_v59, %v363_v60 }
  0xe6   :  { %v815_v63 = vpack.c.bf16 %v801_v58, %v800_v57  ;;  %v364_v0 = vpop.f32.mrf.mxu1 }
  0xe7   :  { %v732_v61 = vpop.f32.mrf.mxu3  ;;  %v365_v6 = vadd.f32 %v364_v0, %v1669_v4 }
  0xe8   :  { %903 = vmatmul.bf16.gmra.mxu0 %v815_v63  ;;  %v766_v5 = vadd.f32 %v732_v61, %v573_v1 }
  0xea   :  { %v786_v14 = vadd.f32 %v1711_v29, %v766_v5 }
  0xec   :  { %v541_v9 = vpop.f32.mrf.mxu2  ;;  %v802_v22 = vmax.f32 %v786_v14, 0.0 }
  0xed   :  { %v574_v10 = vadd.f32 %v541_v9, %v365_v6 }
  0xee   :  { %v367_v13 = vpop.f32.mrf.mxu1 }
  0xef   :  { %v734_v12 = vpop.f32.mrf.mxu3  ;;  %v368_v24 = vadd.f32 %v367_v13, %v1687_v11 }
  0xf0   :  { %v767_v18 = vadd.f32 %v734_v12, %v574_v10 }
  0xf2   :  { %v787_v21 = vadd.f32 %v1711_v29, %v767_v18 }
  0xf4   :  { %v803_v23 = vmax.f32 %v787_v21, 0.0  ;;  %v544_v62 = vpop.f32.mrf.mxu2 }
  0xf5   :  { %v575_v28 = vadd.f32 %v544_v62, %v368_v24 }
  0xf6   :  { %v816_v26 = vpack.c.bf16 %v803_v23, %v802_v22  ;;  %v369_v27 = vpop.f32.mrf.mxu1 }
  0xf7   :  { %v737_v25 = vpop.f32.mrf.mxu3  ;;  %v370_v30 = vadd.f32 %v369_v27, %v1702_v17 }
  0xf8   :  { %908 = vmatmul.bf16.gmra.mxu0 %v816_v26  ;;  %v768_v4 = vadd.f32 %v737_v25, %v575_v28 }
  0xfa   :  { %v788_v35 = vadd.f32 %v1711_v29, %v768_v4 }
  0xfc   :  { %v546_v31 = vpop.f32.mrf.mxu2  ;;  %v804_v38 = vmax.f32 %v788_v35, 0.0 }
  0xfd   :  { %v576_v32 = vadd.f32 %v546_v31, %v370_v30 }
  0xfe   :  { %v372_v34 = vpop.f32.mrf.mxu1 }
  0xff   :  { %v739_v33 = vpop.f32.mrf.mxu3  ;;  %v373_v40 = vadd.f32 %v372_v34, %v1665_v2 }
 0x100   :  { %v769_v36 = vadd.f32 %v739_v33, %v576_v32 }
 0x102   :  { %v789_v37 = vadd.f32 %v1711_v29, %v769_v36 }
 0x104   :  { %v805_v39 = vmax.f32 %v789_v37, 0.0  ;;  %v549_v11 = vpop.f32.mrf.mxu2 }
 0x105   :  { %v577_v44 = vadd.f32 %v549_v11, %v373_v40 }
 0x106   :  { %v817_v42 = vpack.c.bf16 %v805_v39, %v804_v38  ;;  %v374_v43 = vpop.f32.mrf.mxu1 }
 0x107   :  { %v742_v41 = vpop.f32.mrf.mxu3  ;;  %v375_v45 = vadd.f32 %v374_v43, %v1677_v7 }
 0x108   :  { %913 = vmatmul.bf16.gmra.mxu0 %v817_v42  ;;  %v770_v17 = vadd.f32 %v742_v41, %v577_v44 }
 0x10a   :  { %v790_v50 = vadd.f32 %v1711_v29, %v770_v17 }
 0x10c   :  { %v551_v46 = vpop.f32.mrf.mxu2  ;;  %v806_v53 = vmax.f32 %v790_v50, 0.0 }
 0x10d   :  { %v578_v47 = vadd.f32 %v551_v46, %v375_v45  ;;  %v1407_v45 = vld [vmem:[%s1778_s10] ss:$0 sm:$0xff] }
 0x10e   :  { %v377_v49 = vpop.f32.mrf.mxu1 }
 0x10f   :  { %v744_v48 = vpop.f32.mrf.mxu3  ;;  %v378_v55 = vadd.f32 %v377_v49, %v1698_v15 }
 0x110   :  { %v771_v51 = vadd.f32 %v744_v48, %v578_v47 }
 0x112   :  { %v791_v52 = vadd.f32 %v1711_v29, %v771_v51 }
 0x114   :  { %v807_v54 = vmax.f32 %v791_v52, 0.0  ;;  %v554_v2 = vpop.f32.mrf.mxu2 }
 0x115   :  { %v579_v59 = vadd.f32 %v554_v2, %v378_v55 }
 0x116   :  { %v818_v57 = vpack.c.bf16 %v807_v54, %v806_v53  ;;  %v379_v58 = vpop.f32.mrf.mxu1 }
 0x117   :  { %v747_v56 = vpop.f32.mrf.mxu3  ;;  %v380_v60 = vadd.f32 %v379_v58, %v1704_v19 }
 0x118   :  { %918 = vmatmul.bf16.gmra.mxu0 %v818_v57  ;;  %v772_v7 = vadd.f32 %v747_v56, %v579_v59 }
 0x11a   :  { %v792_v5 = vadd.f32 %v1711_v29, %v772_v7 }
 0x11c   :  { %v556_v61 = vpop.f32.mrf.mxu2  ;;  %v808_v10 = vmax.f32 %v792_v5, 0.0 }
 0x11d   :  { %v580_v63 = vadd.f32 %v556_v61, %v380_v60 }
 0x11e   :  { %v382_v1 = vpop.f32.mrf.mxu1 }
 0x11f   :  { %v749_v0 = vpop.f32.mrf.mxu3  ;;  %v383_v13 = vadd.f32 %v382_v1, %v1667_v3 }
 0x120   :  { %v773_v6 = vadd.f32 %v749_v0, %v580_v63 }
 0x122   :  { %v793_v9 = vadd.f32 %v1711_v29, %v773_v6 }
 0x124   :  { %v809_v12 = vmax.f32 %v793_v9, 0.0  ;;  %v559_v15 = vpop.f32.mrf.mxu2 }
 0x125   :  { %v581_v22 = vadd.f32 %v559_v15, %v383_v13 }
 0x126   :  { %v819_v18 = vpack.c.bf16 %v809_v12, %v808_v10  ;;  %v384_v21 = vpop.f32.mrf.mxu1 }
 0x127   :  { %v752_v14 = vpop.f32.mrf.mxu3  ;;  %v385_v23 = vadd.f32 %v384_v21, %v1679_v8 }
 0x128   :  { %923 = vmatmul.bf16.gmra.mxu0 %v819_v18  ;;  %v774_v19 = vadd.f32 %v752_v14, %v581_v22 }
 0x12a   :  { %v794_v27 = vadd.f32 %v1711_v29, %v774_v19 }
 0x12c   :  { %v561_v62 = vpop.f32.mrf.mxu2  ;;  %v810_v30 = vmax.f32 %v794_v27, 0.0 }
 0x12d   :  { %v582_v24 = vadd.f32 %v561_v62, %v385_v23 }
 0x12e   :  { %v387_v26 = vpop.f32.mrf.mxu1 }
 0x12f   :  { %v754_v25 = vpop.f32.mrf.mxu3  ;;  %v388_v32 = vadd.f32 %v387_v26, %v1700_v16 }
 0x130   :  { %v775_v28 = vadd.f32 %v754_v25, %v582_v24 }
 0x132   :  { %v795_v4 = vadd.f32 %v1711_v29, %v775_v28 }
 0x134   :  { %v811_v31 = vmax.f32 %v795_v4, 0.0  ;;  %v564_v3 = vpop.f32.mrf.mxu2 }
 0x135   :  { %v583_v35 = vadd.f32 %v564_v3, %v388_v32 }
 0x136   :  { %v820_v34 = vpack.c.bf16 %v811_v31, %v810_v30  ;;  %v389_v36 = vpop.f32.mrf.mxu1 }
 0x137   :  { %v757_v33 = vpop.f32.mrf.mxu3  ;;  %v390_v37 = vadd.f32 %v389_v36, %v1706_v20 }
 0x138   :  { %928 = vmatmul.bf16.gmra.mxu0 %v820_v34  ;;  %v776_v8 = vadd.f32 %v757_v33, %v583_v35 }
 0x13a   :  { %v796_v40 = vadd.f32 %v1711_v29, %v776_v8 }
 0x13c   :  { %v566_v38 = vpop.f32.mrf.mxu2  ;;  %v812_v43 = vmax.f32 %v796_v40, 0.0 }
 0x13d   :  { %v584_v39 = vadd.f32 %v566_v38, %v390_v37 }
 0x13f   :  { %v759_v11 = vpop.f32.mrf.mxu3 }
 0x140   :  { %v777_v41 = vadd.f32 %v759_v11, %v584_v39 }
 0x142   :  { %v797_v42 = vadd.f32 %v1711_v29, %v777_v41 }
 0x144   :  { %v813_v44 = vmax.f32 %v797_v42, 0.0 }
 0x146   :  { %v821_v17 = vpack.c.bf16 %v813_v44, %v812_v43 }
 0x148   :  { %933 = vmatmul.bf16.gmra.mxu0 %v821_v17 }
 0x155   :  { %v899_v16 = vpop.f32.mrf.mxu0 }
 0x156   :  { %v900_v47 = vadd.f32 %v1407_v45, %v899_v16 }
 0x15d   :  { %v901_v46 = vpop.f32.mrf.mxu0 }
 0x15e   :  { %v902_v20 = vadd.f32 %v1407_v45, %v901_v46 }
 0x160   :  { %v1338_v48 = vpack.c.bf16 %v902_v20, %v900_v47 }
 0x162   :  { %1339 = vst [vmem:[%s1779_s11] sm:$0xff] %v1338_v48  }
 0x165   :  { %v904_v49 = vpop.f32.mrf.mxu0 }
 0x166   :  { %v905_v29 = vadd.f32 %v1407_v45, %v904_v49 }
 0x16d   :  { %v906_v50 = vpop.f32.mrf.mxu0 }
 0x16e   :  { %v907_v51 = vadd.f32 %v1407_v45, %v906_v50 }
 0x170   :  { %v1343_v52 = vpack.c.bf16 %v907_v51, %v905_v29 }
 0x172   :  { %1375 = vst [vmem:[%s1779_s11 + $0x8] sm:$0xff] %v1343_v52  }
 0x175   :  { %v909_v53 = vpop.f32.mrf.mxu0 }
 0x176   :  { %v910_v2 = vadd.f32 %v1407_v45, %v909_v53 }
 0x17d   :  { %v911_v54 = vpop.f32.mrf.mxu0 }
 0x17e   :  { %v912_v55 = vadd.f32 %v1407_v45, %v911_v54 }
 0x180   :  { %v1348_v56 = vpack.c.bf16 %v912_v55, %v910_v2 }
 0x182   :  { %1376 = vst [vmem:[%s1779_s11 + $0x10] sm:$0xff] %v1348_v56  }
 0x185   :  { %v914_v57 = vpop.f32.mrf.mxu0 }
 0x186   :  { %v915_v59 = vadd.f32 %v1407_v45, %v914_v57 }
 0x18d   :  { %v916_v58 = vpop.f32.mrf.mxu0 }
 0x18e   :  { %v917_v7 = vadd.f32 %v1407_v45, %v916_v58 }
 0x190   :  { %v1353_v60 = vpack.c.bf16 %v917_v7, %v915_v59 }
 0x192   :  { %1377 = vst [vmem:[%s1779_s11 + $0x18] sm:$0xff] %v1353_v60  }
 0x195   :  { %v919_v61 = vpop.f32.mrf.mxu0 }
 0x196   :  { %v920_v0 = vadd.f32 %v1407_v45, %v919_v61 }
 0x19d   :  { %v921_v63 = vpop.f32.mrf.mxu0 }
 0x19e   :  { %v922_v1 = vadd.f32 %v1407_v45, %v921_v63 }
 0x1a0   :  { %v1358_v5 = vpack.c.bf16 %v922_v1, %v920_v0 }
 0x1a2   :  { %1378 = vst [vmem:[%s1779_s11 + $0x20] sm:$0xff] %v1358_v5  }
 0x1a5   :  { %v924_v6 = vpop.f32.mrf.mxu0 }
 0x1a6   :  { %v925_v10 = vadd.f32 %v1407_v45, %v924_v6 }
 0x1ad   :  { %v926_v9 = vpop.f32.mrf.mxu0 }
 0x1ae   :  { %v927_v12 = vadd.f32 %v1407_v45, %v926_v9 }
 0x1b0   :  { %v1363_v15 = vpack.c.bf16 %v927_v12, %v925_v10 }
 0x1b2   :  { %1379 = vst [vmem:[%s1779_s11 + $0x28] sm:$0xff] %v1363_v15  }
 0x1b5   :  { %v929_v13 = vpop.f32.mrf.mxu0 }
 0x1b6   :  { %v930_v18 = vadd.f32 %v1407_v45, %v929_v13 }
 0x1bd   :  { %v931_v14 = vpop.f32.mrf.mxu0 }
 0x1be   :  { %v932_v21 = vadd.f32 %v1407_v45, %v931_v14 }
 0x1c0   :  { %v1368_v22 = vpack.c.bf16 %v932_v21, %v930_v18 }
 0x1c2   :  { %1380 = vst [vmem:[%s1779_s11 + $0x30] sm:$0xff] %v1368_v22  }
 0x1c5   :  { %v934_v19 = vpop.f32.mrf.mxu0 }
 0x1c6   :  { %v935_v62 = vadd.f32 %v1407_v45, %v934_v19 }
 0x1cd   :  { %v936_v23 = vpop.f32.mrf.mxu0 }
 0x1ce   :  { %v937_v24 = vadd.f32 %v1407_v45, %v936_v23 }
 0x1d0   :  { %v1373_v25 = vpack.c.bf16 %v937_v24, %v935_v62 }
 0x1d2   :  { %1381 = vst [vmem:[%s1779_s11 + $0x38] sm:$0xff] %v1373_v25  }

// kernel: mrfs_forward.12
= control target key start
LH: loop header
LB: loop body
LE: loop exit
PB: predicated region body
PF: predicated region fallthrough
CT: control target
= control target key end

     0   :  { %s7006_s1 = inlined_call_operand.vmem [shape: bf16[6144,128], index: 1, kind: input, shape index: {}]   ;;  %s7007_s0 = inlined_call_operand.vmem [shape: bf16[2,6144], index: 0, kind: input, shape index: {}]   ;;  %s7008_s2 = inlined_call_operand.vmem [shape: f32[1,128], index: 2, kind: input, shape index: {}]   ;;  %s7009_s3 = inlined_call_operand.vmem [shape: bf16[2,128], index: 3, kind: output, shape index: {}]  }
   0x1   :  { %v5378_v0 = vld [vmem:[%s7006_s1 + $0x38] sm:$0xff]  ;;  %v5377_v4 = vld [vmem:[%s7006_s1 + $0x30] sm:$0xff]  ;;  %v5376_v8 = vld [vmem:[%s7006_s1 + $0x28] sm:$0xff] }
   0x2   :  { %v5386_v1 = vld [vmem:[%s7006_s1 + $0x78] sm:$0xff]  ;;  %3204 = vmatpush.bf16.msra.mxu0 %v5378_v0  ;;  %v5385_v5 = vld [vmem:[%s7006_s1 + $0x70] sm:$0xff]  ;;  %v5384_v9 = vld [vmem:[%s7006_s1 + $0x68] sm:$0xff] }
   0x3   :  { %v5394_v2 = vld [vmem:[%s7006_s1 + $0xb8] sm:$0xff]  ;;  %3217 = vmatpush.bf16.msra.mxu1 %v5386_v1  ;;  %v5393_v6 = vld [vmem:[%s7006_s1 + $0xb0] sm:$0xff]  ;;  %v5392_v10 = vld [vmem:[%s7006_s1 + $0xa8] sm:$0xff] }
   0x4   :  { %v5402_v3 = vld [vmem:[%s7006_s1 + $0xf8] sm:$0xff]  ;;  %3230 = vmatpush.bf16.msra.mxu2 %v5394_v2  ;;  %v5401_v7 = vld [vmem:[%s7006_s1 + $0xf0] sm:$0xff]  ;;  %v5400_v11 = vld [vmem:[%s7006_s1 + $0xe8] sm:$0xff] }
   0x5   :  { %3243 = vmatpush.bf16.msra.mxu3 %v5402_v3  ;;  %v5375_v12 = vld [vmem:[%s7006_s1 + $0x20] sm:$0xff]  ;;  %v5374_v16 = vld [vmem:[%s7006_s1 + $0x18] sm:$0xff]  ;;  %v5373_v21 = vld [vmem:[%s7006_s1 + $0x10] sm:$0xff] }
   0x6   :  { %3205 = vmatpush.bf16.msra.mxu0 %v5377_v4  ;;  %v5383_v13 = vld [vmem:[%s7006_s1 + $0x60] sm:$0xff]  ;;  %v5382_v17 = vld [vmem:[%s7006_s1 + $0x58] sm:$0xff]  ;;  %v5381_v22 = vld [vmem:[%s7006_s1 + $0x50] sm:$0xff] }
   0x7   :  { %3218 = vmatpush.bf16.msra.mxu1 %v5385_v5  ;;  %v5391_v14 = vld [vmem:[%s7006_s1 + $0xa0] sm:$0xff]  ;;  %v5390_v18 = vld [vmem:[%s7006_s1 + $0x98] sm:$0xff]  ;;  %v5389_v23 = vld [vmem:[%s7006_s1 + $0x90] sm:$0xff] }
   0x8   :  { %3231 = vmatpush.bf16.msra.mxu2 %v5393_v6  ;;  %v5399_v15 = vld [vmem:[%s7006_s1 + $0xe0] sm:$0xff]  ;;  %v5398_v19 = vld [vmem:[%s7006_s1 + $0xd8] sm:$0xff]  ;;  %v5397_v24 = vld [vmem:[%s7006_s1 + $0xd0] sm:$0xff] }
   0x9   :  { %3244 = vmatpush.bf16.msra.mxu3 %v5401_v7  ;;  %v14_v20 = vld [vmem:[%s7007_s0] sm:$0xff]  ;;  %v5372_v25 = vld [vmem:[%s7006_s1 + $0x8] sm:$0xff]  ;;  %v5410_v33 = vld [vmem:[%s7006_s1 + $0x138] sm:$0xff] }
   0xa   :  { %3206 = vmatpush.bf16.msra.mxu0 %v5376_v8  ;;  %793 = vst [vmem:[#allocation1] ss:$9 sm:$0xff] %v14_v20  ;;  %v5380_v26 = vld [vmem:[%s7006_s1 + $0x48] sm:$0xff]  ;;  %v5371_v29 = vld [vmem:[%s7006_s1] sm:$0xff]  ;;  %v5418_v34 = vld [vmem:[%s7006_s1 + $0x178] sm:$0xff] }
   0xb   :  { %3219 = vmatpush.bf16.msra.mxu1 %v5384_v9  ;;  %v5388_v27 = vld [vmem:[%s7006_s1 + $0x88] sm:$0xff]  ;;  %v5379_v30 = vld [vmem:[%s7006_s1 + $0x40] sm:$0xff]  ;;  %v5426_v35 = vld [vmem:[%s7006_s1 + $0x1b8] sm:$0xff] }
   0xc   :  { %3232 = vmatpush.bf16.msra.mxu2 %v5392_v10  ;;  %v5396_v28 = vld [vmem:[%s7006_s1 + $0xc8] sm:$0xff]  ;;  %v5387_v31 = vld [vmem:[%s7006_s1 + $0x80] sm:$0xff]  ;;  %v5434_v36 = vld [vmem:[%s7006_s1 + $0x1f8] sm:$0xff] }
   0xd   :  { %3245 = vmatpush.bf16.msra.mxu3 %v5400_v11  ;;  %v5395_v32 = vld [vmem:[%s7006_s1 + $0xc0] sm:$0xff]  ;;  %v5409_v37 = vld [vmem:[%s7006_s1 + $0x130] sm:$0xff]  ;;  %v5408_v45 = vld [vmem:[%s7006_s1 + $0x128] sm:$0xff] }
   0xe   :  { %3207 = vmatpush.bf16.msra.mxu0 %v5375_v12  ;;  %v5417_v40 = vld [vmem:[%s7006_s1 + $0x170] sm:$0xff]  ;;  %v5416_v46 = vld [vmem:[%s7006_s1 + $0x168] sm:$0xff]  ;;  %v5407_v49 = vld [vmem:[%s7006_s1 + $0x120] sm:$0xff] }
   0xf   :  { %3220 = vmatpush.bf16.msra.mxu1 %v5383_v13  ;;  %v5425_v43 = vld [vmem:[%s7006_s1 + $0x1b0] sm:$0xff]  ;;  %v5424_v47 = vld [vmem:[%s7006_s1 + $0x1a8] sm:$0xff]  ;;  %v5415_v50 = vld [vmem:[%s7006_s1 + $0x160] sm:$0xff] }
  0x10   :  { %3233 = vmatpush.bf16.msra.mxu2 %v5391_v14  ;;  %v5433_v44 = vld [vmem:[%s7006_s1 + $0x1f0] sm:$0xff]  ;;  %v5432_v48 = vld [vmem:[%s7006_s1 + $0x1e8] sm:$0xff]  ;;  %v5423_v56 = vld [vmem:[%s7006_s1 + $0x1a0] sm:$0xff] }
  0x11   :  { %3246 = vmatpush.bf16.msra.mxu3 %v5399_v15  ;;  %v796_v38 = vld [vmem:[#allocation1 + $0x12] sm:$0xff]  ;;  %v794_v39 = vld [vmem:[#allocation1] sm:$0xff]  ;;  %v795_v42 = vld [vmem:[#allocation1 + $0x9] sm:$0xff] }
  0x12   :  { %3208 = vmatpush.bf16.msra.mxu0 %v5374_v16  ;;  %v797_v41 = vld [vmem:[#allocation1 + $0x1b] sm:$0xff]  ;;  %v15_v52 = vld [vmem:[%s7007_s0 + $0x8] sm:$0xff]  ;;  %v5405_v62 = vld [vmem:[%s7006_s1 + $0x110] sm:$0xff] }
  0x13   :  { %3221 = vmatpush.bf16.msra.mxu1 %v5382_v17  ;;  %v800_v51 = vld [vmem:[#allocation1 + $0x36] sm:$0xff]  ;;  %v798_v53 = vld [vmem:[#allocation1 + $0x24] sm:$0xff]  ;;  %v799_v55 = vld [vmem:[#allocation1 + $0x2d] sm:$0xff] }
  0x14   :  { %3234 = vmatpush.bf16.msra.mxu2 %v5390_v18  ;;  %v801_v54 = vld [vmem:[#allocation1 + $0x3f] sm:$0xff]  ;;  %v5413_v63 = vld [vmem:[%s7006_s1 + $0x150] sm:$0xff]  ;;  %v5404_v2 = vld [vmem:[%s7006_s1 + $0x108] sm:$0xff] }
  0x15   :  { %3247 = vmatpush.bf16.msra.mxu3 %v5398_v19  ;;  %v5431_v57 = vld [vmem:[%s7006_s1 + $0x1e0] sm:$0xff]  ;;  %803 = vst [vmem:[#allocation1] ss:$9 sm:$0xff] %v15_v52  ;;  %v5406_v58 = vld [vmem:[%s7006_s1 + $0x118] sm:$0xff]  ;;  %v5421_v0 = vld [vmem:[%s7006_s1 + $0x190] sm:$0xff] }
  0x16   :  { %3209 = vmatpush.bf16.msra.mxu0 %v5373_v21  ;;  %v5414_v59 = vld [vmem:[%s7006_s1 + $0x158] sm:$0xff]  ;;  %v5429_v1 = vld [vmem:[%s7006_s1 + $0x1d0] sm:$0xff]  ;;  %v5412_v3 = vld [vmem:[%s7006_s1 + $0x148] sm:$0xff] }
  0x17   :  { %3222 = vmatpush.bf16.msra.mxu1 %v5381_v22  ;;  %v5422_v60 = vld [vmem:[%s7006_s1 + $0x198] sm:$0xff]  ;;  %v5420_v4 = vld [vmem:[%s7006_s1 + $0x188] sm:$0xff]  ;;  %v5403_v6 = vld [vmem:[%s7006_s1 + $0x100] sm:$0xff] }
  0x18   :  { %3235 = vmatpush.bf16.msra.mxu2 %v5389_v23  ;;  %v5430_v61 = vld [vmem:[%s7006_s1 + $0x1d8] sm:$0xff]  ;;  %v5428_v5 = vld [vmem:[%s7006_s1 + $0x1c8] sm:$0xff]  ;;  %v5411_v7 = vld [vmem:[%s7006_s1 + $0x140] sm:$0xff] }
  0x19   :  { %3248 = vmatpush.bf16.msra.mxu3 %v5397_v24  ;;  %v5419_v8 = vld [vmem:[%s7006_s1 + $0x180] sm:$0xff]  ;;  %v5442_v10 = vld [vmem:[%s7006_s1 + $0x238] sm:$0xff]  ;;  %v5441_v14 = vld [vmem:[%s7006_s1 + $0x230] sm:$0xff] }
  0x1a   :  { %3210 = vmatpush.bf16.msra.mxu0 %v5372_v25  ;;  %v5427_v9 = vld [vmem:[%s7006_s1 + $0x1c0] sm:$0xff]  ;;  %v5450_v11 = vld [vmem:[%s7006_s1 + $0x278] sm:$0xff]  ;;  %v5449_v15 = vld [vmem:[%s7006_s1 + $0x270] sm:$0xff] }
  0x1b   :  { %3223 = vmatpush.bf16.msra.mxu1 %v5380_v26  ;;  %v5458_v12 = vld [vmem:[%s7006_s1 + $0x2b8] sm:$0xff]  ;;  %v5457_v16 = vld [vmem:[%s7006_s1 + $0x2b0] sm:$0xff]  ;;  %v5440_v18 = vld [vmem:[%s7006_s1 + $0x228] sm:$0xff] }
  0x1c   :  { %3236 = vmatpush.bf16.msra.mxu2 %v5388_v27  ;;  %v5466_v13 = vld [vmem:[%s7006_s1 + $0x2f8] sm:$0xff]  ;;  %v5465_v17 = vld [vmem:[%s7006_s1 + $0x2f0] sm:$0xff]  ;;  %v5448_v19 = vld [vmem:[%s7006_s1 + $0x268] sm:$0xff] }
  0x1d   :  { %3249 = vmatpush.bf16.msra.mxu3 %v5396_v28  ;;  %v5456_v20 = vld [vmem:[%s7006_s1 + $0x2a8] sm:$0xff]  ;;  %v5439_v22 = vld [vmem:[%s7006_s1 + $0x220] sm:$0xff]  ;;  %v5438_v26 = vld [vmem:[%s7006_s1 + $0x218] sm:$0xff] }
  0x1e   :  { %3211 = vmatpush.bf16.msra.mxu0 %v5371_v29  ;;  %v5464_v21 = vld [vmem:[%s7006_s1 + $0x2e8] sm:$0xff]  ;;  %v5447_v23 = vld [vmem:[%s7006_s1 + $0x260] sm:$0xff]  ;;  %v5446_v27 = vld [vmem:[%s7006_s1 + $0x258] sm:$0xff] }
  0x1f   :  { %3224 = vmatpush.bf16.msra.mxu1 %v5379_v30  ;;  %v5455_v24 = vld [vmem:[%s7006_s1 + $0x2a0] sm:$0xff]  ;;  %v5454_v28 = vld [vmem:[%s7006_s1 + $0x298] sm:$0xff]  ;;  %v5437_v30 = vld [vmem:[%s7006_s1 + $0x210] sm:$0xff] }
  0x20   :  { %3237 = vmatpush.bf16.msra.mxu2 %v5387_v31  ;;  %v5463_v25 = vld [vmem:[%s7006_s1 + $0x2e0] sm:$0xff]  ;;  %v5462_v29 = vld [vmem:[%s7006_s1 + $0x2d8] sm:$0xff]  ;;  %v5445_v31 = vld [vmem:[%s7006_s1 + $0x250] sm:$0xff] }
  0x21   :  { %3250 = vmatpush.bf16.msra.mxu3 %v5395_v32  ;;  %3212 = vmatmul.bf16.vlgmr.msra.gmra.mxu0 %v794_v39  ;;  %v5453_v32 = vld [vmem:[%s7006_s1 + $0x290] sm:$0xff]  ;;  %v5443_v39 = vld [vmem:[%s7006_s1 + $0x240] sm:$0xff] }
  0x22   :  { %3256 = vmatpush.bf16.msrb.mxu0 %v5410_v33  ;;  %3225 = vmatmul.bf16.vlgmr.msra.gmra.mxu1 %v795_v42  ;;  %v5461_v33 = vld [vmem:[%s7006_s1 + $0x2d0] sm:$0xff]  ;;  %v5474_v42 = vld [vmem:[%s7006_s1 + $0x338] sm:$0xff] }
  0x23   :  { %3269 = vmatpush.bf16.msrb.mxu1 %v5418_v34  ;;  %3238 = vmatmul.bf16.vlgmr.msra.gmra.mxu2 %v796_v38  ;;  %v5436_v34 = vld [vmem:[%s7006_s1 + $0x208] sm:$0xff]  ;;  %v5435_v38 = vld [vmem:[%s7006_s1 + $0x200] sm:$0xff]  ;;  %v5481_v52 = vld [vmem:[%s7006_s1 + $0x370] sm:$0xff] }
  0x24   :  { %3282 = vmatpush.bf16.msrb.mxu2 %v5426_v35  ;;  %3251 = vmatmul.bf16.vlgmr.msra.gmra.mxu3 %v797_v41  ;;  %v5444_v35 = vld [vmem:[%s7006_s1 + $0x248] sm:$0xff]  ;;  %v5459_v41 = vld [vmem:[%s7006_s1 + $0x2c0] sm:$0xff] }
  0x25   :  { %3295 = vmatpush.bf16.msrb.mxu3 %v5434_v36  ;;  %v5452_v36 = vld [vmem:[%s7006_s1 + $0x288] sm:$0xff] }
  0x26   :  { %3257 = vmatpush.bf16.msrb.mxu0 %v5409_v37  ;;  %v5460_v37 = vld [vmem:[%s7006_s1 + $0x2c8] sm:$0xff] }
  0x27   :  { %3270 = vmatpush.bf16.msrb.mxu1 %v5417_v40  ;;  %v5451_v40 = vld [vmem:[%s7006_s1 + $0x280] sm:$0xff] }
  0x28   :  { %3283 = vmatpush.bf16.msrb.mxu2 %v5425_v43  ;;  %v5482_v43 = vld [vmem:[%s7006_s1 + $0x378] sm:$0xff] }
  0x29   :  { %3296 = vmatpush.bf16.msrb.mxu3 %v5433_v44  ;;  %v16_v44 = vld [vmem:[%s7007_s0 + $0x10] sm:$0xff] }
  0x2a   :  { %3258 = vmatpush.bf16.msrb.mxu0 %v5408_v45  ;;  %v5490_v45 = vld [vmem:[%s7006_s1 + $0x3b8] sm:$0xff] }
  0x2b   :  { %3271 = vmatpush.bf16.msrb.mxu1 %v5416_v46  ;;  %v5498_v46 = vld [vmem:[%s7006_s1 + $0x3f8] sm:$0xff] }
  0x2c   :  { %3284 = vmatpush.bf16.msrb.mxu2 %v5424_v47  ;;  %v804_v47 = vld [vmem:[#allocation1] sm:$0xff] }
  0x2d   :  { %3297 = vmatpush.bf16.msrb.mxu3 %v5432_v48  ;;  %v806_v48 = vld [vmem:[#allocation1 + $0x12] sm:$0xff] }
  0x2e   :  { %3259 = vmatpush.bf16.msrb.mxu0 %v5407_v49  ;;  %v805_v49 = vld [vmem:[#allocation1 + $0x9] sm:$0xff] }
  0x2f   :  { %3272 = vmatpush.bf16.msrb.mxu1 %v5415_v50  ;;  %v807_v50 = vld [vmem:[#allocation1 + $0x1b] sm:$0xff] }
  0x30   :  { %3285 = vmatpush.bf16.msrb.mxu2 %v5423_v56  ;;  %v6099_v56 = vld [vmem:[#allocation1 + $0x36] sm:$0xff] }
  0x31   :  { %3298 = vmatpush.bf16.msrb.mxu3 %v5431_v57  ;;  %v6101_v57 = vld [vmem:[#allocation1 + $0x2d] sm:$0xff] }
  0x32   :  { %3260 = vmatpush.bf16.msrb.mxu0 %v5406_v58  ;;  %v6103_v58 = vld [vmem:[#allocation1 + $0x3f] sm:$0xff] }
  0x33   :  { %3273 = vmatpush.bf16.msrb.mxu1 %v5414_v59  ;;  %v5472_v59 = vld [vmem:[%s7006_s1 + $0x328] sm:$0xff] }
  0x34   :  { %3286 = vmatpush.bf16.msrb.mxu2 %v5422_v60  ;;  %v5480_v60 = vld [vmem:[%s7006_s1 + $0x368] sm:$0xff] }
  0x35   :  { %3299 = vmatpush.bf16.msrb.mxu3 %v5430_v61  ;;  %v5488_v61 = vld [vmem:[%s7006_s1 + $0x3a8] sm:$0xff] }
  0x36   :  { %3261 = vmatpush.bf16.msrb.mxu0 %v5405_v62  ;;  %v5496_v62 = vld [vmem:[%s7006_s1 + $0x3e8] sm:$0xff] }
  0x37   :  { %3274 = vmatpush.bf16.msrb.mxu1 %v5413_v63  ;;  %v5471_v63 = vld [vmem:[%s7006_s1 + $0x320] sm:$0xff] }
  0x38   :  { %3287 = vmatpush.bf16.msrb.mxu2 %v5421_v0  ;;  %v5479_v0 = vld [vmem:[%s7006_s1 + $0x360] sm:$0xff] }
  0x39   :  { %3300 = vmatpush.bf16.msrb.mxu3 %v5429_v1  ;;  %v5487_v1 = vld [vmem:[%s7006_s1 + $0x3a0] sm:$0xff] }
  0x3a   :  { %3262 = vmatpush.bf16.msrb.mxu0 %v5404_v2  ;;  %v5495_v2 = vld [vmem:[%s7006_s1 + $0x3e0] sm:$0xff] }
  0x3b   :  { %3275 = vmatpush.bf16.msrb.mxu1 %v5412_v3  ;;  %v5470_v3 = vld [vmem:[%s7006_s1 + $0x318] sm:$0xff] }
  0x3c   :  { %3288 = vmatpush.bf16.msrb.mxu2 %v5420_v4  ;;  %v5478_v4 = vld [vmem:[%s7006_s1 + $0x358] sm:$0xff] }
  0x3d   :  { %3301 = vmatpush.bf16.msrb.mxu3 %v5428_v5  ;;  %v5486_v5 = vld [vmem:[%s7006_s1 + $0x398] sm:$0xff] }
  0x3e   :  { %3263 = vmatpush.bf16.msrb.mxu0 %v5403_v6  ;;  %v5494_v6 = vld [vmem:[%s7006_s1 + $0x3d8] sm:$0xff] }
  0x3f   :  { %3276 = vmatpush.bf16.msrb.mxu1 %v5411_v7  ;;  %v5469_v7 = vld [vmem:[%s7006_s1 + $0x310] sm:$0xff] }
  0x40   :  { %3289 = vmatpush.bf16.msrb.mxu2 %v5419_v8  ;;  %v5477_v8 = vld [vmem:[%s7006_s1 + $0x350] sm:$0xff] }
  0x41   :  { %3302 = vmatpush.bf16.msrb.mxu3 %v5427_v9  ;;  %3264 = vmatmul.bf16.vlgmr.msrb.gmra.mxu0 %v798_v53  ;;  %v5489_v53 = vld [vmem:[%s7006_s1 + $0x3b0] sm:$0xff] }
  0x42   :  { %3308 = vmatpush.bf16.msra.mxu0 %v5442_v10  ;;  %3277 = vmatmul.bf16.vlgmr.msrb.gmra.mxu1 %v799_v55  ;;  %v6097_v55 = vld [vmem:[#allocation1 + $0x24] sm:$0xff]  ;;  %v5485_v9 = vld [vmem:[%s7006_s1 + $0x390] sm:$0xff] }
  0x43   :  { %3321 = vmatpush.bf16.msra.mxu1 %v5450_v11  ;;  %3290 = vmatmul.bf16.vlgmr.msrb.gmra.mxu2 %v800_v51  ;;  %v5473_v51 = vld [vmem:[%s7006_s1 + $0x330] sm:$0xff]  ;;  %813 = vst [vmem:[#allocation1] ss:$9 sm:$0xff] %v16_v44  ;;  %v5468_v11 = vld [vmem:[%s7006_s1 + $0x308] sm:$0xff] }
  0x44   :  { %3334 = vmatpush.bf16.msra.mxu2 %v5458_v12  ;;  %3303 = vmatmul.bf16.vlgmr.msrb.gmra.mxu3 %v801_v54  ;;  %v5497_v54 = vld [vmem:[%s7006_s1 + $0x3f0] sm:$0xff]  ;;  %v5476_v12 = vld [vmem:[%s7006_s1 + $0x348] sm:$0xff] }
  0x45   :  { %3347 = vmatpush.bf16.msra.mxu3 %v5466_v13  ;;  %v5493_v10 = vld [vmem:[%s7006_s1 + $0x3d0] sm:$0xff]  ;;  %v5484_v13 = vld [vmem:[%s7006_s1 + $0x388] sm:$0xff] }
  0x46   :  { %3309 = vmatpush.bf16.msra.mxu0 %v5441_v14  ;;  %v5492_v14 = vld [vmem:[%s7006_s1 + $0x3c8] sm:$0xff] }
  0x47   :  { %3322 = vmatpush.bf16.msra.mxu1 %v5449_v15  ;;  %v5467_v15 = vld [vmem:[%s7006_s1 + $0x300] sm:$0xff]  ;;  %v5508_v44 = vld [vmem:[%s7006_s1 + $0x448] sm:$0xff] }
  0x48   :  { %3335 = vmatpush.bf16.msra.mxu2 %v5457_v16  ;;  %v5475_v16 = vld [vmem:[%s7006_s1 + $0x340] sm:$0xff] }
  0x49   :  { %3348 = vmatpush.bf16.msra.mxu3 %v5465_v17  ;;  %v5483_v17 = vld [vmem:[%s7006_s1 + $0x380] sm:$0xff] }
  0x4a   :  { %3310 = vmatpush.bf16.msra.mxu0 %v5440_v18  ;;  %v5491_v18 = vld [vmem:[%s7006_s1 + $0x3c0] sm:$0xff] }
  0x4b   :  { %3323 = vmatpush.bf16.msra.mxu1 %v5448_v19  ;;  %v5506_v19 = vld [vmem:[%s7006_s1 + $0x438] sm:$0xff] }
  0x4c   :  { %3336 = vmatpush.bf16.msra.mxu2 %v5456_v20  ;;  %v5514_v20 = vld [vmem:[%s7006_s1 + $0x478] sm:$0xff] }
  0x4d   :  { %3349 = vmatpush.bf16.msra.mxu3 %v5464_v21  ;;  %v5522_v21 = vld [vmem:[%s7006_s1 + $0x4b8] sm:$0xff] }
  0x4e   :  { %3311 = vmatpush.bf16.msra.mxu0 %v5439_v22  ;;  %v5530_v22 = vld [vmem:[%s7006_s1 + $0x4f8] sm:$0xff] }
  0x4f   :  { %3324 = vmatpush.bf16.msra.mxu1 %v5447_v23  ;;  %v5505_v23 = vld [vmem:[%s7006_s1 + $0x430] sm:$0xff] }
  0x50   :  { %3337 = vmatpush.bf16.msra.mxu2 %v5455_v24  ;;  %v5513_v24 = vld [vmem:[%s7006_s1 + $0x470] sm:$0xff] }
  0x51   :  { %3350 = vmatpush.bf16.msra.mxu3 %v5463_v25  ;;  %v5521_v25 = vld [vmem:[%s7006_s1 + $0x4b0] sm:$0xff] }
  0x52   :  { %3312 = vmatpush.bf16.msra.mxu0 %v5438_v26  ;;  %v5529_v26 = vld [vmem:[%s7006_s1 + $0x4f0] sm:$0xff] }
  0x53   :  { %3325 = vmatpush.bf16.msra.mxu1 %v5446_v27  ;;  %v5504_v27 = vld [vmem:[%s7006_s1 + $0x428] sm:$0xff] }
  0x54   :  { %3338 = vmatpush.bf16.msra.mxu2 %v5454_v28  ;;  %v5512_v28 = vld [vmem:[%s7006_s1 + $0x468] sm:$0xff] }
  0x55   :  { %3351 = vmatpush.bf16.msra.mxu3 %v5462_v29  ;;  %v5520_v29 = vld [vmem:[%s7006_s1 + $0x4a8] sm:$0xff] }
  0x56   :  { %3313 = vmatpush.bf16.msra.mxu0 %v5437_v30  ;;  %v5528_v30 = vld [vmem:[%s7006_s1 + $0x4e8] sm:$0xff] }
  0x57   :  { %3326 = vmatpush.bf16.msra.mxu1 %v5445_v31  ;;  %v5503_v31 = vld [vmem:[%s7006_s1 + $0x420] sm:$0xff] }
  0x58   :  { %3339 = vmatpush.bf16.msra.mxu2 %v5453_v32  ;;  %v5511_v32 = vld [vmem:[%s7006_s1 + $0x460] sm:$0xff] }
  0x59   :  { %3352 = vmatpush.bf16.msra.mxu3 %v5461_v33  ;;  %v5519_v33 = vld [vmem:[%s7006_s1 + $0x4a0] sm:$0xff] }
  0x5a   :  { %3314 = vmatpush.bf16.msra.mxu0 %v5436_v34  ;;  %v5527_v34 = vld [vmem:[%s7006_s1 + $0x4e0] sm:$0xff] }
  0x5b   :  { %3327 = vmatpush.bf16.msra.mxu1 %v5444_v35  ;;  %v5502_v35 = vld [vmem:[%s7006_s1 + $0x418] sm:$0xff] }
  0x5c   :  { %3340 = vmatpush.bf16.msra.mxu2 %v5452_v36  ;;  %v5510_v36 = vld [vmem:[%s7006_s1 + $0x458] sm:$0xff] }
  0x5d   :  { %3353 = vmatpush.bf16.msra.mxu3 %v5460_v37  ;;  %v5518_v37 = vld [vmem:[%s7006_s1 + $0x498] sm:$0xff] }
  0x5e   :  { %3315 = vmatpush.bf16.msra.mxu0 %v5435_v38  ;;  %v5526_v38 = vld [vmem:[%s7006_s1 + $0x4d8] sm:$0xff] }
  0x5f   :  { %3328 = vmatpush.bf16.msra.mxu1 %v5443_v39  ;;  %v5501_v39 = vld [vmem:[%s7006_s1 + $0x410] sm:$0xff] }
  0x60   :  { %3341 = vmatpush.bf16.msra.mxu2 %v5451_v40  ;;  %v5509_v40 = vld [vmem:[%s7006_s1 + $0x450] sm:$0xff] }
  0x61   :  { %3354 = vmatpush.bf16.msra.mxu3 %v5459_v41  ;;  %3316 = vmatmul.bf16.vlgmr.msra.gmra.mxu0 %v804_v47  ;;  %v5517_v41 = vld [vmem:[%s7006_s1 + $0x490] sm:$0xff]  ;;  %v5499_v47 = vld [vmem:[%s7006_s1 + $0x400] sm:$0xff] }
  0x62   :  { %3360 = vmatpush.bf16.msrb.mxu0 %v5474_v42  ;;  %3329 = vmatmul.bf16.vlgmr.msra.gmra.mxu1 %v805_v49  ;;  %v5525_v42 = vld [vmem:[%s7006_s1 + $0x4d0] sm:$0xff]  ;;  %v5515_v49 = vld [vmem:[%s7006_s1 + $0x480] sm:$0xff] }
  0x63   :  { %3373 = vmatpush.bf16.msrb.mxu1 %v5482_v43  ;;  %3342 = vmatmul.bf16.vlgmr.msra.gmra.mxu2 %v806_v48  ;;  %v5500_v43 = vld [vmem:[%s7006_s1 + $0x408] sm:$0xff]  ;;  %v5507_v48 = vld [vmem:[%s7006_s1 + $0x440] sm:$0xff] }
  0x64   :  { %3386 = vmatpush.bf16.msrb.mxu2 %v5490_v45  ;;  %3355 = vmatmul.bf16.vlgmr.msra.gmra.mxu3 %v807_v50  ;;  %v5516_v45 = vld [vmem:[%s7006_s1 + $0x488] sm:$0xff]  ;;  %v5523_v50 = vld [vmem:[%s7006_s1 + $0x4c0] sm:$0xff] }
  0x65   :  { %3399 = vmatpush.bf16.msrb.mxu3 %v5498_v46  ;;  %v5524_v46 = vld [vmem:[%s7006_s1 + $0x4c8] sm:$0xff] }
  0x66   :  { %3361 = vmatpush.bf16.msrb.mxu0 %v5473_v51  ;;  %v5538_v51 = vld [vmem:[%s7006_s1 + $0x538] sm:$0xff] }
  0x67   :  { %3374 = vmatpush.bf16.msrb.mxu1 %v5481_v52  ;;  %v5546_v52 = vld [vmem:[%s7006_s1 + $0x578] sm:$0xff] }
  0x68   :  { %3387 = vmatpush.bf16.msrb.mxu2 %v5489_v53  ;;  %v17_v53 = vld [vmem:[%s7007_s0 + $0x18] sm:$0xff] }
  0x69   :  { %3400 = vmatpush.bf16.msrb.mxu3 %v5497_v54  ;;  %v5554_v54 = vld [vmem:[%s7006_s1 + $0x5b8] sm:$0xff] }
  0x6a   :  { %3362 = vmatpush.bf16.msrb.mxu0 %v5472_v59  ;;  %v817_v59 = vld [vmem:[#allocation1 + $0x1b] sm:$0xff] }
  0x6b   :  { %3375 = vmatpush.bf16.msrb.mxu1 %v5480_v60  ;;  %v5537_v60 = vld [vmem:[%s7006_s1 + $0x530] sm:$0xff] }
  0x6c   :  { %3388 = vmatpush.bf16.msrb.mxu2 %v5488_v61  ;;  %v5545_v61 = vld [vmem:[%s7006_s1 + $0x570] sm:$0xff] }
  0x6d   :  { %3401 = vmatpush.bf16.msrb.mxu3 %v5496_v62  ;;  %v5553_v62 = vld [vmem:[%s7006_s1 + $0x5b0] sm:$0xff] }
  0x6e   :  { %3363 = vmatpush.bf16.msrb.mxu0 %v5471_v63  ;;  %v5561_v63 = vld [vmem:[%s7006_s1 + $0x5f0] sm:$0xff] }
  0x6f   :  { %3376 = vmatpush.bf16.msrb.mxu1 %v5479_v0  ;;  %v6304_v0 = vld [vmem:[#allocation1 + $0x24] sm:$0xff] }
  0x70   :  { %3389 = vmatpush.bf16.msrb.mxu2 %v5487_v1  ;;  %v6306_v1 = vld [vmem:[#allocation1 + $0x36] sm:$0xff] }
  0x71   :  { %3402 = vmatpush.bf16.msrb.mxu3 %v5495_v2  ;;  %v6308_v2 = vld [vmem:[#allocation1 + $0x2d] sm:$0xff] }
  0x72   :  { %3364 = vmatpush.bf16.msrb.mxu0 %v5470_v3  ;;  %v6310_v3 = vld [vmem:[#allocation1 + $0x3f] sm:$0xff] }
  0x73   :  { %3377 = vmatpush.bf16.msrb.mxu1 %v5478_v4  ;;  %v5536_v4 = vld [vmem:[%s7006_s1 + $0x528] sm:$0xff] }
  0x74   :  { %3390 = vmatpush.bf16.msrb.mxu2 %v5486_v5  ;;  %v5544_v5 = vld [vmem:[%s7006_s1 + $0x568] sm:$0xff] }
  0x75   :  { %3403 = vmatpush.bf16.msrb.mxu3 %v5494_v6  ;;  %v5755_v6 = vld [vmem:[%s7008_s2] ss:$0 sm:$0xff] }
  0x76   :  { %3365 = vmatpush.bf16.msrb.mxu0 %v5469_v7  ;;  %v5552_v7 = vld [vmem:[%s7006_s1 + $0x5a8] sm:$0xff] }
  0x77   :  { %3378 = vmatpush.bf16.msrb.mxu1 %v5477_v8  ;;  %v5560_v8 = vld [vmem:[%s7006_s1 + $0x5e8] sm:$0xff] }
  0x78   :  { %3391 = vmatpush.bf16.msrb.mxu2 %v5485_v9 }
  0x79   :  { %3404 = vmatpush.bf16.msrb.mxu3 %v5493_v10  ;;  %v5535_v10 = vld [vmem:[%s7006_s1 + $0x520] sm:$0xff] }
  0x7a   :  { %3366 = vmatpush.bf16.msrb.mxu0 %v5468_v11  ;;  %v5543_v11 = vld [vmem:[%s7006_s1 + $0x560] sm:$0xff] }
  0x7b   :  { %3379 = vmatpush.bf16.msrb.mxu1 %v5476_v12 }
  0x7c   :  { %3392 = vmatpush.bf16.msrb.mxu2 %v5484_v13 }
  0x7d   :  { %3405 = vmatpush.bf16.msrb.mxu3 %v5492_v14  ;;  %v5551_v14 = vld [vmem:[%s7006_s1 + $0x5a0] sm:$0xff] }
  0x7e   :  { %3367 = vmatpush.bf16.msrb.mxu0 %v5467_v15  ;;  %v5559_v15 = vld [vmem:[%s7006_s1 + $0x5e0] sm:$0xff] }
  0x7f   :  { %3380 = vmatpush.bf16.msrb.mxu1 %v5475_v16 }
  0x80   :  { %3393 = vmatpush.bf16.msrb.mxu2 %v5483_v17  ;;  %v5534_v17 = vld [vmem:[%s7006_s1 + $0x518] sm:$0xff] }
  0x81   :  { %3406 = vmatpush.bf16.msrb.mxu3 %v5491_v18  ;;  %3368 = vmatmul.bf16.vlgmr.msrb.gmra.mxu0 %v6097_v55  ;;  %v5562_v55 = vld [vmem:[%s7006_s1 + $0x5f8] sm:$0xff] }
  0x82   :  { %3412 = vmatpush.bf16.msra.mxu0 %v5506_v19  ;;  %3381 = vmatmul.bf16.vlgmr.msrb.gmra.mxu1 %v6101_v57  ;;  %v816_v57 = vld [vmem:[#allocation1 + $0x12] sm:$0xff] }
  0x83   :  { %3425 = vmatpush.bf16.msra.mxu1 %v5514_v20  ;;  %3394 = vmatmul.bf16.vlgmr.msrb.gmra.mxu2 %v6099_v56  ;;  %v814_v56 = vld [vmem:[#allocation1] sm:$0xff]  ;;  %v5542_v18 = vld [vmem:[%s7006_s1 + $0x558] sm:$0xff] }
  0x84   :  { %3438 = vmatpush.bf16.msra.mxu2 %v5522_v21  ;;  %3407 = vmatmul.bf16.vlgmr.msrb.gmra.mxu3 %v6103_v58  ;;  %v815_v58 = vld [vmem:[#allocation1 + $0x9] sm:$0xff]  ;;  %v5550_v19 = vld [vmem:[%s7006_s1 + $0x598] sm:$0xff] }
  0x85   :  { %3451 = vmatpush.bf16.msra.mxu3 %v5530_v22  ;;  %823 = vst [vmem:[#allocation1] ss:$9 sm:$0xff] %v17_v53  ;;  %v5558_v20 = vld [vmem:[%s7006_s1 + $0x5d8] sm:$0xff] }
  0x86   :  { %3413 = vmatpush.bf16.msra.mxu0 %v5505_v23 }
  0x87   :  { %3426 = vmatpush.bf16.msra.mxu1 %v5513_v24 }
  0x88   :  { %3439 = vmatpush.bf16.msra.mxu2 %v5521_v25  ;;  %v5533_v25 = vld [vmem:[%s7006_s1 + $0x510] sm:$0xff] }
  0x89   :  { %3452 = vmatpush.bf16.msra.mxu3 %v5529_v26  ;;  %v5541_v26 = vld [vmem:[%s7006_s1 + $0x550] sm:$0xff] }
  0x8a   :  { %3414 = vmatpush.bf16.msra.mxu0 %v5504_v27 }
  0x8b   :  { %3427 = vmatpush.bf16.msra.mxu1 %v5512_v28 }
  0x8c   :  { %3440 = vmatpush.bf16.msra.mxu2 %v5520_v29  ;;  %v5549_v29 = vld [vmem:[%s7006_s1 + $0x590] sm:$0xff] }
  0x8d   :  { %3453 = vmatpush.bf16.msra.mxu3 %v5528_v30  ;;  %v5557_v30 = vld [vmem:[%s7006_s1 + $0x5d0] sm:$0xff] }
  0x8e   :  { %3415 = vmatpush.bf16.msra.mxu0 %v5503_v31  ;;  %v5532_v31 = vld [vmem:[%s7006_s1 + $0x508] sm:$0xff] }
  0x8f   :  { %3428 = vmatpush.bf16.msra.mxu1 %v5511_v32  ;;  %v5540_v32 = vld [vmem:[%s7006_s1 + $0x548] sm:$0xff] }
  0x90   :  { %3441 = vmatpush.bf16.msra.mxu2 %v5519_v33  ;;  %v5548_v33 = vld [vmem:[%s7006_s1 + $0x588] sm:$0xff] }
  0x91   :  { %3454 = vmatpush.bf16.msra.mxu3 %v5527_v34  ;;  %v5556_v34 = vld [vmem:[%s7006_s1 + $0x5c8] sm:$0xff] }
  0x92   :  { %3416 = vmatpush.bf16.msra.mxu0 %v5502_v35 }
  0x93   :  { %3429 = vmatpush.bf16.msra.mxu1 %v5510_v36 }
  0x94   :  { %3442 = vmatpush.bf16.msra.mxu2 %v5518_v37  ;;  %v5531_v37 = vld [vmem:[%s7006_s1 + $0x500] sm:$0xff] }
  0x95   :  { %3455 = vmatpush.bf16.msra.mxu3 %v5526_v38  ;;  %v5539_v38 = vld [vmem:[%s7006_s1 + $0x540] sm:$0xff] }
  0x96   :  { %3417 = vmatpush.bf16.msra.mxu0 %v5501_v39  ;;  %v5547_v39 = vld [vmem:[%s7006_s1 + $0x580] sm:$0xff] }
  0x97   :  { %3430 = vmatpush.bf16.msra.mxu1 %v5509_v40  ;;  %v5555_v40 = vld [vmem:[%s7006_s1 + $0x5c0] sm:$0xff] }
  0x98   :  { %3443 = vmatpush.bf16.msra.mxu2 %v5517_v41  ;;  %v5570_v41 = vld [vmem:[%s7006_s1 + $0x638] sm:$0xff] }
  0x99   :  { %3456 = vmatpush.bf16.msra.mxu3 %v5525_v42  ;;  %v5578_v42 = vld [vmem:[%s7006_s1 + $0x678] sm:$0xff] }
  0x9a   :  { %3418 = vmatpush.bf16.msra.mxu0 %v5500_v43  ;;  %v5586_v43 = vld [vmem:[%s7006_s1 + $0x6b8] sm:$0xff] }
  0x9b   :  { %3431 = vmatpush.bf16.msra.mxu1 %v5508_v44  ;;  %v5594_v44 = vld [vmem:[%s7006_s1 + $0x6f8] sm:$0xff] }
  0x9c   :  { %3444 = vmatpush.bf16.msra.mxu2 %v5516_v45  ;;  %v5569_v45 = vld [vmem:[%s7006_s1 + $0x630] sm:$0xff] }
  0x9d   :  { %3457 = vmatpush.bf16.msra.mxu3 %v5524_v46  ;;  %v5577_v46 = vld [vmem:[%s7006_s1 + $0x670] sm:$0xff] }
  0x9e   :  { %3419 = vmatpush.bf16.msra.mxu0 %v5499_v47  ;;  %v3213_v9 = vpop.f32.mrf.mxu0  ;;  %v5585_v47 = vld [vmem:[%s7006_s1 + $0x6b0] sm:$0xff] }
  0x9f   :  { %3432 = vmatpush.bf16.msra.mxu1 %v5507_v48  ;;  %v3214_v12 = vadd.f32 %v5755_v6, %v3213_v9  ;;  %v3226_v13 = vpop.f32.mrf.mxu1  ;;  %v5593_v48 = vld [vmem:[%s7006_s1 + $0x6f0] sm:$0xff] }
  0xa0   :  { %3445 = vmatpush.bf16.msra.mxu2 %v5515_v49  ;;  %v5568_v49 = vld [vmem:[%s7006_s1 + $0x628] sm:$0xff]  ;;  %v5573_v6 = vld [vmem:[%s7006_s1 + $0x650] sm:$0xff] }
  0xa1   :  { %3458 = vmatpush.bf16.msra.mxu3 %v5523_v50  ;;  %3420 = vmatmul.bf16.vlgmr.msra.gmra.mxu0 %v814_v56  ;;  %v3227_v16 = vadd.f32 %v3226_v13, %v3214_v12  ;;  %v5576_v50 = vld [vmem:[%s7006_s1 + $0x668] sm:$0xff]  ;;  %v5581_v9 = vld [vmem:[%s7006_s1 + $0x690] sm:$0xff] }
  0xa2   :  { %3464 = vmatpush.bf16.msrb.mxu0 %v5538_v51  ;;  %3433 = vmatmul.bf16.vlgmr.msra.gmra.mxu1 %v815_v58  ;;  %v5584_v51 = vld [vmem:[%s7006_s1 + $0x6a8] sm:$0xff]  ;;  %v5583_v58 = vld [vmem:[%s7006_s1 + $0x6a0] sm:$0xff] }
  0xa3   :  { %3477 = vmatpush.bf16.msrb.mxu1 %v5546_v52  ;;  %3446 = vmatmul.bf16.vlgmr.msra.gmra.mxu2 %v816_v57  ;;  %v5592_v52 = vld [vmem:[%s7006_s1 + $0x6e8] sm:$0xff] }
  0xa4   :  { %3490 = vmatpush.bf16.msrb.mxu2 %v5554_v54  ;;  %3459 = vmatmul.bf16.vlgmr.msra.gmra.mxu3 %v817_v59  ;;  %v5567_v54 = vld [vmem:[%s7006_s1 + $0x620] sm:$0xff]  ;;  %v5572_v12 = vld [vmem:[%s7006_s1 + $0x648] sm:$0xff] }
  0xa5   :  { %3503 = vmatpush.bf16.msrb.mxu3 %v5562_v55  ;;  %v5575_v55 = vld [vmem:[%s7006_s1 + $0x660] sm:$0xff]  ;;  %v5580_v13 = vld [vmem:[%s7006_s1 + $0x688] sm:$0xff] }
  0xa6   :  { %3465 = vmatpush.bf16.msrb.mxu0 %v5537_v60  ;;  %v3239_v21 = vpop.f32.mrf.mxu2  ;;  %v3215_v24 = vpop.f32.mrf.mxu0  ;;  %v5591_v59 = vld [vmem:[%s7006_s1 + $0x6e0] sm:$0xff] }
  0xa7   :  { %3478 = vmatpush.bf16.msrb.mxu1 %v5545_v61  ;;  %v3240_v22 = vadd.f32 %v3239_v21, %v3227_v16  ;;  %v3252_v23 = vpop.f32.mrf.mxu3  ;;  %v3228_v28 = vpop.f32.mrf.mxu1  ;;  %v5566_v61 = vld [vmem:[%s7006_s1 + $0x618] sm:$0xff] }
  0xa8   :  { %3491 = vmatpush.bf16.msrb.mxu2 %v5553_v62  ;;  %v5574_v62 = vld [vmem:[%s7006_s1 + $0x658] sm:$0xff]  ;;  %v825_v28 = vld [vmem:[#allocation1 + $0x9] sm:$0xff] }
  0xa9   :  { %3504 = vmatpush.bf16.msrb.mxu3 %v5561_v63  ;;  %v3253_v27 = vadd.f32 %v3252_v23, %v3240_v22  ;;  %v5582_v63 = vld [vmem:[%s7006_s1 + $0x698] sm:$0xff]  ;;  %v18_v23 = vld [vmem:[%s7007_s0 + $0x20] sm:$0xff] }
  0xaa   :  { %3466 = vmatpush.bf16.msrb.mxu0 %v5536_v4  ;;  %v5602_v21 = vld [vmem:[%s7006_s1 + $0x738] sm:$0xff] }
  0xab   :  { %3479 = vmatpush.bf16.msrb.mxu1 %v5544_v5  ;;  %v5565_v5 = vld [vmem:[%s7006_s1 + $0x610] sm:$0xff]  ;;  %v5610_v22 = vld [vmem:[%s7006_s1 + $0x778] sm:$0xff] }
  0xac   :  { %3492 = vmatpush.bf16.msrb.mxu2 %v5552_v7  ;;  %v5618_v24 = vld [vmem:[%s7006_s1 + $0x7b8] sm:$0xff] }
  0xad   :  { %3505 = vmatpush.bf16.msrb.mxu3 %v5560_v8 }
  0xae   :  { %3467 = vmatpush.bf16.msrb.mxu0 %v5535_v10  ;;  %v3241_v35 = vpop.f32.mrf.mxu2  ;;  %v5589_v10 = vld [vmem:[%s7006_s1 + $0x6d0] sm:$0xff] }
  0xaf   :  { %3480 = vmatpush.bf16.msrb.mxu1 %v5543_v11  ;;  %v3254_v36 = vpop.f32.mrf.mxu3  ;;  %v5564_v11 = vld [vmem:[%s7006_s1 + $0x608] sm:$0xff]  ;;  %v6518_v35 = vld [vmem:[#allocation1 + $0x36] sm:$0xff] }
  0xb0   :  { %3493 = vmatpush.bf16.msrb.mxu2 %v5551_v14  ;;  %v5588_v14 = vld [vmem:[%s7006_s1 + $0x6c8] sm:$0xff] }
  0xb1   :  { %3506 = vmatpush.bf16.msrb.mxu3 %v5559_v15  ;;  %v6520_v36 = vld [vmem:[#allocation1 + $0x2d] sm:$0xff] }
  0xb2   :  { %3468 = vmatpush.bf16.msrb.mxu0 %v5534_v17  ;;  %v5563_v17 = vld [vmem:[%s7006_s1 + $0x600] sm:$0xff] }
  0xb3   :  { %3481 = vmatpush.bf16.msrb.mxu1 %v5542_v18  ;;  %v5571_v18 = vld [vmem:[%s7006_s1 + $0x640] sm:$0xff] }
  0xb4   :  { %3494 = vmatpush.bf16.msrb.mxu2 %v5550_v19  ;;  %v5579_v19 = vld [vmem:[%s7006_s1 + $0x680] sm:$0xff] }
  0xb5   :  { %3507 = vmatpush.bf16.msrb.mxu3 %v5558_v20  ;;  %v5587_v20 = vld [vmem:[%s7006_s1 + $0x6c0] sm:$0xff] }
  0xb6   :  { %3469 = vmatpush.bf16.msrb.mxu0 %v5533_v25  ;;  %v5626_v25 = vld [vmem:[%s7006_s1 + $0x7f8] sm:$0xff] }
  0xb7   :  { %3482 = vmatpush.bf16.msrb.mxu1 %v5541_v26  ;;  %v824_v26 = vld [vmem:[#allocation1] sm:$0xff] }
  0xb8   :  { %3495 = vmatpush.bf16.msrb.mxu2 %v5549_v29  ;;  %v827_v29 = vld [vmem:[#allocation1 + $0x1b] sm:$0xff] }
  0xb9   :  { %3508 = vmatpush.bf16.msrb.mxu3 %v5557_v30  ;;  %v5601_v30 = vld [vmem:[%s7006_s1 + $0x730] sm:$0xff] }
  0xba   :  { %3470 = vmatpush.bf16.msrb.mxu0 %v5532_v31  ;;  %v5609_v31 = vld [vmem:[%s7006_s1 + $0x770] sm:$0xff] }
  0xbb   :  { %3483 = vmatpush.bf16.msrb.mxu1 %v5540_v32  ;;  %v5617_v32 = vld [vmem:[%s7006_s1 + $0x7b0] sm:$0xff] }
  0xbc   :  { %3496 = vmatpush.bf16.msrb.mxu2 %v5548_v33  ;;  %v5625_v33 = vld [vmem:[%s7006_s1 + $0x7f0] sm:$0xff] }
  0xbd   :  { %3509 = vmatpush.bf16.msrb.mxu3 %v5556_v34  ;;  %v6516_v34 = vld [vmem:[#allocation1 + $0x24] sm:$0xff] }
  0xbe   :  { %3471 = vmatpush.bf16.msrb.mxu0 %v5531_v37  ;;  %v3265_v53 = vpop.f32.mrf.mxu0  ;;  %v6522_v37 = vld [vmem:[#allocation1 + $0x3f] sm:$0xff] }
  0xbf   :  { %3484 = vmatpush.bf16.msrb.mxu1 %v5539_v38  ;;  %v3266_v56 = vadd.f32 %v3265_v53, %v3253_v27  ;;  %v3278_v57 = vpop.f32.mrf.mxu1  ;;  %v826_v27 = vld [vmem:[#allocation1 + $0x12] sm:$0xff]  ;;  %v5600_v38 = vld [vmem:[%s7006_s1 + $0x728] sm:$0xff] }
  0xc0   :  { %3497 = vmatpush.bf16.msrb.mxu2 %v5547_v39  ;;  %833 = vst [vmem:[#allocation1] ss:$9 sm:$0xff] %v18_v23  ;;  %v5608_v39 = vld [vmem:[%s7006_s1 + $0x768] sm:$0xff]  ;;  %v5622_v53 = vld [vmem:[%s7006_s1 + $0x7d8] sm:$0xff] }
  0xc1   :  { %3510 = vmatpush.bf16.msrb.mxu3 %v5555_v40  ;;  %3472 = vmatmul.bf16.vlgmr.msrb.gmra.mxu0 %v6304_v0  ;;  %v3279_v60 = vadd.f32 %v3278_v57, %v3266_v56  ;;  %v5590_v0 = vld [vmem:[%s7006_s1 + $0x6d8] sm:$0xff]  ;;  %v5616_v40 = vld [vmem:[%s7006_s1 + $0x7a8] sm:$0xff] }
  0xc2   :  { %3516 = vmatpush.bf16.msra.mxu0 %v5570_v41  ;;  %3485 = vmatmul.bf16.vlgmr.msrb.gmra.mxu1 %v6308_v2  ;;  %v5624_v41 = vld [vmem:[%s7006_s1 + $0x7e8] sm:$0xff] }
  0xc3   :  { %3529 = vmatpush.bf16.msra.mxu1 %v5578_v42  ;;  %3498 = vmatmul.bf16.vlgmr.msrb.gmra.mxu2 %v6306_v1 }
  0xc4   :  { %3542 = vmatpush.bf16.msra.mxu2 %v5586_v43  ;;  %3511 = vmatmul.bf16.vlgmr.msrb.gmra.mxu3 %v6310_v3 }
  0xc5   :  { %3555 = vmatpush.bf16.msra.mxu3 %v5594_v44  ;;  %v5599_v44 = vld [vmem:[%s7006_s1 + $0x720] sm:$0xff] }
  0xc6   :  { %3517 = vmatpush.bf16.msra.mxu0 %v5569_v45  ;;  %v3291_v1 = vpop.f32.mrf.mxu2  ;;  %v3267_v4 = vpop.f32.mrf.mxu0  ;;  %v5607_v45 = vld [vmem:[%s7006_s1 + $0x760] sm:$0xff] }
  0xc7   :  { %3530 = vmatpush.bf16.msra.mxu1 %v5577_v46  ;;  %v3292_v2 = vadd.f32 %v3291_v1, %v3279_v60  ;;  %v3304_v3 = vpop.f32.mrf.mxu3  ;;  %v3280_v8 = vpop.f32.mrf.mxu1  ;;  %v5605_v60 = vld [vmem:[%s7006_s1 + $0x750] sm:$0xff]  ;;  %v5604_v1 = vld [vmem:[%s7006_s1 + $0x748] sm:$0xff] }
  0xc8   :  { %3543 = vmatpush.bf16.msra.mxu2 %v5585_v47  ;;  %v5615_v47 = vld [vmem:[%s7006_s1 + $0x7a0] sm:$0xff] }
  0xc9   :  { %3556 = vmatpush.bf16.msra.mxu3 %v5593_v48  ;;  %v6457_v7 = vadd.f32 %v3304_v3, %v3292_v2  ;;  %v5623_v48 = vld [vmem:[%s7006_s1 + $0x7e0] sm:$0xff]  ;;  %v5612_v2 = vld [vmem:[%s7006_s1 + $0x788] sm:$0xff] }
  0xca   :  { %3518 = vmatpush.bf16.msra.mxu0 %v5568_v49  ;;  %v5620_v3 = vld [vmem:[%s7006_s1 + $0x7c8] sm:$0xff]  ;;  %v5611_v8 = vld [vmem:[%s7006_s1 + $0x780] sm:$0xff] }
  0xcb   :  { %3531 = vmatpush.bf16.msra.mxu1 %v5576_v50  ;;  %v5598_v50 = vld [vmem:[%s7006_s1 + $0x718] sm:$0xff] }
  0xcc   :  { %3544 = vmatpush.bf16.msra.mxu2 %v5584_v51  ;;  %v5606_v51 = vld [vmem:[%s7006_s1 + $0x758] sm:$0xff] }
  0xcd   :  { %3557 = vmatpush.bf16.msra.mxu3 %v5592_v52  ;;  %v5614_v52 = vld [vmem:[%s7006_s1 + $0x798] sm:$0xff] }
  0xce   :  { %3519 = vmatpush.bf16.msra.mxu0 %v5567_v54  ;;  %v3293_v15 = vpop.f32.mrf.mxu2 }
  0xcf   :  { %3532 = vmatpush.bf16.msra.mxu1 %v5575_v55  ;;  %v3306_v16 = vpop.f32.mrf.mxu3  ;;  %v5641_v15 = vld [vmem:[%s7006_s1 + $0x870] sm:$0xff] }
  0xd0   :  { %3545 = vmatpush.bf16.msra.mxu2 %v5583_v58  ;;  %v5649_v16 = vld [vmem:[%s7006_s1 + $0x8b0] sm:$0xff] }
  0xd1   :  { %3558 = vmatpush.bf16.msra.mxu3 %v5591_v59  ;;  %v5597_v59 = vld [vmem:[%s7006_s1 + $0x710] sm:$0xff] }
  0xd2   :  { %3520 = vmatpush.bf16.msra.mxu0 %v5566_v61 }
  0xd3   :  { %3533 = vmatpush.bf16.msra.mxu1 %v5574_v62  ;;  %v5613_v62 = vld [vmem:[%s7006_s1 + $0x790] sm:$0xff] }
  0xd4   :  { %3546 = vmatpush.bf16.msra.mxu2 %v5582_v63  ;;  %v5621_v63 = vld [vmem:[%s7006_s1 + $0x7d0] sm:$0xff] }
  0xd5   :  { %3559 = vmatpush.bf16.msra.mxu3 %v5590_v0  ;;  %v5596_v0 = vld [vmem:[%s7006_s1 + $0x708] sm:$0xff] }
  0xd6   :  { %3521 = vmatpush.bf16.msra.mxu0 %v5565_v5 }
  0xd7   :  { %3534 = vmatpush.bf16.msra.mxu1 %v5573_v6  ;;  %v5595_v6 = vld [vmem:[%s7006_s1 + $0x700] sm:$0xff] }
  0xd8   :  { %3547 = vmatpush.bf16.msra.mxu2 %v5581_v9  ;;  %v5619_v9 = vld [vmem:[%s7006_s1 + $0x7c0] sm:$0xff] }
  0xd9   :  { %3560 = vmatpush.bf16.msra.mxu3 %v5589_v10  ;;  %v5634_v10 = vld [vmem:[%s7006_s1 + $0x838] sm:$0xff] }
  0xda   :  { %3522 = vmatpush.bf16.msra.mxu0 %v5564_v11  ;;  %v5642_v11 = vld [vmem:[%s7006_s1 + $0x878] sm:$0xff] }
  0xdb   :  { %3535 = vmatpush.bf16.msra.mxu1 %v5572_v12  ;;  %v5650_v12 = vld [vmem:[%s7006_s1 + $0x8b8] sm:$0xff] }
  0xdc   :  { %3548 = vmatpush.bf16.msra.mxu2 %v5580_v13  ;;  %v5658_v13 = vld [vmem:[%s7006_s1 + $0x8f8] sm:$0xff] }
  0xdd   :  { %3561 = vmatpush.bf16.msra.mxu3 %v5588_v14  ;;  %v5633_v14 = vld [vmem:[%s7006_s1 + $0x830] sm:$0xff] }
  0xde   :  { %3523 = vmatpush.bf16.msra.mxu0 %v5563_v17  ;;  %v3317_v42 = vpop.f32.mrf.mxu0  ;;  %v5657_v17 = vld [vmem:[%s7006_s1 + $0x8f0] sm:$0xff] }
  0xdf   :  { %3536 = vmatpush.bf16.msra.mxu1 %v5571_v18  ;;  %v3318_v43 = vadd.f32 %v3317_v42, %v6457_v7  ;;  %v3330_v46 = vpop.f32.mrf.mxu1  ;;  %v5603_v7 = vld [vmem:[%s7006_s1 + $0x740] sm:$0xff]  ;;  %v5632_v18 = vld [vmem:[%s7006_s1 + $0x828] sm:$0xff]  ;;  %v5645_v42 = vld [vmem:[%s7006_s1 + $0x890] sm:$0xff] }
  0xe0   :  { %3549 = vmatpush.bf16.msra.mxu2 %v5579_v19  ;;  %v5640_v19 = vld [vmem:[%s7006_s1 + $0x868] sm:$0xff] }
  0xe1   :  { %3562 = vmatpush.bf16.msra.mxu3 %v5587_v20  ;;  %3524 = vmatmul.bf16.vlgmr.msra.gmra.mxu0 %v824_v26  ;;  %v3331_v49 = vadd.f32 %v3330_v46, %v3318_v43  ;;  %v5648_v20 = vld [vmem:[%s7006_s1 + $0x8a8] sm:$0xff]  ;;  %v5653_v43 = vld [vmem:[%s7006_s1 + $0x8d0] sm:$0xff] }
  0xe2   :  { %3568 = vmatpush.bf16.msrb.mxu0 %v5602_v21  ;;  %3537 = vmatmul.bf16.vlgmr.msra.gmra.mxu1 %v825_v28  ;;  %v5656_v21 = vld [vmem:[%s7006_s1 + $0x8e8] sm:$0xff]  ;;  %v5655_v28 = vld [vmem:[%s7006_s1 + $0x8e0] sm:$0xff] }
  0xe3   :  { %3581 = vmatpush.bf16.msrb.mxu1 %v5610_v22  ;;  %3550 = vmatmul.bf16.vlgmr.msra.gmra.mxu2 %v826_v27  ;;  %v5647_v27 = vld [vmem:[%s7006_s1 + $0x8a0] sm:$0xff]  ;;  %v5644_v46 = vld [vmem:[%s7006_s1 + $0x888] sm:$0xff] }
  0xe4   :  { %3594 = vmatpush.bf16.msrb.mxu2 %v5618_v24  ;;  %3563 = vmatmul.bf16.vlgmr.msra.gmra.mxu3 %v827_v29  ;;  %v5631_v24 = vld [vmem:[%s7006_s1 + $0x820] sm:$0xff] }
  0xe5   :  { %3607 = vmatpush.bf16.msrb.mxu3 %v5626_v25  ;;  %v5639_v25 = vld [vmem:[%s7006_s1 + $0x860] sm:$0xff] }
  0xe6   :  { %3569 = vmatpush.bf16.msrb.mxu0 %v5601_v30  ;;  %v3343_v54 = vpop.f32.mrf.mxu2  ;;  %v3319_v57 = vpop.f32.mrf.mxu0  ;;  %v5630_v30 = vld [vmem:[%s7006_s1 + $0x818] sm:$0xff] }
  0xe7   :  { %3582 = vmatpush.bf16.msrb.mxu1 %v5609_v31  ;;  %v3344_v55 = vadd.f32 %v3343_v54, %v3331_v49  ;;  %v3356_v56 = vpop.f32.mrf.mxu3  ;;  %v3332_v61 = vpop.f32.mrf.mxu1  ;;  %v5638_v31 = vld [vmem:[%s7006_s1 + $0x858] sm:$0xff] }
  0xe8   :  { %3595 = vmatpush.bf16.msrb.mxu2 %v5617_v32  ;;  %v5646_v32 = vld [vmem:[%s7006_s1 + $0x898] sm:$0xff]  ;;  %v835_v61 = vld [vmem:[#allocation1 + $0x9] sm:$0xff] }
  0xe9   :  { %3608 = vmatpush.bf16.msrb.mxu3 %v5625_v33  ;;  %v3357_v58 = vadd.f32 %v3356_v56, %v3344_v55  ;;  %v5654_v33 = vld [vmem:[%s7006_s1 + $0x8d8] sm:$0xff]  ;;  %v19_v56 = vld [vmem:[%s7007_s0 + $0x28] sm:$0xff] }
  0xea   :  { %3570 = vmatpush.bf16.msrb.mxu0 %v5600_v38  ;;  %v5666_v54 = vld [vmem:[%s7006_s1 + $0x938] sm:$0xff] }
  0xeb   :  { %3583 = vmatpush.bf16.msrb.mxu1 %v5608_v39  ;;  %v5629_v39 = vld [vmem:[%s7006_s1 + $0x810] sm:$0xff]  ;;  %v5674_v55 = vld [vmem:[%s7006_s1 + $0x978] sm:$0xff] }
  0xec   :  { %3596 = vmatpush.bf16.msrb.mxu2 %v5616_v40  ;;  %v5637_v40 = vld [vmem:[%s7006_s1 + $0x850] sm:$0xff]  ;;  %v5682_v57 = vld [vmem:[%s7006_s1 + $0x9b8] sm:$0xff] }
  0xed   :  { %3609 = vmatpush.bf16.msrb.mxu3 %v5624_v41 }
  0xee   :  { %3571 = vmatpush.bf16.msrb.mxu0 %v5599_v44  ;;  %v3345_v4 = vpop.f32.mrf.mxu2  ;;  %v5628_v44 = vld [vmem:[%s7006_s1 + $0x808] sm:$0xff] }
  0xef   :  { %3584 = vmatpush.bf16.msrb.mxu1 %v5607_v45  ;;  %v3358_v5 = vpop.f32.mrf.mxu3  ;;  %v5636_v45 = vld [vmem:[%s7006_s1 + $0x848] sm:$0xff]  ;;  %v6728_v4 = vld [vmem:[#allocation1 + $0x36] sm:$0xff] }
  0xf0   :  { %3597 = vmatpush.bf16.msrb.mxu2 %v5615_v47  ;;  %v5652_v47 = vld [vmem:[%s7006_s1 + $0x8c8] sm:$0xff] }
  0xf1   :  { %3610 = vmatpush.bf16.msrb.mxu3 %v5623_v48  ;;  %v6730_v5 = vld [vmem:[#allocation1 + $0x2d] sm:$0xff] }
  0xf2   :  { %3572 = vmatpush.bf16.msrb.mxu0 %v5598_v50  ;;  %v5627_v50 = vld [vmem:[%s7006_s1 + $0x800] sm:$0xff] }
  0xf3   :  { %3585 = vmatpush.bf16.msrb.mxu1 %v5606_v51  ;;  %v5635_v51 = vld [vmem:[%s7006_s1 + $0x840] sm:$0xff] }
  0xf4   :  { %3598 = vmatpush.bf16.msrb.mxu2 %v5614_v52  ;;  %v5643_v52 = vld [vmem:[%s7006_s1 + $0x880] sm:$0xff] }
  0xf5   :  { %3611 = vmatpush.bf16.msrb.mxu3 %v5622_v53  ;;  %v5651_v53 = vld [vmem:[%s7006_s1 + $0x8c0] sm:$0xff] }
  0xf6   :  { %3573 = vmatpush.bf16.msrb.mxu0 %v5597_v59  ;;  %v834_v59 = vld [vmem:[#allocation1] sm:$0xff] }
  0xf7   :  { %3586 = vmatpush.bf16.msrb.mxu1 %v5605_v60  ;;  %v836_v60 = vld [vmem:[#allocation1 + $0x12] sm:$0xff] }
  0xf8   :  { %3599 = vmatpush.bf16.msrb.mxu2 %v5613_v62  ;;  %v837_v62 = vld [vmem:[#allocation1 + $0x1b] sm:$0xff] }
  0xf9   :  { %3612 = vmatpush.bf16.msrb.mxu3 %v5621_v63  ;;  %v5665_v63 = vld [vmem:[%s7006_s1 + $0x930] sm:$0xff] }
  0xfa   :  { %3574 = vmatpush.bf16.msrb.mxu0 %v5596_v0  ;;  %v5673_v0 = vld [vmem:[%s7006_s1 + $0x970] sm:$0xff] }
  0xfb   :  { %3587 = vmatpush.bf16.msrb.mxu1 %v5604_v1  ;;  %v5681_v1 = vld [vmem:[%s7006_s1 + $0x9b0] sm:$0xff] }
  0xfc   :  { %3600 = vmatpush.bf16.msrb.mxu2 %v5612_v2  ;;  %v5689_v2 = vld [vmem:[%s7006_s1 + $0x9f0] sm:$0xff] }
  0xfd   :  { %3613 = vmatpush.bf16.msrb.mxu3 %v5620_v3  ;;  %v6726_v3 = vld [vmem:[#allocation1 + $0x24] sm:$0xff] }
  0xfe   :  { %3575 = vmatpush.bf16.msrb.mxu0 %v5595_v6  ;;  %v3369_v22 = vpop.f32.mrf.mxu0  ;;  %v6732_v6 = vld [vmem:[#allocation1 + $0x3f] sm:$0xff] }
  0xff   :  { %3588 = vmatpush.bf16.msrb.mxu1 %v5603_v7  ;;  %v3370_v23 = vadd.f32 %v3369_v22, %v3357_v58  ;;  %v3382_v26 = vpop.f32.mrf.mxu1  ;;  %v5690_v58 = vld [vmem:[%s7006_s1 + $0x9f8] sm:$0xff]  ;;  %843 = vst [vmem:[#allocation1] ss:$9 sm:$0xff] %v19_v56  ;;  %v5664_v7 = vld [vmem:[%s7006_s1 + $0x928] sm:$0xff] }
 0x100   :  { %3601 = vmatpush.bf16.msrb.mxu2 %v5611_v8  ;;  %v5672_v8 = vld [vmem:[%s7006_s1 + $0x968] sm:$0xff]  ;;  %v5686_v22 = vld [vmem:[%s7006_s1 + $0x9d8] sm:$0xff] }
 0x101   :  { %3614 = vmatpush.bf16.msrb.mxu3 %v5619_v9  ;;  %3576 = vmatmul.bf16.vlgmr.msrb.gmra.mxu0 %v6516_v34  ;;  %v3383_v29 = vadd.f32 %v3382_v26, %v3370_v23  ;;  %v5680_v9 = vld [vmem:[%s7006_s1 + $0x9a8] sm:$0xff] }
 0x102   :  { %3620 = vmatpush.bf16.msra.mxu0 %v5634_v10  ;;  %3589 = vmatmul.bf16.vlgmr.msrb.gmra.mxu1 %v6520_v36  ;;  %v5688_v10 = vld [vmem:[%s7006_s1 + $0x9e8] sm:$0xff] }
 0x103   :  { %3633 = vmatpush.bf16.msra.mxu1 %v5642_v11  ;;  %3602 = vmatmul.bf16.vlgmr.msrb.gmra.mxu2 %v6518_v35 }
 0x104   :  { %3646 = vmatpush.bf16.msra.mxu2 %v5650_v12  ;;  %3615 = vmatmul.bf16.vlgmr.msrb.gmra.mxu3 %v6522_v37 }
 0x105   :  { %3659 = vmatpush.bf16.msra.mxu3 %v5658_v13  ;;  %v5663_v13 = vld [vmem:[%s7006_s1 + $0x920] sm:$0xff] }
 0x106   :  { %3621 = vmatpush.bf16.msra.mxu0 %v5633_v14  ;;  %v3395_v34 = vpop.f32.mrf.mxu2  ;;  %v3371_v37 = vpop.f32.mrf.mxu0  ;;  %v5671_v14 = vld [vmem:[%s7006_s1 + $0x960] sm:$0xff] }
 0x107   :  { %3634 = vmatpush.bf16.msra.mxu1 %v5641_v15  ;;  %v3396_v35 = vadd.f32 %v3395_v34, %v3383_v29  ;;  %v3408_v36 = vpop.f32.mrf.mxu3  ;;  %v3384_v41 = vpop.f32.mrf.mxu1  ;;  %v5669_v29 = vld [vmem:[%s7006_s1 + $0x950] sm:$0xff]  ;;  %v5668_v34 = vld [vmem:[%s7006_s1 + $0x948] sm:$0xff] }
 0x108   :  { %3647 = vmatpush.bf16.msra.mxu2 %v5649_v16  ;;  %v5679_v16 = vld [vmem:[%s7006_s1 + $0x9a0] sm:$0xff] }
 0x109   :  { %3660 = vmatpush.bf16.msra.mxu3 %v5657_v17  ;;  %v6661_v38 = vadd.f32 %v3408_v36, %v3396_v35  ;;  %v5687_v17 = vld [vmem:[%s7006_s1 + $0x9e0] sm:$0xff]  ;;  %v5676_v35 = vld [vmem:[%s7006_s1 + $0x988] sm:$0xff] }
 0x10a   :  { %3622 = vmatpush.bf16.msra.mxu0 %v5632_v18  ;;  %v5684_v36 = vld [vmem:[%s7006_s1 + $0x9c8] sm:$0xff]  ;;  %v5675_v41 = vld [vmem:[%s7006_s1 + $0x980] sm:$0xff] }
 0x10b   :  { %3635 = vmatpush.bf16.msra.mxu1 %v5640_v19  ;;  %v5662_v19 = vld [vmem:[%s7006_s1 + $0x918] sm:$0xff] }
 0x10c   :  { %3648 = vmatpush.bf16.msra.mxu2 %v5648_v20  ;;  %v5670_v20 = vld [vmem:[%s7006_s1 + $0x958] sm:$0xff] }
 0x10d   :  { %3661 = vmatpush.bf16.msra.mxu3 %v5656_v21  ;;  %v5678_v21 = vld [vmem:[%s7006_s1 + $0x998] sm:$0xff] }
 0x10e   :  { %3623 = vmatpush.bf16.msra.mxu0 %v5631_v24  ;;  %v3397_v48 = vpop.f32.mrf.mxu2 }
 0x10f   :  { %3636 = vmatpush.bf16.msra.mxu1 %v5639_v25  ;;  %v3410_v49 = vpop.f32.mrf.mxu3  ;;  %v5705_v48 = vld [vmem:[%s7006_s1 + $0xa70] sm:$0xff] }
 0x110   :  { %3649 = vmatpush.bf16.msra.mxu2 %v5647_v27  ;;  %v5713_v49 = vld [vmem:[%s7006_s1 + $0xab0] sm:$0xff] }
 0x111   :  { %3662 = vmatpush.bf16.msra.mxu3 %v5655_v28  ;;  %v5661_v28 = vld [vmem:[%s7006_s1 + $0x910] sm:$0xff] }
 0x112   :  { %3624 = vmatpush.bf16.msra.mxu0 %v5630_v30 }
 0x113   :  { %3637 = vmatpush.bf16.msra.mxu1 %v5638_v31  ;;  %v5677_v31 = vld [vmem:[%s7006_s1 + $0x990] sm:$0xff] }
 0x114   :  { %3650 = vmatpush.bf16.msra.mxu2 %v5646_v32  ;;  %v5685_v32 = vld [vmem:[%s7006_s1 + $0x9d0] sm:$0xff] }
 0x115   :  { %3663 = vmatpush.bf16.msra.mxu3 %v5654_v33  ;;  %v5660_v33 = vld [vmem:[%s7006_s1 + $0x908] sm:$0xff] }
 0x116   :  { %3625 = vmatpush.bf16.msra.mxu0 %v5629_v39  ;;  %v5659_v39 = vld [vmem:[%s7006_s1 + $0x900] sm:$0xff] }
 0x117   :  { %3638 = vmatpush.bf16.msra.mxu1 %v5637_v40  ;;  %v5667_v40 = vld [vmem:[%s7006_s1 + $0x940] sm:$0xff] }
 0x118   :  { %3651 = vmatpush.bf16.msra.mxu2 %v5645_v42  ;;  %v5683_v42 = vld [vmem:[%s7006_s1 + $0x9c0] sm:$0xff] }
 0x119   :  { %3664 = vmatpush.bf16.msra.mxu3 %v5653_v43  ;;  %v5698_v43 = vld [vmem:[%s7006_s1 + $0xa38] sm:$0xff] }
 0x11a   :  { %3626 = vmatpush.bf16.msra.mxu0 %v5628_v44  ;;  %v5706_v44 = vld [vmem:[%s7006_s1 + $0xa78] sm:$0xff] }
 0x11b   :  { %3639 = vmatpush.bf16.msra.mxu1 %v5636_v45  ;;  %v5714_v45 = vld [vmem:[%s7006_s1 + $0xab8] sm:$0xff] }
 0x11c   :  { %3652 = vmatpush.bf16.msra.mxu2 %v5644_v46  ;;  %v5722_v46 = vld [vmem:[%s7006_s1 + $0xaf8] sm:$0xff] }
 0x11d   :  { %3665 = vmatpush.bf16.msra.mxu3 %v5652_v47  ;;  %v5697_v47 = vld [vmem:[%s7006_s1 + $0xa30] sm:$0xff] }
 0x11e   :  { %3627 = vmatpush.bf16.msra.mxu0 %v5627_v50  ;;  %v3421_v11 = vpop.f32.mrf.mxu0  ;;  %v5721_v50 = vld [vmem:[%s7006_s1 + $0xaf0] sm:$0xff] }
 0x11f   :  { %3640 = vmatpush.bf16.msra.mxu1 %v5635_v51  ;;  %v3422_v12 = vadd.f32 %v3421_v11, %v6661_v38  ;;  %v3434_v15 = vpop.f32.mrf.mxu1  ;;  %v5696_v51 = vld [vmem:[%s7006_s1 + $0xa28] sm:$0xff]  ;;  %v5709_v11 = vld [vmem:[%s7006_s1 + $0xa90] sm:$0xff] }
 0x120   :  { %3653 = vmatpush.bf16.msra.mxu2 %v5643_v52  ;;  %v5704_v52 = vld [vmem:[%s7006_s1 + $0xa68] sm:$0xff] }
 0x121   :  { %3666 = vmatpush.bf16.msra.mxu3 %v5651_v53  ;;  %3628 = vmatmul.bf16.vlgmr.msra.gmra.mxu0 %v834_v59  ;;  %v3435_v18 = vadd.f32 %v3434_v15, %v3422_v12  ;;  %v5712_v53 = vld [vmem:[%s7006_s1 + $0xaa8] sm:$0xff]  ;;  %v5717_v12 = vld [vmem:[%s7006_s1 + $0xad0] sm:$0xff] }
 0x122   :  { %3672 = vmatpush.bf16.msrb.mxu0 %v5666_v54  ;;  %3641 = vmatmul.bf16.vlgmr.msra.gmra.mxu1 %v835_v61  ;;  %v5720_v54 = vld [vmem:[%s7006_s1 + $0xae8] sm:$0xff]  ;;  %v5719_v61 = vld [vmem:[%s7006_s1 + $0xae0] sm:$0xff] }
 0x123   :  { %3685 = vmatpush.bf16.msrb.mxu1 %v5674_v55  ;;  %3654 = vmatmul.bf16.vlgmr.msra.gmra.mxu2 %v836_v60  ;;  %v5711_v60 = vld [vmem:[%s7006_s1 + $0xaa0] sm:$0xff]  ;;  %v5708_v15 = vld [vmem:[%s7006_s1 + $0xa88] sm:$0xff] }
 0x124   :  { %3698 = vmatpush.bf16.msrb.mxu2 %v5682_v57  ;;  %3667 = vmatmul.bf16.vlgmr.msra.gmra.mxu3 %v837_v62  ;;  %v5695_v57 = vld [vmem:[%s7006_s1 + $0xa20] sm:$0xff] }
 0x125   :  { %3711 = vmatpush.bf16.msrb.mxu3 %v5690_v58  ;;  %v5703_v58 = vld [vmem:[%s7006_s1 + $0xa60] sm:$0xff] }
 0x126   :  { %3673 = vmatpush.bf16.msrb.mxu0 %v5665_v63  ;;  %v3447_v23 = vpop.f32.mrf.mxu2  ;;  %v3423_v26 = vpop.f32.mrf.mxu0  ;;  %v5694_v63 = vld [vmem:[%s7006_s1 + $0xa18] sm:$0xff] }
 0x127   :  { %3686 = vmatpush.bf16.msrb.mxu1 %v5673_v0  ;;  %v3448_v24 = vadd.f32 %v3447_v23, %v3435_v18  ;;  %v3460_v25 = vpop.f32.mrf.mxu3  ;;  %v3436_v30 = vpop.f32.mrf.mxu1  ;;  %v5702_v0 = vld [vmem:[%s7006_s1 + $0xa58] sm:$0xff] }
 0x128   :  { %3699 = vmatpush.bf16.msrb.mxu2 %v5681_v1  ;;  %v5710_v1 = vld [vmem:[%s7006_s1 + $0xa98] sm:$0xff] }
 0x129   :  { %3712 = vmatpush.bf16.msrb.mxu3 %v5689_v2  ;;  %v3461_v27 = vadd.f32 %v3460_v25, %v3448_v24  ;;  %v5718_v2 = vld [vmem:[%s7006_s1 + $0xad8] sm:$0xff] }
 0x12a   :  { %3674 = vmatpush.bf16.msrb.mxu0 %v5664_v7  ;;  %v5730_v23 = vld [vmem:[%s7006_s1 + $0xb38] sm:$0xff] }
 0x12b   :  { %3687 = vmatpush.bf16.msrb.mxu1 %v5672_v8  ;;  %v5693_v8 = vld [vmem:[%s7006_s1 + $0xa10] sm:$0xff]  ;;  %v5738_v24 = vld [vmem:[%s7006_s1 + $0xb78] sm:$0xff] }
 0x12c   :  { %3700 = vmatpush.bf16.msrb.mxu2 %v5680_v9  ;;  %v5701_v9 = vld [vmem:[%s7006_s1 + $0xa50] sm:$0xff]  ;;  %v5746_v25 = vld [vmem:[%s7006_s1 + $0xbb8] sm:$0xff] }
 0x12d   :  { %3713 = vmatpush.bf16.msrb.mxu3 %v5688_v10  ;;  %v5754_v26 = vld [vmem:[%s7006_s1 + $0xbf8] sm:$0xff] }
 0x12e   :  { %3675 = vmatpush.bf16.msrb.mxu0 %v5663_v13  ;;  %v3449_v37 = vpop.f32.mrf.mxu2  ;;  %v5692_v13 = vld [vmem:[%s7006_s1 + $0xa08] sm:$0xff]  ;;  %v847_v30 = vld [vmem:[#allocation1 + $0x1b] sm:$0xff] }
 0x12f   :  { %3688 = vmatpush.bf16.msrb.mxu1 %v5671_v14  ;;  %v3462_v38 = vpop.f32.mrf.mxu3  ;;  %v5700_v14 = vld [vmem:[%s7006_s1 + $0xa48] sm:$0xff] }
 0x130   :  { %3701 = vmatpush.bf16.msrb.mxu2 %v5679_v16  ;;  %v5716_v16 = vld [vmem:[%s7006_s1 + $0xac8] sm:$0xff] }
 0x131   :  { %3714 = vmatpush.bf16.msrb.mxu3 %v5687_v17  ;;  %v5744_v37 = vld [vmem:[%s7006_s1 + $0xba8] sm:$0xff] }
 0x132   :  { %3676 = vmatpush.bf16.msrb.mxu0 %v5662_v19  ;;  %v5691_v19 = vld [vmem:[%s7006_s1 + $0xa00] sm:$0xff]  ;;  %v5752_v38 = vld [vmem:[%s7006_s1 + $0xbe8] sm:$0xff] }
 0x133   :  { %3689 = vmatpush.bf16.msrb.mxu1 %v5670_v20  ;;  %v5699_v20 = vld [vmem:[%s7006_s1 + $0xa40] sm:$0xff] }
 0x134   :  { %3702 = vmatpush.bf16.msrb.mxu2 %v5678_v21  ;;  %v5707_v21 = vld [vmem:[%s7006_s1 + $0xa80] sm:$0xff] }
 0x135   :  { %3715 = vmatpush.bf16.msrb.mxu3 %v5686_v22  ;;  %v5715_v22 = vld [vmem:[%s7006_s1 + $0xac0] sm:$0xff] }
 0x136   :  { %3677 = vmatpush.bf16.msrb.mxu0 %v5661_v28  ;;  %v846_v28 = vld [vmem:[#allocation1 + $0x12] sm:$0xff] }
 0x137   :  { %3690 = vmatpush.bf16.msrb.mxu1 %v5669_v29  ;;  %v845_v29 = vld [vmem:[#allocation1 + $0x9] sm:$0xff] }
 0x138   :  { %3703 = vmatpush.bf16.msrb.mxu2 %v5677_v31  ;;  %v5729_v31 = vld [vmem:[%s7006_s1 + $0xb30] sm:$0xff] }
 0x139   :  { %3716 = vmatpush.bf16.msrb.mxu3 %v5685_v32  ;;  %v5737_v32 = vld [vmem:[%s7006_s1 + $0xb70] sm:$0xff] }
 0x13a   :  { %3678 = vmatpush.bf16.msrb.mxu0 %v5660_v33  ;;  %v5745_v33 = vld [vmem:[%s7006_s1 + $0xbb0] sm:$0xff] }
 0x13b   :  { %3691 = vmatpush.bf16.msrb.mxu1 %v5668_v34  ;;  %v5753_v34 = vld [vmem:[%s7006_s1 + $0xbf0] sm:$0xff] }
 0x13c   :  { %3704 = vmatpush.bf16.msrb.mxu2 %v5676_v35  ;;  %v5728_v35 = vld [vmem:[%s7006_s1 + $0xb28] sm:$0xff] }
 0x13d   :  { %3717 = vmatpush.bf16.msrb.mxu3 %v5684_v36  ;;  %v5736_v36 = vld [vmem:[%s7006_s1 + $0xb68] sm:$0xff] }
 0x13e   :  { %3679 = vmatpush.bf16.msrb.mxu0 %v5659_v39  ;;  %v3473_v55 = vpop.f32.mrf.mxu0 }
 0x13f   :  { %3692 = vmatpush.bf16.msrb.mxu1 %v5667_v40  ;;  %v3474_v56 = vadd.f32 %v3473_v55, %v3461_v27  ;;  %v3486_v59 = vpop.f32.mrf.mxu1  ;;  %v844_v27 = vld [vmem:[#allocation1] sm:$0xff] }
 0x140   :  { %3705 = vmatpush.bf16.msrb.mxu2 %v5675_v41  ;;  %v5727_v41 = vld [vmem:[%s7006_s1 + $0xb20] sm:$0xff] }
 0x141   :  { %3718 = vmatpush.bf16.msrb.mxu3 %v5683_v42  ;;  %3680 = vmatmul.bf16.vlgmr.msrb.gmra.mxu0 %v6726_v3  ;;  %v3487_v62 = vadd.f32 %v3486_v59, %v3474_v56  ;;  %v5735_v42 = vld [vmem:[%s7006_s1 + $0xb60] sm:$0xff]  ;;  %v5725_v56 = vld [vmem:[%s7006_s1 + $0xb10] sm:$0xff] }
 0x142   :  { %3724 = vmatpush.bf16.msra.mxu0 %v5698_v43  ;;  %3693 = vmatmul.bf16.vlgmr.msrb.gmra.mxu1 %v6730_v5  ;;  %v5741_v59 = vld [vmem:[%s7006_s1 + $0xb90] sm:$0xff] }
 0x143   :  { %3737 = vmatpush.bf16.msra.mxu1 %v5706_v44  ;;  %3706 = vmatmul.bf16.vlgmr.msrb.gmra.mxu2 %v6728_v4  ;;  %v5743_v44 = vld [vmem:[%s7006_s1 + $0xba0] sm:$0xff] }
 0x144   :  { %3750 = vmatpush.bf16.msra.mxu2 %v5714_v45  ;;  %3719 = vmatmul.bf16.vlgmr.msrb.gmra.mxu3 %v6732_v6  ;;  %v5751_v45 = vld [vmem:[%s7006_s1 + $0xbe0] sm:$0xff] }
 0x145   :  { %3763 = vmatpush.bf16.msra.mxu3 %v5722_v46 }
 0x146   :  { %3725 = vmatpush.bf16.msra.mxu0 %v5697_v47  ;;  %v3499_v3 = vpop.f32.mrf.mxu2  ;;  %v3475_v6 = vpop.f32.mrf.mxu0  ;;  %v5726_v47 = vld [vmem:[%s7006_s1 + $0xb18] sm:$0xff] }
 0x147   :  { %3738 = vmatpush.bf16.msra.mxu1 %v5705_v48  ;;  %v3500_v4 = vadd.f32 %v3499_v3, %v3487_v62  ;;  %v3512_v5 = vpop.f32.mrf.mxu3  ;;  %v3488_v10 = vpop.f32.mrf.mxu1  ;;  %v5734_v48 = vld [vmem:[%s7006_s1 + $0xb58] sm:$0xff]  ;;  %v5732_v62 = vld [vmem:[%s7006_s1 + $0xb48] sm:$0xff]  ;;  %v5723_v3 = vld [vmem:[%s7006_s1 + $0xb00] sm:$0xff] }
 0x148   :  { %3751 = vmatpush.bf16.msra.mxu2 %v5713_v49  ;;  %v5742_v49 = vld [vmem:[%s7006_s1 + $0xb98] sm:$0xff]  ;;  %v5747_v6 = vld [vmem:[%s7006_s1 + $0xbc0] sm:$0xff] }
 0x149   :  { %3764 = vmatpush.bf16.msra.mxu3 %v5721_v50  ;;  %v3513_v7 = vadd.f32 %v3512_v5, %v3500_v4  ;;  %v5750_v50 = vld [vmem:[%s7006_s1 + $0xbd8] sm:$0xff]  ;;  %v5731_v4 = vld [vmem:[%s7006_s1 + $0xb40] sm:$0xff] }
 0x14a   :  { %3726 = vmatpush.bf16.msra.mxu0 %v5696_v51  ;;  %v5739_v5 = vld [vmem:[%s7006_s1 + $0xb80] sm:$0xff] }
 0x14b   :  { %3739 = vmatpush.bf16.msra.mxu1 %v5704_v52  ;;  %v851_v10 = vld [vmem:[#allocation1 + $0x3f] sm:$0xff] }
 0x14c   :  { %3752 = vmatpush.bf16.msra.mxu2 %v5712_v53 }
 0x14d   :  { %3765 = vmatpush.bf16.msra.mxu3 %v5720_v54 }
 0x14e   :  { %3727 = vmatpush.bf16.msra.mxu0 %v5695_v57  ;;  %v3501_v17 = vpop.f32.mrf.mxu2  ;;  %v5733_v57 = vld [vmem:[%s7006_s1 + $0xb50] sm:$0xff] }
 0x14f   :  { %3740 = vmatpush.bf16.msra.mxu1 %v5703_v58  ;;  %v3514_v18 = vpop.f32.mrf.mxu3 }
 0x150   :  { %3753 = vmatpush.bf16.msra.mxu2 %v5711_v60  ;;  %v5749_v60 = vld [vmem:[%s7006_s1 + $0xbd0] sm:$0xff] }
 0x151   :  { %3766 = vmatpush.bf16.msra.mxu3 %v5719_v61  ;;  %v5724_v61 = vld [vmem:[%s7006_s1 + $0xb08] sm:$0xff] }
 0x152   :  { %3728 = vmatpush.bf16.msra.mxu0 %v5694_v63  ;;  %v5740_v63 = vld [vmem:[%s7006_s1 + $0xb88] sm:$0xff] }
 0x153   :  { %3741 = vmatpush.bf16.msra.mxu1 %v5702_v0  ;;  %v5748_v0 = vld [vmem:[%s7006_s1 + $0xbc8] sm:$0xff] }
 0x154   :  { %3754 = vmatpush.bf16.msra.mxu2 %v5710_v1 }
 0x155   :  { %3767 = vmatpush.bf16.msra.mxu3 %v5718_v2 }
 0x156   :  { %3729 = vmatpush.bf16.msra.mxu0 %v5693_v8  ;;  %v849_v8 = vld [vmem:[#allocation1 + $0x2d] sm:$0xff] }
 0x157   :  { %3742 = vmatpush.bf16.msra.mxu1 %v5701_v9  ;;  %v850_v9 = vld [vmem:[#allocation1 + $0x36] sm:$0xff] }
 0x158   :  { %3755 = vmatpush.bf16.msra.mxu2 %v5709_v11 }
 0x159   :  { %3768 = vmatpush.bf16.msra.mxu3 %v5717_v12 }
 0x15a   :  { %3730 = vmatpush.bf16.msra.mxu0 %v5692_v13 }
 0x15b   :  { %3743 = vmatpush.bf16.msra.mxu1 %v5700_v14 }
 0x15c   :  { %3756 = vmatpush.bf16.msra.mxu2 %v5708_v15 }
 0x15d   :  { %3769 = vmatpush.bf16.msra.mxu3 %v5716_v16 }
 0x15e   :  { %3731 = vmatpush.bf16.msra.mxu0 %v5691_v19  ;;  %v3525_v39 = vpop.f32.mrf.mxu0 }
 0x15f   :  { %3744 = vmatpush.bf16.msra.mxu1 %v5699_v20  ;;  %v3526_v40 = vadd.f32 %v3525_v39, %v3513_v7  ;;  %v3538_v43 = vpop.f32.mrf.mxu1  ;;  %v848_v7 = vld [vmem:[#allocation1 + $0x24] sm:$0xff] }
 0x160   :  { %3757 = vmatpush.bf16.msra.mxu2 %v5707_v21 }
 0x161   :  { %3770 = vmatpush.bf16.msra.mxu3 %v5715_v22  ;;  %3732 = vmatmul.bf16.vlgmr.msra.gmra.mxu0 %v844_v27  ;;  %v3539_v46 = vadd.f32 %v3538_v43, %v3526_v40 }
 0x162   :  { %3776 = vmatpush.bf16.msrb.mxu0 %v5730_v23  ;;  %3745 = vmatmul.bf16.vlgmr.msra.gmra.mxu1 %v845_v29 }
 0x163   :  { %3789 = vmatpush.bf16.msrb.mxu1 %v5738_v24  ;;  %3758 = vmatmul.bf16.vlgmr.msra.gmra.mxu2 %v846_v28 }
 0x164   :  { %3802 = vmatpush.bf16.msrb.mxu2 %v5746_v25  ;;  %3771 = vmatmul.bf16.vlgmr.msra.gmra.mxu3 %v847_v30 }
 0x165   :  { %3815 = vmatpush.bf16.msrb.mxu3 %v5754_v26 }
 0x166   :  { %3777 = vmatpush.bf16.msrb.mxu0 %v5729_v31  ;;  %v3551_v51 = vpop.f32.mrf.mxu2  ;;  %v3527_v54 = vpop.f32.mrf.mxu0 }
 0x167   :  { %3790 = vmatpush.bf16.msrb.mxu1 %v5737_v32  ;;  %v3552_v52 = vadd.f32 %v3551_v51, %v3539_v46  ;;  %v3564_v53 = vpop.f32.mrf.mxu3  ;;  %v3540_v58 = vpop.f32.mrf.mxu1 }
 0x168   :  { %3803 = vmatpush.bf16.msrb.mxu2 %v5745_v33 }
 0x169   :  { %3816 = vmatpush.bf16.msrb.mxu3 %v5753_v34  ;;  %v3565_v55 = vadd.f32 %v3564_v53, %v3552_v52 }
 0x16a   :  { %3778 = vmatpush.bf16.msrb.mxu0 %v5728_v35 }
 0x16b   :  { %3791 = vmatpush.bf16.msrb.mxu1 %v5736_v36 }
 0x16c   :  { %3804 = vmatpush.bf16.msrb.mxu2 %v5744_v37 }
 0x16d   :  { %3817 = vmatpush.bf16.msrb.mxu3 %v5752_v38 }
 0x16e   :  { %3779 = vmatpush.bf16.msrb.mxu0 %v5727_v41  ;;  %v3553_v1 = vpop.f32.mrf.mxu2 }
 0x16f   :  { %3792 = vmatpush.bf16.msrb.mxu1 %v5735_v42  ;;  %v3566_v2 = vpop.f32.mrf.mxu3 }
 0x170   :  { %3805 = vmatpush.bf16.msrb.mxu2 %v5743_v44 }
 0x171   :  { %3818 = vmatpush.bf16.msrb.mxu3 %v5751_v45 }
 0x172   :  { %3780 = vmatpush.bf16.msrb.mxu0 %v5726_v47 }
 0x173   :  { %3793 = vmatpush.bf16.msrb.mxu1 %v5734_v48 }
 0x174   :  { %3806 = vmatpush.bf16.msrb.mxu2 %v5742_v49 }
 0x175   :  { %3819 = vmatpush.bf16.msrb.mxu3 %v5750_v50 }
 0x176   :  { %3781 = vmatpush.bf16.msrb.mxu0 %v5725_v56 }
 0x177   :  { %3794 = vmatpush.bf16.msrb.mxu1 %v5733_v57 }
 0x178   :  { %3807 = vmatpush.bf16.msrb.mxu2 %v5741_v59 }
 0x179   :  { %3820 = vmatpush.bf16.msrb.mxu3 %v5749_v60 }
 0x17a   :  { %3782 = vmatpush.bf16.msrb.mxu0 %v5724_v61 }
 0x17b   :  { %3795 = vmatpush.bf16.msrb.mxu1 %v5732_v62 }
 0x17c   :  { %3808 = vmatpush.bf16.msrb.mxu2 %v5740_v63 }
 0x17d   :  { %3821 = vmatpush.bf16.msrb.mxu3 %v5748_v0 }
 0x17e   :  { %3783 = vmatpush.bf16.msrb.mxu0 %v5723_v3  ;;  %v3577_v11 = vpop.f32.mrf.mxu0 }
 0x17f   :  { %3796 = vmatpush.bf16.msrb.mxu1 %v5731_v4  ;;  %v3578_v12 = vadd.f32 %v3577_v11, %v3565_v55  ;;  %v3590_v13 = vpop.f32.mrf.mxu1 }
 0x180   :  { %3809 = vmatpush.bf16.msrb.mxu2 %v5739_v5 }
 0x181   :  { %3822 = vmatpush.bf16.msrb.mxu3 %v5747_v6  ;;  %3784 = vmatmul.bf16.vlgmr.msrb.gmra.mxu0 %v848_v7  ;;  %v3591_v14 = vadd.f32 %v3590_v13, %v3578_v12 }
 0x182   :  { %3797 = vmatmul.bf16.vlgmr.msrb.gmra.mxu1 %v849_v8 }
 0x183   :  { %3810 = vmatmul.bf16.vlgmr.msrb.gmra.mxu2 %v850_v9 }
 0x184   :  { %3823 = vmatmul.bf16.vlgmr.msrb.gmra.mxu3 %v851_v10 }
 0x186   :  { %v3603_v15 = vpop.f32.mrf.mxu2  ;;  %v3579_v18 = vpop.f32.mrf.mxu0 }
 0x187   :  { %v3604_v16 = vadd.f32 %v3603_v15, %v3591_v14  ;;  %v3616_v17 = vpop.f32.mrf.mxu3  ;;  %v3592_v20 = vpop.f32.mrf.mxu1 }
 0x189   :  { %v3617_v19 = vadd.f32 %v3616_v17, %v3604_v16 }
 0x18e   :  { %v3605_v21 = vpop.f32.mrf.mxu2 }
 0x18f   :  { %v3618_v22 = vpop.f32.mrf.mxu3 }
 0x19e   :  { %v3629_v23 = vpop.f32.mrf.mxu0 }
 0x19f   :  { %v3630_v24 = vadd.f32 %v3629_v23, %v3617_v19  ;;  %v3642_v25 = vpop.f32.mrf.mxu1 }
 0x1a1   :  { %v3643_v26 = vadd.f32 %v3642_v25, %v3630_v24 }
 0x1a6   :  { %v3655_v27 = vpop.f32.mrf.mxu2  ;;  %v3631_v30 = vpop.f32.mrf.mxu0 }
 0x1a7   :  { %v3656_v28 = vadd.f32 %v3655_v27, %v3643_v26  ;;  %v3668_v29 = vpop.f32.mrf.mxu3  ;;  %v3644_v32 = vpop.f32.mrf.mxu1 }
 0x1a9   :  { %v3669_v31 = vadd.f32 %v3668_v29, %v3656_v28 }
 0x1ae   :  { %v3657_v33 = vpop.f32.mrf.mxu2 }
 0x1af   :  { %v3670_v34 = vpop.f32.mrf.mxu3 }
 0x1be   :  { %v3681_v35 = vpop.f32.mrf.mxu0 }
 0x1bf   :  { %v3694_v36 = vpop.f32.mrf.mxu1  ;;  %v3682_v46 = vadd.f32 %v3681_v35, %v3669_v31 }
 0x1c1   :  { %v3695_v50 = vadd.f32 %v3694_v36, %v3682_v46 }
 0x1c6   :  { %v3707_v37 = vpop.f32.mrf.mxu2  ;;  %v3683_v39 = vpop.f32.mrf.mxu0 }
 0x1c7   :  { %v3720_v38 = vpop.f32.mrf.mxu3  ;;  %v3696_v40 = vpop.f32.mrf.mxu1  ;;  %v3708_v51 = vadd.f32 %v3707_v37, %v3695_v50 }
 0x1c9   :  { %v3721_v54 = vadd.f32 %v3720_v38, %v3708_v51 }
 0x1ce   :  { %v3709_v41 = vpop.f32.mrf.mxu2 }
 0x1cf   :  { %v3722_v42 = vpop.f32.mrf.mxu3 }
 0x1de   :  { %v3733_v43 = vpop.f32.mrf.mxu0 }
 0x1df   :  { %v3746_v44 = vpop.f32.mrf.mxu1  ;;  %v3734_v55 = vadd.f32 %v3733_v43, %v3721_v54 }
 0x1e1   :  { %v3747_v56 = vadd.f32 %v3746_v44, %v3734_v55 }
 0x1e6   :  { %v3759_v45 = vpop.f32.mrf.mxu2  ;;  %v3735_v48 = vpop.f32.mrf.mxu0 }
 0x1e7   :  { %v3772_v47 = vpop.f32.mrf.mxu3  ;;  %v3748_v49 = vpop.f32.mrf.mxu1  ;;  %v3760_v57 = vadd.f32 %v3759_v45, %v3747_v56 }
 0x1e9   :  { %v3773_v58 = vadd.f32 %v3772_v47, %v3760_v57 }
 0x1ee   :  { %v3761_v52 = vpop.f32.mrf.mxu2 }
 0x1ef   :  { %v3774_v53 = vpop.f32.mrf.mxu3 }
 0x1fe   :  { %v3785_v59 = vpop.f32.mrf.mxu0 }
 0x1ff   :  { %v3798_v60 = vpop.f32.mrf.mxu1  ;;  %v3786_v61 = vadd.f32 %v3785_v59, %v3773_v58 }
 0x201   :  { %v3799_v62 = vadd.f32 %v3798_v60, %v3786_v61 }
 0x206   :  { %v3811_v63 = vpop.f32.mrf.mxu2  ;;  %v3787_v2 = vpop.f32.mrf.mxu0 }
 0x207   :  { %v3824_v0 = vpop.f32.mrf.mxu3  ;;  %v3812_v1 = vadd.f32 %v3811_v63, %v3799_v62  ;;  %v3800_v3 = vpop.f32.mrf.mxu1 }
 0x209   :  { %v3825_v4 = vadd.f32 %v3824_v0, %v3812_v1 }
 0x20b   :  { %v3828_v5 = vmax.f32 %v3825_v4, 0.0 }
 0x20d   :  { %v3829_v6 = vpack.c.bf16 %v3828_v5, %v3828_v5 }
 0x20e   :  { %v3813_v7 = vpop.f32.mrf.mxu2 }
 0x20f   :  { %v3826_v8 = vpop.f32.mrf.mxu3  ;;  %3830 = vst [vmem:[%s7009_s3] sm:$0x1] %v3829_v6 }

// kernel: mrfs_forward.14
= control target key start
LH: loop header
LB: loop body
LE: loop exit
PB: predicated region body
PF: predicated region fallthrough
CT: control target
= control target key end

     0   :  { %s258_s1 = inlined_call_operand.vmem [shape: bf16[128,128], index: 1, kind: input, shape index: {}]   ;;  %s259_s2 = inlined_call_operand.vmem [shape: f32[1,128], index: 2, kind: input, shape index: {}]   ;;  %s260_s0 = inlined_call_operand.vmem [shape: bf16[32,128], index: 0, kind: input, shape index: {}]   ;;  %s261_s3 = inlined_call_operand.vmem [shape: bf16[32,128], index: 3, kind: output, shape index: {}]  }
   0x1   :  { %v178_v0 = vld [vmem:[%s258_s1 + $0x38] sm:$0xff]  ;;  %v177_v1 = vld [vmem:[%s258_s1 + $0x30] sm:$0xff]  ;;  %v176_v2 = vld [vmem:[%s258_s1 + $0x28] sm:$0xff] }
   0x2   :  { %98 = vmatpush.bf16.msra.mxu0 %v178_v0  ;;  %190 = vmatpush.bf16.msra.mxu1 %v178_v0  ;;  %v175_v3 = vld [vmem:[%s258_s1 + $0x20] sm:$0xff]  ;;  %v174_v4 = vld [vmem:[%s258_s1 + $0x18] sm:$0xff]  ;;  %v173_v5 = vld [vmem:[%s258_s1 + $0x10] sm:$0xff] }
   0x3   :  { %v172_v6 = vld [vmem:[%s258_s1 + $0x8] sm:$0xff]  ;;  %v171_v7 = vld [vmem:[%s258_s1] sm:$0xff] }
   0x4   :  { %v169_v8 = vld [vmem:[%s260_s0] sm:$0xff]  ;;  %v170_v9 = vld [vmem:[%s260_s0 + $0x8] sm:$0xff] }
   0x5   :  { %v198_v12 = vld [vmem:[%s259_s2] ss:$0 sm:$0xff] }
   0x6   :  { %99 = vmatpush.bf16.msra.mxu0 %v177_v1  ;;  %191 = vmatpush.bf16.msra.mxu1 %v177_v1 }
   0xa   :  { %100 = vmatpush.bf16.msra.mxu0 %v176_v2  ;;  %192 = vmatpush.bf16.msra.mxu1 %v176_v2 }
   0xe   :  { %101 = vmatpush.bf16.msra.mxu0 %v175_v3  ;;  %193 = vmatpush.bf16.msra.mxu1 %v175_v3 }
  0x12   :  { %102 = vmatpush.bf16.msra.mxu0 %v174_v4  ;;  %194 = vmatpush.bf16.msra.mxu1 %v174_v4 }
  0x16   :  { %103 = vmatpush.bf16.msra.mxu0 %v173_v5  ;;  %195 = vmatpush.bf16.msra.mxu1 %v173_v5 }
  0x1a   :  { %104 = vmatpush.bf16.msra.mxu0 %v172_v6  ;;  %196 = vmatpush.bf16.msra.mxu1 %v172_v6 }
  0x1e   :  { %105 = vmatpush.bf16.msra.mxu0 %v171_v7  ;;  %197 = vmatpush.bf16.msra.mxu1 %v171_v7 }
  0x21   :  { %106 = vmatmul.bf16.vlgmr.msra.gmra.mxu0 %v169_v8  ;;  %111 = vmatmul.bf16.vlgmr.msra.gmra.mxu1 %v170_v9 }
  0x9e   :  { %v107_v10 = vpop.f32.mrf.mxu0  ;;  %v112_v11 = vpop.f32.mrf.mxu1 }
  0x9f   :  { %v108_v15 = vadd.f32 %v198_v12, %v107_v10  ;;  %v113_v16 = vadd.f32 %v198_v12, %v112_v11 }
  0xa6   :  { %v109_v13 = vpop.f32.mrf.mxu0  ;;  %v114_v14 = vpop.f32.mrf.mxu1 }
  0xa7   :  { %v110_v17 = vadd.f32 %v198_v12, %v109_v13  ;;  %v115_v18 = vadd.f32 %v198_v12, %v114_v14 }
  0xa9   :  { %v182_v19 = vpack.c.bf16 %v110_v17, %v108_v15  ;;  %v187_v20 = vpack.c.bf16 %v115_v18, %v113_v16 }
  0xab   :  { %183 = vst [vmem:[%s261_s3] sm:$0xff] %v182_v19  }
  0xac   :  { %189 = vst [vmem:[%s261_s3 + $0x8] sm:$0xff] %v187_v20  }

// kernel: mrfs_forward.15
= control target key start
LH: loop header
LB: loop body
LE: loop exit
PB: predicated region body
PF: predicated region fallthrough
CT: control target
= control target key end

     0   :  { %s196_s1 = inlined_call_operand.vmem [shape: bf16[128,128], index: 1, kind: input, shape index: {}]   ;;  %s197_s2 = inlined_call_operand.vmem [shape: f32[1,128], index: 2, kind: input, shape index: {}]   ;;  %s198_s0 = inlined_call_operand.vmem [shape: bf16[8,128], index: 0, kind: input, shape index: {}]   ;;  %s199_s3 = inlined_call_operand.vmem [shape: bf16[8,128], index: 3, kind: output, shape index: {}]  }
   0x1   :  { %v141_v0 = vld [vmem:[%s196_s1 + $0x38] sm:$0xff]  ;;  %v140_v1 = vld [vmem:[%s196_s1 + $0x30] sm:$0xff]  ;;  %v139_v2 = vld [vmem:[%s196_s1 + $0x28] sm:$0xff] }
   0x2   :  { %83 = vmatpush.bf16.msra.mxu0 %v141_v0  ;;  %v138_v3 = vld [vmem:[%s196_s1 + $0x20] sm:$0xff]  ;;  %v137_v4 = vld [vmem:[%s196_s1 + $0x18] sm:$0xff]  ;;  %v136_v5 = vld [vmem:[%s196_s1 + $0x10] sm:$0xff] }
   0x3   :  { %v135_v6 = vld [vmem:[%s196_s1 + $0x8] sm:$0xff]  ;;  %v134_v7 = vld [vmem:[%s196_s1] sm:$0xff] }
   0x4   :  { %v14_v8 = vld [vmem:[%s198_s0] sm:$0xf] }
   0x5   :  { %v142_v9 = vld [vmem:[%s197_s2] ss:$0 sm:$0xff] }
   0x6   :  { %84 = vmatpush.bf16.msra.mxu0 %v140_v1 }
   0xa   :  { %85 = vmatpush.bf16.msra.mxu0 %v139_v2 }
   0xe   :  { %86 = vmatpush.bf16.msra.mxu0 %v138_v3 }
  0x12   :  { %87 = vmatpush.bf16.msra.mxu0 %v137_v4 }
  0x16   :  { %88 = vmatpush.bf16.msra.mxu0 %v136_v5 }
  0x1a   :  { %89 = vmatpush.bf16.msra.mxu0 %v135_v6 }
  0x1e   :  { %90 = vmatpush.bf16.msra.mxu0 %v134_v7 }
  0x21   :  { %91 = vmatmul.bf16.vlgmr.msra.gmra.mxu0 %v14_v8 }
  0x9e   :  { %v92_v10 = vpop.f32.mrf.mxu0 }
  0x9f   :  { %v93_v11 = vadd.f32 %v142_v9, %v92_v10 }
  0xa1   :  { %v96_v12 = vpack.c.bf16 %v93_v11, %v93_v11 }
  0xa3   :  { %97 = vst [vmem:[%s199_s3] sm:$0xf] %v96_v12 }
  0xa6   :  { %v94_v13 = vpop.f32.mrf.mxu0 }

// kernel: mrfs_forward.16
= control target key start
LH: loop header
LB: loop body
LE: loop exit
PB: predicated region body
PF: predicated region fallthrough
CT: control target
= control target key end

     0   :  { %s196_s1 = inlined_call_operand.vmem [shape: bf16[128,128], index: 1, kind: input, shape index: {}]   ;;  %s197_s2 = inlined_call_operand.vmem [shape: f32[1,128], index: 2, kind: input, shape index: {}]   ;;  %s198_s0 = inlined_call_operand.vmem [shape: bf16[2,128], index: 0, kind: input, shape index: {}]   ;;  %s199_s3 = inlined_call_operand.vmem [shape: bf16[2,128], index: 3, kind: output, shape index: {}]  }
   0x1   :  { %v141_v0 = vld [vmem:[%s196_s1 + $0x38] sm:$0xff]  ;;  %v140_v1 = vld [vmem:[%s196_s1 + $0x30] sm:$0xff]  ;;  %v139_v2 = vld [vmem:[%s196_s1 + $0x28] sm:$0xff] }
   0x2   :  { %83 = vmatpush.bf16.msra.mxu0 %v141_v0  ;;  %v138_v3 = vld [vmem:[%s196_s1 + $0x20] sm:$0xff]  ;;  %v137_v4 = vld [vmem:[%s196_s1 + $0x18] sm:$0xff]  ;;  %v136_v5 = vld [vmem:[%s196_s1 + $0x10] sm:$0xff] }
   0x3   :  { %v135_v6 = vld [vmem:[%s196_s1 + $0x8] sm:$0xff]  ;;  %v134_v7 = vld [vmem:[%s196_s1] sm:$0xff] }
   0x4   :  { %v14_v8 = vld [vmem:[%s198_s0] sm:$0x1] }
   0x5   :  { %v142_v9 = vld [vmem:[%s197_s2] ss:$0 sm:$0xff] }
   0x6   :  { %84 = vmatpush.bf16.msra.mxu0 %v140_v1 }
   0xa   :  { %85 = vmatpush.bf16.msra.mxu0 %v139_v2 }
   0xe   :  { %86 = vmatpush.bf16.msra.mxu0 %v138_v3 }
  0x12   :  { %87 = vmatpush.bf16.msra.mxu0 %v137_v4 }
  0x16   :  { %88 = vmatpush.bf16.msra.mxu0 %v136_v5 }
  0x1a   :  { %89 = vmatpush.bf16.msra.mxu0 %v135_v6 }
  0x1e   :  { %90 = vmatpush.bf16.msra.mxu0 %v134_v7 }
  0x21   :  { %91 = vmatmul.bf16.vlgmr.msra.gmra.mxu0 %v14_v8 }
  0x9e   :  { %v92_v10 = vpop.f32.mrf.mxu0 }
  0x9f   :  { %v93_v11 = vadd.f32 %v142_v9, %v92_v10 }
  0xa1   :  { %v96_v12 = vpack.c.bf16 %v93_v11, %v93_v11 }
  0xa3   :  { %97 = vst [vmem:[%s199_s3] sm:$0x1] %v96_v12 }
  0xa6   :  { %v94_v13 = vpop.f32.mrf.mxu0 }

// kernel: mrfs_forward.17
= control target key start
LH: loop header
LB: loop body
LE: loop exit
PB: predicated region body
PF: predicated region fallthrough
CT: control target
= control target key end

     0   :  { %s478_s1 = inlined_call_operand.vmem [shape: bf16[128,128], index: 1, kind: input, shape index: {}]   ;;  %s479_s2 = inlined_call_operand.vmem [shape: f32[1,128], index: 2, kind: input, shape index: {}]   ;;  %s480_s0 = inlined_call_operand.vmem [shape: bf16[128,128], index: 0, kind: input, shape index: {}]   ;;  %s481_s3 = inlined_call_operand.vmem [shape: bf16[128,128], index: 3, kind: output, shape index: {}]  }
   0x1   :  { %v310_v0 = vld [vmem:[%s478_s1 + $0x38] sm:$0xff]  ;;  %v309_v1 = vld [vmem:[%s478_s1 + $0x30] sm:$0xff]  ;;  %v308_v2 = vld [vmem:[%s478_s1 + $0x28] sm:$0xff] }
   0x2   :  { %146 = vmatpush.bf16.msra.mxu0 %v310_v0  ;;  %358 = vmatpush.bf16.msra.mxu1 %v310_v0  ;;  %v307_v3 = vld [vmem:[%s478_s1 + $0x20] sm:$0xff]  ;;  %v306_v4 = vld [vmem:[%s478_s1 + $0x18] sm:$0xff]  ;;  %v305_v5 = vld [vmem:[%s478_s1 + $0x10] sm:$0xff] }
   0x3   :  { %359 = vmatpush.bf16.msra.mxu2 %v310_v0  ;;  %360 = vmatpush.bf16.msra.mxu3 %v310_v0  ;;  %v304_v6 = vld [vmem:[%s478_s1 + $0x8] sm:$0xff]  ;;  %v303_v7 = vld [vmem:[%s478_s1] sm:$0xff]  ;;  %v297_v9 = vld [vmem:[%s480_s0 + $0x10] sm:$0xff] }
   0x4   :  { %v295_v8 = vld [vmem:[%s480_s0] sm:$0xff]  ;;  %v301_v11 = vld [vmem:[%s480_s0 + $0x30] sm:$0xff]  ;;  %v296_v12 = vld [vmem:[%s480_s0 + $0x8] sm:$0xff] }
   0x5   :  { %v299_v10 = vld [vmem:[%s480_s0 + $0x20] sm:$0xff]  ;;  %v298_v13 = vld [vmem:[%s480_s0 + $0x18] sm:$0xff]  ;;  %v300_v14 = vld [vmem:[%s480_s0 + $0x28] sm:$0xff] }
   0x6   :  { %147 = vmatpush.bf16.msra.mxu0 %v309_v1  ;;  %361 = vmatpush.bf16.msra.mxu1 %v309_v1  ;;  %v302_v15 = vld [vmem:[%s480_s0 + $0x38] sm:$0xff]  ;;  %v382_v18 = vld [vmem:[%s479_s2] ss:$0 sm:$0xff] }
   0x7   :  { %362 = vmatpush.bf16.msra.mxu2 %v309_v1  ;;  %363 = vmatpush.bf16.msra.mxu3 %v309_v1 }
   0xa   :  { %148 = vmatpush.bf16.msra.mxu0 %v308_v2  ;;  %364 = vmatpush.bf16.msra.mxu1 %v308_v2 }
   0xb   :  { %365 = vmatpush.bf16.msra.mxu2 %v308_v2  ;;  %366 = vmatpush.bf16.msra.mxu3 %v308_v2 }
   0xe   :  { %149 = vmatpush.bf16.msra.mxu0 %v307_v3  ;;  %367 = vmatpush.bf16.msra.mxu1 %v307_v3 }
   0xf   :  { %368 = vmatpush.bf16.msra.mxu2 %v307_v3  ;;  %369 = vmatpush.bf16.msra.mxu3 %v307_v3 }
  0x12   :  { %150 = vmatpush.bf16.msra.mxu0 %v306_v4  ;;  %370 = vmatpush.bf16.msra.mxu1 %v306_v4 }
  0x13   :  { %371 = vmatpush.bf16.msra.mxu2 %v306_v4  ;;  %372 = vmatpush.bf16.msra.mxu3 %v306_v4 }
  0x16   :  { %151 = vmatpush.bf16.msra.mxu0 %v305_v5  ;;  %373 = vmatpush.bf16.msra.mxu1 %v305_v5 }
  0x17   :  { %374 = vmatpush.bf16.msra.mxu2 %v305_v5  ;;  %375 = vmatpush.bf16.msra.mxu3 %v305_v5 }
  0x1a   :  { %152 = vmatpush.bf16.msra.mxu0 %v304_v6  ;;  %376 = vmatpush.bf16.msra.mxu1 %v304_v6 }
  0x1b   :  { %377 = vmatpush.bf16.msra.mxu2 %v304_v6  ;;  %378 = vmatpush.bf16.msra.mxu3 %v304_v6 }
  0x1e   :  { %153 = vmatpush.bf16.msra.mxu0 %v303_v7  ;;  %379 = vmatpush.bf16.msra.mxu1 %v303_v7 }
  0x1f   :  { %380 = vmatpush.bf16.msra.mxu2 %v303_v7  ;;  %381 = vmatpush.bf16.msra.mxu3 %v303_v7 }
  0x21   :  { %154 = vmatmul.bf16.vlgmr.msra.gmra.mxu0 %v295_v8  ;;  %164 = vmatmul.bf16.vlgmr.msra.gmra.mxu1 %v297_v9 }
  0x22   :  { %174 = vmatmul.bf16.vlgmr.msra.gmra.mxu2 %v299_v10  ;;  %184 = vmatmul.bf16.vlgmr.msra.gmra.mxu3 %v301_v11 }
  0x31   :  { %159 = vmatmul.bf16.gmra.mxu0 %v296_v12  ;;  %169 = vmatmul.bf16.gmra.mxu1 %v298_v13 }
  0x32   :  { %179 = vmatmul.bf16.gmra.mxu2 %v300_v14  ;;  %189 = vmatmul.bf16.gmra.mxu3 %v302_v15 }
  0x9e   :  { %v155_v16 = vpop.f32.mrf.mxu0  ;;  %v165_v17 = vpop.f32.mrf.mxu1 }
  0x9f   :  { %v156_v23 = vadd.f32 %v382_v18, %v155_v16  ;;  %v166_v24 = vadd.f32 %v382_v18, %v165_v17 }
  0xa5   :  { %v175_v19 = vpop.f32.mrf.mxu2  ;;  %v185_v20 = vpop.f32.mrf.mxu3 }
  0xa6   :  { %v157_v21 = vpop.f32.mrf.mxu0  ;;  %v167_v22 = vpop.f32.mrf.mxu1  ;;  %v176_v31 = vadd.f32 %v382_v18, %v175_v19  ;;  %v186_v32 = vadd.f32 %v382_v18, %v185_v20 }
  0xa7   :  { %v158_v25 = vadd.f32 %v382_v18, %v157_v21  ;;  %v168_v26 = vadd.f32 %v382_v18, %v167_v22 }
  0xa9   :  { %v314_v27 = vpack.c.bf16 %v158_v25, %v156_v23  ;;  %v324_v28 = vpack.c.bf16 %v168_v26, %v166_v24 }
  0xab   :  { %315 = vst [vmem:[%s481_s3] sm:$0xff] %v314_v27  }
  0xac   :  { %352 = vst [vmem:[%s481_s3 + $0x10] sm:$0xff] %v324_v28  }
  0xad   :  { %v177_v29 = vpop.f32.mrf.mxu2  ;;  %v187_v30 = vpop.f32.mrf.mxu3 }
  0xae   :  { %v178_v33 = vadd.f32 %v382_v18, %v177_v29  ;;  %v188_v34 = vadd.f32 %v382_v18, %v187_v30  ;;  %v160_v35 = vpop.f32.mrf.mxu0  ;;  %v170_v36 = vpop.f32.mrf.mxu1 }
  0xaf   :  { %v161_v43 = vadd.f32 %v382_v18, %v160_v35  ;;  %v171_v44 = vadd.f32 %v382_v18, %v170_v36 }
  0xb0   :  { %v334_v37 = vpack.c.bf16 %v178_v33, %v176_v31  ;;  %v344_v38 = vpack.c.bf16 %v188_v34, %v186_v32 }
  0xb2   :  { %354 = vst [vmem:[%s481_s3 + $0x20] sm:$0xff] %v334_v37  }
  0xb3   :  { %356 = vst [vmem:[%s481_s3 + $0x30] sm:$0xff] %v344_v38  }
  0xb5   :  { %v180_v39 = vpop.f32.mrf.mxu2  ;;  %v190_v40 = vpop.f32.mrf.mxu3 }
  0xb6   :  { %v162_v41 = vpop.f32.mrf.mxu0  ;;  %v172_v42 = vpop.f32.mrf.mxu1  ;;  %v181_v51 = vadd.f32 %v382_v18, %v180_v39  ;;  %v191_v52 = vadd.f32 %v382_v18, %v190_v40 }
  0xb7   :  { %v163_v45 = vadd.f32 %v382_v18, %v162_v41  ;;  %v173_v46 = vadd.f32 %v382_v18, %v172_v42 }
  0xb9   :  { %v319_v47 = vpack.c.bf16 %v163_v45, %v161_v43  ;;  %v329_v48 = vpack.c.bf16 %v173_v46, %v171_v44 }
  0xbb   :  { %351 = vst [vmem:[%s481_s3 + $0x8] sm:$0xff] %v319_v47  }
  0xbc   :  { %353 = vst [vmem:[%s481_s3 + $0x18] sm:$0xff] %v329_v48  }
  0xbd   :  { %v182_v49 = vpop.f32.mrf.mxu2  ;;  %v192_v50 = vpop.f32.mrf.mxu3 }
  0xbe   :  { %v183_v53 = vadd.f32 %v382_v18, %v182_v49  ;;  %v193_v54 = vadd.f32 %v382_v18, %v192_v50 }
  0xc0   :  { %v339_v55 = vpack.c.bf16 %v183_v53, %v181_v51  ;;  %v349_v56 = vpack.c.bf16 %v193_v54, %v191_v52 }
  0xc2   :  { %355 = vst [vmem:[%s481_s3 + $0x28] sm:$0xff] %v339_v55  }
  0xc3   :  { %357 = vst [vmem:[%s481_s3 + $0x38] sm:$0xff] %v349_v56  }

</bundles_post_ra>
